<compile_context>
chip_gen: v5e
topology: v5e:2x2
jax: 0.10.0
libtpu: 0.0.40
codegen_flags: <defaults>
</compile_context>

<pallas_src>
import jax
import jax.numpy as jnp
from jax import lax
from jax.experimental import pallas as pl
from jax.experimental.pallas import tpu as pltpu

_LANE = 128
_SUBLANE = 8


def _round_up(x, m):
    return (x + m - 1) // m * m


def _pick_chunk(seq_len, target=64):
    """Largest divisor of seq_len that is <= target (avoids time padding)."""
    t = min(seq_len, target)
    while seq_len % t:
        t -= 1
    return t


def _make_gru_kernel(chunk_len, b_block, h_pad, num_layers):
    Hp = h_pad
    G3 = 3 * Hp
    unroll = max(1, min(chunk_len, 8))

    def kernel(*refs):
        x_ref = refs[0]                           # (chunk*B, I_pad) bf16
        w_refs = refs[1:1 + 4 * num_layers]
        r_out_ref = refs[1 + 4 * num_layers]      # (chunk*B, Hp) f32
        h_n_ref = refs[2 + 4 * num_layers]        # (L, B, Hp) f32
        gi_scr = refs[3 + 4 * num_layers]         # (chunk*B, 3*Hp) f32
        h_carry = refs[4 + 4 * num_layers]        # (L, B, Hp) f32
        seq_in = refs[5 + 4 * num_layers] if num_layers > 1 else None  # (chunk*B, Hp) f32

        c = pl.program_id(1)

        @pl.when(c == 0)
        def _():
            h_carry[...] = jnp.zeros_like(h_carry)

        for layer in range(num_layers):
            w_ih_t = w_refs[4 * layer + 0][...]   # (in_pad, 3*Hp) bf16
            w_hh_t = w_refs[4 * layer + 1][...]   # (Hp, 3*Hp)     bf16
            b_hx = w_refs[4 * layer + 2][...]     # (1, 3*Hp) f32: b_hh (+ b_ih on r/z slabs)
            b_in = w_refs[4 * layer + 3][...]     # (1, Hp)   f32: n-gate input bias

            if layer == 0:
                lhs = x_ref[...]                                  # already bf16
            else:
                lhs = seq_in[...].astype(jnp.bfloat16)            # prev layer outputs

            # One big MXU matmul per layer per chunk (no bias add over the
            # whole chunk — biases are folded into the per-step adds below).
            gi_scr[...] = jnp.dot(lhs, w_ih_t, preferred_element_type=jnp.float32)

            # Hoisted broadcasts (JAX does not CSE broadcast_in_dim in loops).
            b_hx_b = jnp.broadcast_to(b_hx, (b_block, G3))
            b_in_b = jnp.broadcast_to(b_in, (b_block, Hp))

            last_layer = layer == num_layers - 1

            def step(t, h, _w_hh_t=w_hh_t, _b_hx_b=b_hx_b, _b_in_b=b_in_b,
                     _last=last_layer):
                row = pl.multiple_of(t * b_block, _SUBLANE)
                gi = gi_scr[pl.ds(row, b_block), :]
                gh = jnp.dot(h.astype(jnp.bfloat16), _w_hh_t,
                             preferred_element_type=jnp.float32) + _b_hx_b
                # PyTorch GRU gate order: r, z, n (128-lane-aligned slabs).
                r = jax.nn.sigmoid(gi[:, 0:Hp] + gh[:, 0:Hp])
                z = jax.nn.sigmoid(gi[:, Hp:2 * Hp] + gh[:, Hp:2 * Hp])
                n = jnp.tanh(gi[:, 2 * Hp:3 * Hp] + _b_in_b + r * gh[:, 2 * Hp:3 * Hp])
                h_new = n + z * (h - n)        # == (1-z)*n + z*h, shorter h-chain
                if _last:
                    r_out_ref[pl.ds(row, b_block), :] = h_new     # dense (8,128) store
                else:
                    seq_in[pl.ds(row, b_block), :] = h_new        # next layer's input
                return h_new

            h_final = lax.fori_loop(0, chunk_len, step, h_carry[layer],
                                    unroll=unroll)
            h_carry[layer] = h_final

        @pl.when(c == pl.num_programs(1) - 1)
        def _():
            h_n_ref[...] = h_carry[...]

    return kernel


def _pack_w(w, hidden, in_dim, in_pad, h_pad):
    """w: (3H, in_dim) torch layout -> (in_pad, 3*H_pad) bf16, gate-slab padded."""
    out = jnp.zeros((in_pad, 3 * h_pad), jnp.float32)
    for g in range(3):
        wg = jnp.transpose(w[g * hidden:(g + 1) * hidden, :]).astype(jnp.float32)
        out = out.at[:in_dim, g * h_pad:g * h_pad + hidden].set(wg)
    return out.astype(jnp.bfloat16)


def _pack_bias_hx(b_ih, b_hh, hidden, h_pad):
    """Per-step bias added to h@W_hh: r/z slabs = b_ih+b_hh, n slab = b_hh only."""
    out = jnp.zeros((3 * h_pad,), jnp.float32)
    for g in range(3):
        val = b_hh[g * hidden:(g + 1) * hidden].astype(jnp.float32)
        if g < 2:
            val = val + b_ih[g * hidden:(g + 1) * hidden].astype(jnp.float32)
        out = out.at[g * h_pad:g * h_pad + hidden].set(val)
    return out.reshape(1, 3 * h_pad)


def _pack_bias_in(b_ih, hidden, h_pad):
    """n-gate input bias (must stay outside r * (W_hn h + b_hn))."""
    out = jnp.zeros((h_pad,), jnp.float32)
    out = out.at[:hidden].set(b_ih[2 * hidden:3 * hidden].astype(jnp.float32))
    return out.reshape(1, h_pad)


def gru_pallas(x, params, *, batch_blocks=1, chunk_target=64):
    """x: (seq_len, batch, input_size) f32.
    params: list over layers of (w_ih (3H,in), w_hh (3H,H), b_ih (3H,), b_hh (3H,)).
    batch_blocks: number of batch-parallel grid blocks (set 2 on v7x for batch>=16)."""
    seq_len, batch, input_size = x.shape
    num_layers = len(params)
    hidden = params[0][1].shape[1]

    h_pad = _round_up(hidden, _LANE)
    i_pad = _round_up(input_size, _LANE)

    nbb = max(1, int(batch_blocks))
    b_block = _round_up(-(-batch // nbb), _SUBLANE)
    b_total = nbb * b_block

    chunk_len = _pick_chunk(seq_len, chunk_target)
    num_chunks = seq_len // chunk_len
    rows = chunk_len * b_block

    # Pad input (zero pad rows/lanes keep real-row math exact), cast to bf16
    # (only ever used as MXU LHS), group by batch block and pre-flatten (t, b)
    # so the kernel never reshapes in VMEM.
    xp = jnp.zeros((seq_len, b_total, i_pad), jnp.float32)
    xp = xp.at[:, :batch, :input_size].set(x.astype(jnp.float32))
    xp = xp.astype(jnp.bfloat16)
    xp = xp.reshape(seq_len, nbb, b_block, i_pad).transpose(1, 0, 2, 3)
    xp = xp.reshape(nbb, seq_len * b_block, i_pad)

    flat = []
    for layer, (w_ih, w_hh, b_ih, b_hh) in enumerate(params):
        in_dim = input_size if layer == 0 else hidden
        in_pad = i_pad if layer == 0 else h_pad
        flat.append(_pack_w(w_ih, hidden, in_dim, in_pad, h_pad))
        flat.append(_pack_w(w_hh, hidden, hidden, h_pad, h_pad))
        flat.append(_pack_bias_hx(b_ih, b_hh, hidden, h_pad))
        flat.append(_pack_bias_in(b_ih, hidden, h_pad))

    kernel = _make_gru_kernel(chunk_len, b_block, h_pad, num_layers)

    x_spec = pl.BlockSpec((None, rows, i_pad), lambda bb, c: (bb, c, 0))
    w_specs = [pl.BlockSpec(w.shape, lambda bb, c: (0, 0)) for w in flat]
    r_out_spec = pl.BlockSpec((None, rows, h_pad), lambda bb, c: (bb, c, 0))
    h_n_spec = pl.BlockSpec((None, num_layers, b_block, h_pad),
                            lambda bb, c: (bb, 0, 0, 0))

    out_shape = (
        jax.ShapeDtypeStruct((nbb, seq_len * b_block, h_pad), jnp.float32),
        jax.ShapeDtypeStruct((nbb, num_layers, b_block, h_pad), jnp.float32),
    )

    scratch = [pltpu.VMEM((rows, 3 * h_pad), jnp.float32),          # gi chunk
               pltpu.VMEM((num_layers, b_block, h_pad), jnp.float32)]  # h carry
    if num_layers > 1:
        scratch.append(pltpu.VMEM((rows, h_pad), jnp.float32))      # inter-layer seq

    # VMEM limit from the actual resident set (+50% headroom), clamped.
    weight_bytes = sum(int(w.size) * w.dtype.itemsize for w in flat)
    resident = (2 * rows * i_pad * 2                       # x chunk bf16, dbl-buffered
                + 2 * rows * h_pad * 4                     # r_out chunk f32, dbl-buffered
                + 2 * num_layers * b_block * h_pad * 4     # h_n block
                + 2 * weight_bytes                         # weights
                + rows * 3 * h_pad * 4                     # gi scratch
                + num_layers * b_block * h_pad * 4         # h carry
                + (rows * h_pad * 4 if num_layers > 1 else 0))
    vmem_limit = int(min(max(resident * 3 // 2 + (4 << 20), 16 << 20), 100 << 20))

    flops = 0
    for layer in range(num_layers):
        in_pad = i_pad if layer == 0 else h_pad
        flops += 2 * seq_len * b_total * in_pad * 3 * h_pad   # GI matmuls
        flops += 2 * seq_len * b_total * h_pad * 3 * h_pad    # per-step GH matmuls
        flops += 12 * seq_len * b_total * h_pad               # gate elementwise
    transcendentals = num_layers * 3 * seq_len * b_total * h_pad
    bytes_accessed = (int(xp.size) * 2 + weight_bytes
                      + (seq_len + num_layers) * b_total * h_pad * 4)

    fn = pl.pallas_call(
        kernel,
        grid=(nbb, num_chunks),
        in_specs=[x_spec] + w_specs,
        out_specs=(r_out_spec, h_n_spec),
        out_shape=out_shape,
        scratch_shapes=scratch,
        compiler_params=pltpu.CompilerParams(
            dimension_semantics=("parallel", "arbitrary"),
            vmem_limit_bytes=vmem_limit),
        cost_estimate=pl.CostEstimate(
            flops=int(flops),
            transcendentals=int(transcendentals),
            bytes_accessed=int(bytes_accessed)),
    )
    r_out_p, h_n_p = fn(xp, *flat)

    # Undo padding / batch-block grouping (wrapper-side layout plumbing).
    r_out = (r_out_p.reshape(nbb, seq_len, b_block, h_pad)
             .transpose(1, 0, 2, 3)
             .reshape(seq_len, b_total, h_pad)[:, :batch, :hidden])
    h_n = (h_n_p.transpose(1, 0, 2, 3)
           .reshape(num_layers, b_total, h_pad)[:, :batch, :hidden])
    return r_out, h_n


def gru_reference(x, params):
    """Pure-JAX f32 reference matching torch.nn.GRU semantics (verification)."""
    seq_len, batch, _ = x.shape
    layer_in = x
    h_last = []
    for (w_ih, w_hh, b_ih, b_hh) in params:
        H = w_hh.shape[1]
        h = jnp.zeros((batch, H), jnp.float32)
        outs = []
        for t in range(seq_len):
            gi = layer_in[t] @ w_ih.T + b_ih
            gh = h @ w_hh.T + b_hh
            r = jax.nn.sigmoid(gi[:, :H] + gh[:, :H])
            z = jax.nn.sigmoid(gi[:, H:2 * H] + gh[:, H:2 * H])
            n = jnp.tanh(gi[:, 2 * H:] + r * gh[:, 2 * H:])
            h = (1.0 - z) * n + z * h
            outs.append(h)
        layer_in = jnp.stack(outs, axis=0)
        h_last.append(h)
    return layer_in, jnp.stack(h_last, axis=0)


def init_gru_params(key, input_size, hidden, num_layers):
    """Deterministic PyTorch-style init: U(-1/sqrt(H), 1/sqrt(H))."""
    k = 1.0 / jnp.sqrt(jnp.float32(hidden))
    params = []
    for layer in range(num_layers):
        in_dim = input_size if layer == 0 else hidden
        key, k1, k2, k3, k4 = jax.random.split(key, 5)
        w_ih = jax.random.uniform(k1, (3 * hidden, in_dim), jnp.float32, -k, k)
        w_hh = jax.random.uniform(k2, (3 * hidden, hidden), jnp.float32, -k, k)
        b_ih = jax.random.uniform(k3, (3 * hidden,), jnp.float32, -k, k)
        b_hh = jax.random.uniform(k4, (3 * hidden,), jnp.float32, -k, k)
        params.append((w_ih, w_hh, b_ih, b_hh))
    return params


if __name__ == "__main__":
    # Small shapes consistent with nn.GRU: x is (seq_len, batch, input_size).
    seq_len, batch, input_size, hidden, num_layers = 8, 2, 32, 32, 2

    key = jax.random.PRNGKey(0)
    key, kx = jax.random.split(key)
    x = jax.random.normal(kx, (seq_len, batch, input_size), jnp.float32)
    params = init_gru_params(key, input_size, hidden, num_layers)

    r_out, h_n = gru_pallas(x, params)
    jax.block_until_ready((r_out, h_n))

    r_ref, h_ref = gru_reference(x, params)
    assert r_out.shape == (seq_len, batch, hidden)
    assert h_n.shape == (num_layers, batch, hidden)
    # bf16 MXU operands (f32 accumulation) -> tolerance loosened vs pure-f32 ref.
    assert jnp.allclose(r_out, r_ref, atol=2e-2, rtol=2e-2)
    assert jnp.allclose(h_n, h_ref, atol=2e-2, rtol=2e-2)

    print("KERNEL_OK")
</pallas_src>

<mosaic_0001>
module attributes {stable_mosaic.version = 11 : i64} {
  func.func @kernel(%arg0: i32, %arg1: i32, %arg2: memref<1x64x128xbf16, #tpu.memory_space<vmem>>, %arg3: memref<128x384xbf16, #tpu.memory_space<vmem>>, %arg4: memref<128x384xbf16, #tpu.memory_space<vmem>>, %arg5: memref<1x384xf32, #tpu.memory_space<vmem>>, %arg6: memref<1x128xf32, #tpu.memory_space<vmem>>, %arg7: memref<128x384xbf16, #tpu.memory_space<vmem>>, %arg8: memref<128x384xbf16, #tpu.memory_space<vmem>>, %arg9: memref<1x384xf32, #tpu.memory_space<vmem>>, %arg10: memref<1x128xf32, #tpu.memory_space<vmem>>, %arg11: memref<1x64x128xf32, #tpu.memory_space<vmem>>, %arg12: memref<1x2x8x128xf32, #tpu.memory_space<vmem>>, %arg13: memref<64x384xf32, #tpu.memory_space<vmem>>, %arg14: memref<2x8x128xf32, #tpu.memory_space<vmem>>, %arg15: memref<64x128xf32, #tpu.memory_space<vmem>>) attributes {dimension_semantics = [#tpu.dimension_semantics<parallel>, #tpu.dimension_semantics<arbitrary>], iteration_bounds = array<i64: 1, 1>, scalar_prefetch = 0 : i64, scratch_operands = 3 : i64, tpu.core_type = #tpu.core_type<tc>, window_params = [{transform_indices = @transform_0, window_bounds = array<i64: 1, 64, 128>}, {pipeline_mode = #tpu.pipeline_mode<synchronous>, transform_indices = @transform_1, window_bounds = array<i64: 128, 384>}, {pipeline_mode = #tpu.pipeline_mode<synchronous>, transform_indices = @transform_2, window_bounds = array<i64: 128, 384>}, {pipeline_mode = #tpu.pipeline_mode<synchronous>, transform_indices = @transform_3, window_bounds = array<i64: 1, 384>}, {pipeline_mode = #tpu.pipeline_mode<synchronous>, transform_indices = @transform_4, window_bounds = array<i64: 1, 128>}, {pipeline_mode = #tpu.pipeline_mode<synchronous>, transform_indices = @transform_5, window_bounds = array<i64: 128, 384>}, {pipeline_mode = #tpu.pipeline_mode<synchronous>, transform_indices = @transform_6, window_bounds = array<i64: 128, 384>}, {pipeline_mode = #tpu.pipeline_mode<synchronous>, transform_indices = @transform_7, window_bounds = array<i64: 1, 384>}, {pipeline_mode = #tpu.pipeline_mode<synchronous>, transform_indices = @transform_8, window_bounds = array<i64: 1, 128>}, {transform_indices = @transform_9, window_bounds = array<i64: 1, 64, 128>}, {transform_indices = @transform_10, window_bounds = array<i64: 1, 2, 8, 128>}]} {
    %c0_i32 = arith.constant 0 : i32
    %0 = arith.cmpi eq, %arg1, %c0_i32 : i32
    %1 = arith.extui %0 : i1 to i32
    %c0_i32_0 = arith.constant 0 : i32
    %2 = arith.cmpi ne, %1, %c0_i32_0 : i32
    scf.if %2 {
      %cst_153 = arith.constant 0.000000e+00 : f32
      %600 = vector.broadcast %cst_153 : f32 to vector<2x8x128xf32>
      %c0_154 = arith.constant 0 : index
      %c0_155 = arith.constant 0 : index
      %c0_156 = arith.constant 0 : index
      %601 = vector.load %arg14[%c0_154, %c0_155, %c0_156] : memref<2x8x128xf32, #tpu.memory_space<vmem>>, vector<2x8x128xf32>
      tpu.vector_store %arg14[%c0_154, %c0_155, %c0_156], %600 {strides = array<i32>} : memref<2x8x128xf32, #tpu.memory_space<vmem>>, vector<2x8x128xf32>,
    } else {
    }
    %c0 = arith.constant 0 : index
    %c0_1 = arith.constant 0 : index
    %3 = vector.load %arg3[%c0, %c0_1] : memref<128x384xbf16, #tpu.memory_space<vmem>>, vector<128x384xbf16>
    %c0_2 = arith.constant 0 : index
    %c0_3 = arith.constant 0 : index
    %4 = vector.load %arg4[%c0_2, %c0_3] : memref<128x384xbf16, #tpu.memory_space<vmem>>, vector<128x384xbf16>
    %c0_4 = arith.constant 0 : index
    %c0_5 = arith.constant 0 : index
    %5 = vector.load %arg5[%c0_4, %c0_5] : memref<1x384xf32, #tpu.memory_space<vmem>>, vector<1x384xf32>
    %c0_6 = arith.constant 0 : index
    %c0_7 = arith.constant 0 : index
    %6 = vector.load %arg6[%c0_6, %c0_7] : memref<1x128xf32, #tpu.memory_space<vmem>>, vector<1x128xf32>
    %c0_8 = arith.constant 0 : index
    %c0_9 = arith.constant 0 : index
    %c0_10 = arith.constant 0 : index
    %7 = vector.load %arg2[%c0_8, %c0_9, %c0_10] : memref<1x64x128xbf16, #tpu.memory_space<vmem>>, vector<1x64x128xbf16>
    %8 = vector.shape_cast %7 : vector<1x64x128xbf16> to vector<64x128xbf16>
    %cst = arith.constant dense<0.000000e+00> : vector<64x384xf32>
    %9 = tpu.matmul %8, %3, %cst {dimension_numbers = #tpu.dot_dimension_numbers<[1], [0], [0], [1], [0, 0, 1, 1], [], []>} : vector<64x128xbf16>, vector<128x384xbf16>, vector<64x384xf32> -> vector<64x384xf32>
    %c0_11 = arith.constant 0 : index
    %c0_12 = arith.constant 0 : index
    %10 = vector.load %arg13[%c0_11, %c0_12] : memref<64x384xf32, #tpu.memory_space<vmem>>, vector<64x384xf32>
    tpu.vector_store %arg13[%c0_11, %c0_12], %9 {strides = array<i32>} : memref<64x384xf32, #tpu.memory_space<vmem>>, vector<64x384xf32>,
    %11 = vector.shape_cast %5 : vector<1x384xf32> to vector<1x384xf32>
    %12 = vector.broadcast %11 : vector<1x384xf32> to vector<8x384xf32>
    %13 = vector.shape_cast %6 : vector<1x128xf32> to vector<1x128xf32>
    %14 = vector.broadcast %13 : vector<1x128xf32> to vector<8x128xf32>
    %c0_13 = arith.constant 0 : index
    %c0_14 = arith.constant 0 : index
    %c0_15 = arith.constant 0 : index
    %15 = vector.load %arg14[%c0_13, %c0_14, %c0_15] : memref<2x8x128xf32, #tpu.memory_space<vmem>>, vector<1x8x128xf32>
    %16 = vector.shape_cast %15 : vector<1x8x128xf32> to vector<8x128xf32>
    %c0_i32_16 = arith.constant 0 : i32
    %c8_i32 = arith.constant 8 : i32
    %17 = arith.muli %c0_i32_16, %c8_i32 : i32
    %18 = tpu.assume_multiple %17, 8 : i32
    %19 = arith.index_cast %18 : i32 to index
    %c0_17 = arith.constant 0 : index
    %20 = vector.load %arg13[%19, %c0_17] : memref<64x384xf32, #tpu.memory_space<vmem>>, vector<8x384xf32>
    %21 = arith.truncf %16 : vector<8x128xf32> to vector<8x128xbf16>
    %cst_18 = arith.constant dense<0.000000e+00> : vector<8x384xf32>
    %22 = tpu.matmul %21, %4, %cst_18 {dimension_numbers = #tpu.dot_dimension_numbers<[1], [0], [0], [1], [0, 0, 1, 1], [], []>} : vector<8x128xbf16>, vector<128x384xbf16>, vector<8x384xf32> -> vector<8x384xf32>
    %23 = arith.addf %22, %12 : vector<8x384xf32>
    %24 = vector.extract_strided_slice %20 {offsets = [0, 0], sizes = [8, 128], strides = [1, 1]} : vector<8x384xf32> to vector<8x128xf32>
    %25 = vector.extract_strided_slice %23 {offsets = [0, 0], sizes = [8, 128], strides = [1, 1]} : vector<8x384xf32> to vector<8x128xf32>
    %26 = arith.addf %24, %25 : vector<8x128xf32>
    %27 = arith.negf %26 : vector<8x128xf32>
    %28 = math.exp %27 : vector<8x128xf32>
    %cst_19 = arith.constant 1.000000e+00 : f32
    %29 = vector.broadcast %cst_19 : f32 to vector<8x128xf32>
    %30 = arith.addf %29, %28 : vector<8x128xf32>
    %31 = arith.divf %29, %30 : vector<8x128xf32>
    %32 = vector.extract_strided_slice %20 {offsets = [0, 128], sizes = [8, 128], strides = [1, 1]} : vector<8x384xf32> to vector<8x128xf32>
    %33 = vector.extract_strided_slice %23 {offsets = [0, 128], sizes = [8, 128], strides = [1, 1]} : vector<8x384xf32> to vector<8x128xf32>
    %34 = arith.addf %32, %33 : vector<8x128xf32>
    %35 = arith.negf %34 : vector<8x128xf32>
    %36 = math.exp %35 : vector<8x128xf32>
    %cst_20 = arith.constant 1.000000e+00 : f32
    %37 = vector.broadcast %cst_20 : f32 to vector<8x128xf32>
    %38 = arith.addf %37, %36 : vector<8x128xf32>
    %39 = arith.divf %37, %38 : vector<8x128xf32>
    %40 = vector.extract_strided_slice %20 {offsets = [0, 256], sizes = [8, 128], strides = [1, 1]} : vector<8x384xf32> to vector<8x128xf32>
    %41 = arith.addf %40, %14 : vector<8x128xf32>
    %42 = vector.extract_strided_slice %23 {offsets = [0, 256], sizes = [8, 128], strides = [1, 1]} : vector<8x384xf32> to vector<8x128xf32>
    %43 = arith.mulf %31, %42 : vector<8x128xf32>
    %44 = arith.addf %41, %43 : vector<8x128xf32>
    %45 = math.tanh %44 : vector<8x128xf32>
    %46 = arith.subf %16, %45 : vector<8x128xf32>
    %47 = arith.mulf %39, %46 : vector<8x128xf32>
    %48 = arith.addf %45, %47 : vector<8x128xf32>
    %49 = arith.index_cast %18 : i32 to index
    %c0_21 = arith.constant 0 : index
    %50 = vector.load %arg15[%49, %c0_21] : memref<64x128xf32, #tpu.memory_space<vmem>>, vector<8x128xf32>
    tpu.vector_store %arg15[%49, %c0_21], %48 {strides = array<i32>} : memref<64x128xf32, #tpu.memory_space<vmem>>, vector<8x128xf32>,
    %c1_i32 = arith.constant 1 : i32
    %c8_i32_22 = arith.constant 8 : i32
    %51 = arith.muli %c1_i32, %c8_i32_22 : i32
    %52 = tpu.assume_multiple %51, 8 : i32
    %53 = arith.index_cast %52 : i32 to index
    %c0_23 = arith.constant 0 : index
    %54 = vector.load %arg13[%53, %c0_23] : memref<64x384xf32, #tpu.memory_space<vmem>>, vector<8x384xf32>
    %55 = arith.truncf %48 : vector<8x128xf32> to vector<8x128xbf16>
    %cst_24 = arith.constant dense<0.000000e+00> : vector<8x384xf32>
    %56 = tpu.matmul %55, %4, %cst_24 {dimension_numbers = #tpu.dot_dimension_numbers<[1], [0], [0], [1], [0, 0, 1, 1], [], []>} : vector<8x128xbf16>, vector<128x384xbf16>, vector<8x384xf32> -> vector<8x384xf32>
    %57 = arith.addf %56, %12 : vector<8x384xf32>
    %58 = vector.extract_strided_slice %54 {offsets = [0, 0], sizes = [8, 128], strides = [1, 1]} : vector<8x384xf32> to vector<8x128xf32>
    %59 = vector.extract_strided_slice %57 {offsets = [0, 0], sizes = [8, 128], strides = [1, 1]} : vector<8x384xf32> to vector<8x128xf32>
    %60 = arith.addf %58, %59 : vector<8x128xf32>
    %61 = arith.negf %60 : vector<8x128xf32>
    %62 = math.exp %61 : vector<8x128xf32>
    %cst_25 = arith.constant 1.000000e+00 : f32
    %63 = vector.broadcast %cst_25 : f32 to vector<8x128xf32>
    %64 = arith.addf %63, %62 : vector<8x128xf32>
    %65 = arith.divf %63, %64 : vector<8x128xf32>
    %66 = vector.extract_strided_slice %54 {offsets = [0, 128], sizes = [8, 128], strides = [1, 1]} : vector<8x384xf32> to vector<8x128xf32>
    %67 = vector.extract_strided_slice %57 {offsets = [0, 128], sizes = [8, 128], strides = [1, 1]} : vector<8x384xf32> to vector<8x128xf32>
    %68 = arith.addf %66, %67 : vector<8x128xf32>
    %69 = arith.negf %68 : vector<8x128xf32>
    %70 = math.exp %69 : vector<8x128xf32>
    %cst_26 = arith.constant 1.000000e+00 : f32
    %71 = vector.broadcast %cst_26 : f32 to vector<8x128xf32>
    %72 = arith.addf %71, %70 : vector<8x128xf32>
    %73 = arith.divf %71, %72 : vector<8x128xf32>
    %74 = vector.extract_strided_slice %54 {offsets = [0, 256], sizes = [8, 128], strides = [1, 1]} : vector<8x384xf32> to vector<8x128xf32>
    %75 = arith.addf %74, %14 : vector<8x128xf32>
    %76 = vector.extract_strided_slice %57 {offsets = [0, 256], sizes = [8, 128], strides = [1, 1]} : vector<8x384xf32> to vector<8x128xf32>
    %77 = arith.mulf %65, %76 : vector<8x128xf32>
    %78 = arith.addf %75, %77 : vector<8x128xf32>
    %79 = math.tanh %78 : vector<8x128xf32>
    %80 = arith.subf %48, %79 : vector<8x128xf32>
    %81 = arith.mulf %73, %80 : vector<8x128xf32>
    %82 = arith.addf %79, %81 : vector<8x128xf32>
    %83 = arith.index_cast %52 : i32 to index
    %c0_27 = arith.constant 0 : index
    %84 = vector.load %arg15[%83, %c0_27] : memref<64x128xf32, #tpu.memory_space<vmem>>, vector<8x128xf32>
    tpu.vector_store %arg15[%83, %c0_27], %82 {strides = array<i32>} : memref<64x128xf32, #tpu.memory_space<vmem>>, vector<8x128xf32>,
    %c2_i32 = arith.constant 2 : i32
    %c8_i32_28 = arith.constant 8 : i32
    %85 = arith.muli %c2_i32, %c8_i32_28 : i32
    %86 = tpu.assume_multiple %85, 8 : i32
    %87 = arith.index_cast %86 : i32 to index
    %c0_29 = arith.constant 0 : index
    %88 = vector.load %arg13[%87, %c0_29] : memref<64x384xf32, #tpu.memory_space<vmem>>, vector<8x384xf32>
    %89 = arith.truncf %82 : vector<8x128xf32> to vector<8x128xbf16>
    %cst_30 = arith.constant dense<0.000000e+00> : vector<8x384xf32>
    %90 = tpu.matmul %89, %4, %cst_30 {dimension_numbers = #tpu.dot_dimension_numbers<[1], [0], [0], [1], [0, 0, 1, 1], [], []>} : vector<8x128xbf16>, vector<128x384xbf16>, vector<8x384xf32> -> vector<8x384xf32>
    %91 = arith.addf %90, %12 : vector<8x384xf32>
    %92 = vector.extract_strided_slice %88 {offsets = [0, 0], sizes = [8, 128], strides = [1, 1]} : vector<8x384xf32> to vector<8x128xf32>
    %93 = vector.extract_strided_slice %91 {offsets = [0, 0], sizes = [8, 128], strides = [1, 1]} : vector<8x384xf32> to vector<8x128xf32>
    %94 = arith.addf %92, %93 : vector<8x128xf32>
    %95 = arith.negf %94 : vector<8x128xf32>
    %96 = math.exp %95 : vector<8x128xf32>
    %cst_31 = arith.constant 1.000000e+00 : f32
    %97 = vector.broadcast %cst_31 : f32 to vector<8x128xf32>
    %98 = arith.addf %97, %96 : vector<8x128xf32>
    %99 = arith.divf %97, %98 : vector<8x128xf32>
    %100 = vector.extract_strided_slice %88 {offsets = [0, 128], sizes = [8, 128], strides = [1, 1]} : vector<8x384xf32> to vector<8x128xf32>
    %101 = vector.extract_strided_slice %91 {offsets = [0, 128], sizes = [8, 128], strides = [1, 1]} : vector<8x384xf32> to vector<8x128xf32>
    %102 = arith.addf %100, %101 : vector<8x128xf32>
    %103 = arith.negf %102 : vector<8x128xf32>
    %104 = math.exp %103 : vector<8x128xf32>
    %cst_32 = arith.constant 1.000000e+00 : f32
    %105 = vector.broadcast %cst_32 : f32 to vector<8x128xf32>
    %106 = arith.addf %105, %104 : vector<8x128xf32>
    %107 = arith.divf %105, %106 : vector<8x128xf32>
    %108 = vector.extract_strided_slice %88 {offsets = [0, 256], sizes = [8, 128], strides = [1, 1]} : vector<8x384xf32> to vector<8x128xf32>
    %109 = arith.addf %108, %14 : vector<8x128xf32>
    %110 = vector.extract_strided_slice %91 {offsets = [0, 256], sizes = [8, 128], strides = [1, 1]} : vector<8x384xf32> to vector<8x128xf32>
    %111 = arith.mulf %99, %110 : vector<8x128xf32>
    %112 = arith.addf %109, %111 : vector<8x128xf32>
    %113 = math.tanh %112 : vector<8x128xf32>
    %114 = arith.subf %82, %113 : vector<8x128xf32>
    %115 = arith.mulf %107, %114 : vector<8x128xf32>
    %116 = arith.addf %113, %115 : vector<8x128xf32>
    %117 = arith.index_cast %86 : i32 to index
    %c0_33 = arith.constant 0 : index
    %118 = vector.load %arg15[%117, %c0_33] : memref<64x128xf32, #tpu.memory_space<vmem>>, vector<8x128xf32>
    tpu.vector_store %arg15[%117, %c0_33], %116 {strides = array<i32>} : memref<64x128xf32, #tpu.memory_space<vmem>>, vector<8x128xf32>,
    %c3_i32 = arith.constant 3 : i32
    %c8_i32_34 = arith.constant 8 : i32
    %119 = arith.muli %c3_i32, %c8_i32_34 : i32
    %120 = tpu.assume_multiple %119, 8 : i32
    %121 = arith.index_cast %120 : i32 to index
    %c0_35 = arith.constant 0 : index
    %122 = vector.load %arg13[%121, %c0_35] : memref<64x384xf32, #tpu.memory_space<vmem>>, vector<8x384xf32>
    %123 = arith.truncf %116 : vector<8x128xf32> to vector<8x128xbf16>
    %cst_36 = arith.constant dense<0.000000e+00> : vector<8x384xf32>
    %124 = tpu.matmul %123, %4, %cst_36 {dimension_numbers = #tpu.dot_dimension_numbers<[1], [0], [0], [1], [0, 0, 1, 1], [], []>} : vector<8x128xbf16>, vector<128x384xbf16>, vector<8x384xf32> -> vector<8x384xf32>
    %125 = arith.addf %124, %12 : vector<8x384xf32>
    %126 = vector.extract_strided_slice %122 {offsets = [0, 0], sizes = [8, 128], strides = [1, 1]} : vector<8x384xf32> to vector<8x128xf32>
    %127 = vector.extract_strided_slice %125 {offsets = [0, 0], sizes = [8, 128], strides = [1, 1]} : vector<8x384xf32> to vector<8x128xf32>
    %128 = arith.addf %126, %127 : vector<8x128xf32>
    %129 = arith.negf %128 : vector<8x128xf32>
    %130 = math.exp %129 : vector<8x128xf32>
    %cst_37 = arith.constant 1.000000e+00 : f32
    %131 = vector.broadcast %cst_37 : f32 to vector<8x128xf32>
    %132 = arith.addf %131, %130 : vector<8x128xf32>
    %133 = arith.divf %131, %132 : vector<8x128xf32>
    %134 = vector.extract_strided_slice %122 {offsets = [0, 128], sizes = [8, 128], strides = [1, 1]} : vector<8x384xf32> to vector<8x128xf32>
    %135 = vector.extract_strided_slice %125 {offsets = [0, 128], sizes = [8, 128], strides = [1, 1]} : vector<8x384xf32> to vector<8x128xf32>
    %136 = arith.addf %134, %135 : vector<8x128xf32>
    %137 = arith.negf %136 : vector<8x128xf32>
    %138 = math.exp %137 : vector<8x128xf32>
    %cst_38 = arith.constant 1.000000e+00 : f32
    %139 = vector.broadcast %cst_38 : f32 to vector<8x128xf32>
    %140 = arith.addf %139, %138 : vector<8x128xf32>
    %141 = arith.divf %139, %140 : vector<8x128xf32>
    %142 = vector.extract_strided_slice %122 {offsets = [0, 256], sizes = [8, 128], strides = [1, 1]} : vector<8x384xf32> to vector<8x128xf32>
    %143 = arith.addf %142, %14 : vector<8x128xf32>
    %144 = vector.extract_strided_slice %125 {offsets = [0, 256], sizes = [8, 128], strides = [1, 1]} : vector<8x384xf32> to vector<8x128xf32>
    %145 = arith.mulf %133, %144 : vector<8x128xf32>
    %146 = arith.addf %143, %145 : vector<8x128xf32>
    %147 = math.tanh %146 : vector<8x128xf32>
    %148 = arith.subf %116, %147 : vector<8x128xf32>
    %149 = arith.mulf %141, %148 : vector<8x128xf32>
    %150 = arith.addf %147, %149 : vector<8x128xf32>
    %151 = arith.index_cast %120 : i32 to index
    %c0_39 = arith.constant 0 : index
    %152 = vector.load %arg15[%151, %c0_39] : memref<64x128xf32, #tpu.memory_space<vmem>>, vector<8x128xf32>
    tpu.vector_store %arg15[%151, %c0_39], %150 {strides = array<i32>} : memref<64x128xf32, #tpu.memory_space<vmem>>, vector<8x128xf32>,
    %c4_i32 = arith.constant 4 : i32
    %c8_i32_40 = arith.constant 8 : i32
    %153 = arith.muli %c4_i32, %c8_i32_40 : i32
    %154 = tpu.assume_multiple %153, 8 : i32
    %155 = arith.index_cast %154 : i32 to index
    %c0_41 = arith.constant 0 : index
    %156 = vector.load %arg13[%155, %c0_41] : memref<64x384xf32, #tpu.memory_space<vmem>>, vector<8x384xf32>
    %157 = arith.truncf %150 : vector<8x128xf32> to vector<8x128xbf16>
    %cst_42 = arith.constant dense<0.000000e+00> : vector<8x384xf32>
    %158 = tpu.matmul %157, %4, %cst_42 {dimension_numbers = #tpu.dot_dimension_numbers<[1], [0], [0], [1], [0, 0, 1, 1], [], []>} : vector<8x128xbf16>, vector<128x384xbf16>, vector<8x384xf32> -> vector<8x384xf32>
    %159 = arith.addf %158, %12 : vector<8x384xf32>
    %160 = vector.extract_strided_slice %156 {offsets = [0, 0], sizes = [8, 128], strides = [1, 1]} : vector<8x384xf32> to vector<8x128xf32>
    %161 = vector.extract_strided_slice %159 {offsets = [0, 0], sizes = [8, 128], strides = [1, 1]} : vector<8x384xf32> to vector<8x128xf32>
    %162 = arith.addf %160, %161 : vector<8x128xf32>
    %163 = arith.negf %162 : vector<8x128xf32>
    %164 = math.exp %163 : vector<8x128xf32>
    %cst_43 = arith.constant 1.000000e+00 : f32
    %165 = vector.broadcast %cst_43 : f32 to vector<8x128xf32>
    %166 = arith.addf %165, %164 : vector<8x128xf32>
    %167 = arith.divf %165, %166 : vector<8x128xf32>
    %168 = vector.extract_strided_slice %156 {offsets = [0, 128], sizes = [8, 128], strides = [1, 1]} : vector<8x384xf32> to vector<8x128xf32>
    %169 = vector.extract_strided_slice %159 {offsets = [0, 128], sizes = [8, 128], strides = [1, 1]} : vector<8x384xf32> to vector<8x128xf32>
    %170 = arith.addf %168, %169 : vector<8x128xf32>
    %171 = arith.negf %170 : vector<8x128xf32>
    %172 = math.exp %171 : vector<8x128xf32>
    %cst_44 = arith.constant 1.000000e+00 : f32
    %173 = vector.broadcast %cst_44 : f32 to vector<8x128xf32>
    %174 = arith.addf %173, %172 : vector<8x128xf32>
    %175 = arith.divf %173, %174 : vector<8x128xf32>
    %176 = vector.extract_strided_slice %156 {offsets = [0, 256], sizes = [8, 128], strides = [1, 1]} : vector<8x384xf32> to vector<8x128xf32>
    %177 = arith.addf %176, %14 : vector<8x128xf32>
    %178 = vector.extract_strided_slice %159 {offsets = [0, 256], sizes = [8, 128], strides = [1, 1]} : vector<8x384xf32> to vector<8x128xf32>
    %179 = arith.mulf %167, %178 : vector<8x128xf32>
    %180 = arith.addf %177, %179 : vector<8x128xf32>
    %181 = math.tanh %180 : vector<8x128xf32>
    %182 = arith.subf %150, %181 : vector<8x128xf32>
    %183 = arith.mulf %175, %182 : vector<8x128xf32>
    %184 = arith.addf %181, %183 : vector<8x128xf32>
    %185 = arith.index_cast %154 : i32 to index
    %c0_45 = arith.constant 0 : index
    %186 = vector.load %arg15[%185, %c0_45] : memref<64x128xf32, #tpu.memory_space<vmem>>, vector<8x128xf32>
    tpu.vector_store %arg15[%185, %c0_45], %184 {strides = array<i32>} : memref<64x128xf32, #tpu.memory_space<vmem>>, vector<8x128xf32>,
    %c5_i32 = arith.constant 5 : i32
    %c8_i32_46 = arith.constant 8 : i32
    %187 = arith.muli %c5_i32, %c8_i32_46 : i32
    %188 = tpu.assume_multiple %187, 8 : i32
    %189 = arith.index_cast %188 : i32 to index
    %c0_47 = arith.constant 0 : index
    %190 = vector.load %arg13[%189, %c0_47] : memref<64x384xf32, #tpu.memory_space<vmem>>, vector<8x384xf32>
    %191 = arith.truncf %184 : vector<8x128xf32> to vector<8x128xbf16>
    %cst_48 = arith.constant dense<0.000000e+00> : vector<8x384xf32>
    %192 = tpu.matmul %191, %4, %cst_48 {dimension_numbers = #tpu.dot_dimension_numbers<[1], [0], [0], [1], [0, 0, 1, 1], [], []>} : vector<8x128xbf16>, vector<128x384xbf16>, vector<8x384xf32> -> vector<8x384xf32>
    %193 = arith.addf %192, %12 : vector<8x384xf32>
    %194 = vector.extract_strided_slice %190 {offsets = [0, 0], sizes = [8, 128], strides = [1, 1]} : vector<8x384xf32> to vector<8x128xf32>
    %195 = vector.extract_strided_slice %193 {offsets = [0, 0], sizes = [8, 128], strides = [1, 1]} : vector<8x384xf32> to vector<8x128xf32>
    %196 = arith.addf %194, %195 : vector<8x128xf32>
    %197 = arith.negf %196 : vector<8x128xf32>
    %198 = math.exp %197 : vector<8x128xf32>
    %cst_49 = arith.constant 1.000000e+00 : f32
    %199 = vector.broadcast %cst_49 : f32 to vector<8x128xf32>
    %200 = arith.addf %199, %198 : vector<8x128xf32>
    %201 = arith.divf %199, %200 : vector<8x128xf32>
    %202 = vector.extract_strided_slice %190 {offsets = [0, 128], sizes = [8, 128], strides = [1, 1]} : vector<8x384xf32> to vector<8x128xf32>
    %203 = vector.extract_strided_slice %193 {offsets = [0, 128], sizes = [8, 128], strides = [1, 1]} : vector<8x384xf32> to vector<8x128xf32>
    %204 = arith.addf %202, %203 : vector<8x128xf32>
    %205 = arith.negf %204 : vector<8x128xf32>
    %206 = math.exp %205 : vector<8x128xf32>
    %cst_50 = arith.constant 1.000000e+00 : f32
    %207 = vector.broadcast %cst_50 : f32 to vector<8x128xf32>
    %208 = arith.addf %207, %206 : vector<8x128xf32>
    %209 = arith.divf %207, %208 : vector<8x128xf32>
    %210 = vector.extract_strided_slice %190 {offsets = [0, 256], sizes = [8, 128], strides = [1, 1]} : vector<8x384xf32> to vector<8x128xf32>
    %211 = arith.addf %210, %14 : vector<8x128xf32>
    %212 = vector.extract_strided_slice %193 {offsets = [0, 256], sizes = [8, 128], strides = [1, 1]} : vector<8x384xf32> to vector<8x128xf32>
    %213 = arith.mulf %201, %212 : vector<8x128xf32>
    %214 = arith.addf %211, %213 : vector<8x128xf32>
    %215 = math.tanh %214 : vector<8x128xf32>
    %216 = arith.subf %184, %215 : vector<8x128xf32>
    %217 = arith.mulf %209, %216 : vector<8x128xf32>
    %218 = arith.addf %215, %217 : vector<8x128xf32>
    %219 = arith.index_cast %188 : i32 to index
    %c0_51 = arith.constant 0 : index
    %220 = vector.load %arg15[%219, %c0_51] : memref<64x128xf32, #tpu.memory_space<vmem>>, vector<8x128xf32>
    tpu.vector_store %arg15[%219, %c0_51], %218 {strides = array<i32>} : memref<64x128xf32, #tpu.memory_space<vmem>>, vector<8x128xf32>,
    %c6_i32 = arith.constant 6 : i32
    %c8_i32_52 = arith.constant 8 : i32
    %221 = arith.muli %c6_i32, %c8_i32_52 : i32
    %222 = tpu.assume_multiple %221, 8 : i32
    %223 = arith.index_cast %222 : i32 to index
    %c0_53 = arith.constant 0 : index
    %224 = vector.load %arg13[%223, %c0_53] : memref<64x384xf32, #tpu.memory_space<vmem>>, vector<8x384xf32>
    %225 = arith.truncf %218 : vector<8x128xf32> to vector<8x128xbf16>
    %cst_54 = arith.constant dense<0.000000e+00> : vector<8x384xf32>
    %226 = tpu.matmul %225, %4, %cst_54 {dimension_numbers = #tpu.dot_dimension_numbers<[1], [0], [0], [1], [0, 0, 1, 1], [], []>} : vector<8x128xbf16>, vector<128x384xbf16>, vector<8x384xf32> -> vector<8x384xf32>
    %227 = arith.addf %226, %12 : vector<8x384xf32>
    %228 = vector.extract_strided_slice %224 {offsets = [0, 0], sizes = [8, 128], strides = [1, 1]} : vector<8x384xf32> to vector<8x128xf32>
    %229 = vector.extract_strided_slice %227 {offsets = [0, 0], sizes = [8, 128], strides = [1, 1]} : vector<8x384xf32> to vector<8x128xf32>
    %230 = arith.addf %228, %229 : vector<8x128xf32>
    %231 = arith.negf %230 : vector<8x128xf32>
    %232 = math.exp %231 : vector<8x128xf32>
    %cst_55 = arith.constant 1.000000e+00 : f32
    %233 = vector.broadcast %cst_55 : f32 to vector<8x128xf32>
    %234 = arith.addf %233, %232 : vector<8x128xf32>
    %235 = arith.divf %233, %234 : vector<8x128xf32>
    %236 = vector.extract_strided_slice %224 {offsets = [0, 128], sizes = [8, 128], strides = [1, 1]} : vector<8x384xf32> to vector<8x128xf32>
    %237 = vector.extract_strided_slice %227 {offsets = [0, 128], sizes = [8, 128], strides = [1, 1]} : vector<8x384xf32> to vector<8x128xf32>
    %238 = arith.addf %236, %237 : vector<8x128xf32>
    %239 = arith.negf %238 : vector<8x128xf32>
    %240 = math.exp %239 : vector<8x128xf32>
    %cst_56 = arith.constant 1.000000e+00 : f32
    %241 = vector.broadcast %cst_56 : f32 to vector<8x128xf32>
    %242 = arith.addf %241, %240 : vector<8x128xf32>
    %243 = arith.divf %241, %242 : vector<8x128xf32>
    %244 = vector.extract_strided_slice %224 {offsets = [0, 256], sizes = [8, 128], strides = [1, 1]} : vector<8x384xf32> to vector<8x128xf32>
    %245 = arith.addf %244, %14 : vector<8x128xf32>
    %246 = vector.extract_strided_slice %227 {offsets = [0, 256], sizes = [8, 128], strides = [1, 1]} : vector<8x384xf32> to vector<8x128xf32>
    %247 = arith.mulf %235, %246 : vector<8x128xf32>
    %248 = arith.addf %245, %247 : vector<8x128xf32>
    %249 = math.tanh %248 : vector<8x128xf32>
    %250 = arith.subf %218, %249 : vector<8x128xf32>
    %251 = arith.mulf %243, %250 : vector<8x128xf32>
    %252 = arith.addf %249, %251 : vector<8x128xf32>
    %253 = arith.index_cast %222 : i32 to index
    %c0_57 = arith.constant 0 : index
    %254 = vector.load %arg15[%253, %c0_57] : memref<64x128xf32, #tpu.memory_space<vmem>>, vector<8x128xf32>
    tpu.vector_store %arg15[%253, %c0_57], %252 {strides = array<i32>} : memref<64x128xf32, #tpu.memory_space<vmem>>, vector<8x128xf32>,
    %c7_i32 = arith.constant 7 : i32
    %c8_i32_58 = arith.constant 8 : i32
    %255 = arith.muli %c7_i32, %c8_i32_58 : i32
    %256 = tpu.assume_multiple %255, 8 : i32
    %257 = arith.index_cast %256 : i32 to index
    %c0_59 = arith.constant 0 : index
    %258 = vector.load %arg13[%257, %c0_59] : memref<64x384xf32, #tpu.memory_space<vmem>>, vector<8x384xf32>
    %259 = arith.truncf %252 : vector<8x128xf32> to vector<8x128xbf16>
    %cst_60 = arith.constant dense<0.000000e+00> : vector<8x384xf32>
    %260 = tpu.matmul %259, %4, %cst_60 {dimension_numbers = #tpu.dot_dimension_numbers<[1], [0], [0], [1], [0, 0, 1, 1], [], []>} : vector<8x128xbf16>, vector<128x384xbf16>, vector<8x384xf32> -> vector<8x384xf32>
    %261 = arith.addf %260, %12 : vector<8x384xf32>
    %262 = vector.extract_strided_slice %258 {offsets = [0, 0], sizes = [8, 128], strides = [1, 1]} : vector<8x384xf32> to vector<8x128xf32>
    %263 = vector.extract_strided_slice %261 {offsets = [0, 0], sizes = [8, 128], strides = [1, 1]} : vector<8x384xf32> to vector<8x128xf32>
    %264 = arith.addf %262, %263 : vector<8x128xf32>
    %265 = arith.negf %264 : vector<8x128xf32>
    %266 = math.exp %265 : vector<8x128xf32>
    %cst_61 = arith.constant 1.000000e+00 : f32
    %267 = vector.broadcast %cst_61 : f32 to vector<8x128xf32>
    %268 = arith.addf %267, %266 : vector<8x128xf32>
    %269 = arith.divf %267, %268 : vector<8x128xf32>
    %270 = vector.extract_strided_slice %258 {offsets = [0, 128], sizes = [8, 128], strides = [1, 1]} : vector<8x384xf32> to vector<8x128xf32>
    %271 = vector.extract_strided_slice %261 {offsets = [0, 128], sizes = [8, 128], strides = [1, 1]} : vector<8x384xf32> to vector<8x128xf32>
    %272 = arith.addf %270, %271 : vector<8x128xf32>
    %273 = arith.negf %272 : vector<8x128xf32>
    %274 = math.exp %273 : vector<8x128xf32>
    %cst_62 = arith.constant 1.000000e+00 : f32
    %275 = vector.broadcast %cst_62 : f32 to vector<8x128xf32>
    %276 = arith.addf %275, %274 : vector<8x128xf32>
    %277 = arith.divf %275, %276 : vector<8x128xf32>
    %278 = vector.extract_strided_slice %258 {offsets = [0, 256], sizes = [8, 128], strides = [1, 1]} : vector<8x384xf32> to vector<8x128xf32>
    %279 = arith.addf %278, %14 : vector<8x128xf32>
    %280 = vector.extract_strided_slice %261 {offsets = [0, 256], sizes = [8, 128], strides = [1, 1]} : vector<8x384xf32> to vector<8x128xf32>
    %281 = arith.mulf %269, %280 : vector<8x128xf32>
    %282 = arith.addf %279, %281 : vector<8x128xf32>
    %283 = math.tanh %282 : vector<8x128xf32>
    %284 = arith.subf %252, %283 : vector<8x128xf32>
    %285 = arith.mulf %277, %284 : vector<8x128xf32>
    %286 = arith.addf %283, %285 : vector<8x128xf32>
    %287 = arith.index_cast %256 : i32 to index
    %c0_63 = arith.constant 0 : index
    %288 = vector.load %arg15[%287, %c0_63] : memref<64x128xf32, #tpu.memory_space<vmem>>, vector<8x128xf32>
    tpu.vector_store %arg15[%287, %c0_63], %286 {strides = array<i32>} : memref<64x128xf32, #tpu.memory_space<vmem>>, vector<8x128xf32>,
    %c8_i32_64 = arith.constant 8 : i32
    %c0_65 = arith.constant 0 : index
    %c0_66 = arith.constant 0 : index
    %c0_67 = arith.constant 0 : index
    %289 = vector.load %arg14[%c0_65, %c0_66, %c0_67] : memref<2x8x128xf32, #tpu.memory_space<vmem>>, vector<1x8x128xf32>
    %290 = vector.shape_cast %289 : vector<1x8x128xf32> to vector<8x128xf32>
    %291 = vector.shape_cast %286 : vector<8x128xf32> to vector<1x8x128xf32>
    tpu.vector_store %arg14[%c0_65, %c0_66, %c0_67], %291 {strides = array<i32>} : memref<2x8x128xf32, #tpu.memory_space<vmem>>, vector<1x8x128xf32>,
    %c0_68 = arith.constant 0 : index
    %c0_69 = arith.constant 0 : index
    %292 = vector.load %arg7[%c0_68, %c0_69] : memref<128x384xbf16, #tpu.memory_space<vmem>>, vector<128x384xbf16>
    %c0_70 = arith.constant 0 : index
    %c0_71 = arith.constant 0 : index
    %293 = vector.load %arg8[%c0_70, %c0_71] : memref<128x384xbf16, #tpu.memory_space<vmem>>, vector<128x384xbf16>
    %c0_72 = arith.constant 0 : index
    %c0_73 = arith.constant 0 : index
    %294 = vector.load %arg9[%c0_72, %c0_73] : memref<1x384xf32, #tpu.memory_space<vmem>>, vector<1x384xf32>
    %c0_74 = arith.constant 0 : index
    %c0_75 = arith.constant 0 : index
    %295 = vector.load %arg10[%c0_74, %c0_75] : memref<1x128xf32, #tpu.memory_space<vmem>>, vector<1x128xf32>
    %c0_76 = arith.constant 0 : index
    %c0_77 = arith.constant 0 : index
    %296 = vector.load %arg15[%c0_76, %c0_77] : memref<64x128xf32, #tpu.memory_space<vmem>>, vector<64x128xf32>
    %297 = arith.truncf %296 : vector<64x128xf32> to vector<64x128xbf16>
    %cst_78 = arith.constant dense<0.000000e+00> : vector<64x384xf32>
    %298 = tpu.matmul %297, %292, %cst_78 {dimension_numbers = #tpu.dot_dimension_numbers<[1], [0], [0], [1], [0, 0, 1, 1], [], []>} : vector<64x128xbf16>, vector<128x384xbf16>, vector<64x384xf32> -> vector<64x384xf32>
    %c0_79 = arith.constant 0 : index
    %c0_80 = arith.constant 0 : index
    %299 = vector.load %arg13[%c0_79, %c0_80] : memref<64x384xf32, #tpu.memory_space<vmem>>, vector<64x384xf32>
    tpu.vector_store %arg13[%c0_79, %c0_80], %298 {strides = array<i32>} : memref<64x384xf32, #tpu.memory_space<vmem>>, vector<64x384xf32>,
    %300 = vector.shape_cast %294 : vector<1x384xf32> to vector<1x384xf32>
    %301 = vector.broadcast %300 : vector<1x384xf32> to vector<8x384xf32>
    %302 = vector.shape_cast %295 : vector<1x128xf32> to vector<1x128xf32>
    %303 = vector.broadcast %302 : vector<1x128xf32> to vector<8x128xf32>
    %c1 = arith.constant 1 : index
    %c0_81 = arith.constant 0 : index
    %c0_82 = arith.constant 0 : index
    %304 = vector.load %arg14[%c1, %c0_81, %c0_82] : memref<2x8x128xf32, #tpu.memory_space<vmem>>, vector<1x8x128xf32>
    %305 = vector.shape_cast %304 : vector<1x8x128xf32> to vector<8x128xf32>
    %c0_i32_83 = arith.constant 0 : i32
    %c8_i32_84 = arith.constant 8 : i32
    %306 = arith.muli %c0_i32_83, %c8_i32_84 : i32
    %307 = tpu.assume_multiple %306, 8 : i32
    %308 = arith.index_cast %307 : i32 to index
    %c0_85 = arith.constant 0 : index
    %309 = vector.load %arg13[%308, %c0_85] : memref<64x384xf32, #tpu.memory_space<vmem>>, vector<8x384xf32>
    %310 = arith.truncf %305 : vector<8x128xf32> to vector<8x128xbf16>
    %cst_86 = arith.constant dense<0.000000e+00> : vector<8x384xf32>
    %311 = tpu.matmul %310, %293, %cst_86 {dimension_numbers = #tpu.dot_dimension_numbers<[1], [0], [0], [1], [0, 0, 1, 1], [], []>} : vector<8x128xbf16>, vector<128x384xbf16>, vector<8x384xf32> -> vector<8x384xf32>
    %312 = arith.addf %311, %301 : vector<8x384xf32>
    %313 = vector.extract_strided_slice %309 {offsets = [0, 0], sizes = [8, 128], strides = [1, 1]} : vector<8x384xf32> to vector<8x128xf32>
    %314 = vector.extract_strided_slice %312 {offsets = [0, 0], sizes = [8, 128], strides = [1, 1]} : vector<8x384xf32> to vector<8x128xf32>
    %315 = arith.addf %313, %314 : vector<8x128xf32>
    %316 = arith.negf %315 : vector<8x128xf32>
    %317 = math.exp %316 : vector<8x128xf32>
    %cst_87 = arith.constant 1.000000e+00 : f32
    %318 = vector.broadcast %cst_87 : f32 to vector<8x128xf32>
    %319 = arith.addf %318, %317 : vector<8x128xf32>
    %320 = arith.divf %318, %319 : vector<8x128xf32>
    %321 = vector.extract_strided_slice %309 {offsets = [0, 128], sizes = [8, 128], strides = [1, 1]} : vector<8x384xf32> to vector<8x128xf32>
    %322 = vector.extract_strided_slice %312 {offsets = [0, 128], sizes = [8, 128], strides = [1, 1]} : vector<8x384xf32> to vector<8x128xf32>
    %323 = arith.addf %321, %322 : vector<8x128xf32>
    %324 = arith.negf %323 : vector<8x128xf32>
    %325 = math.exp %324 : vector<8x128xf32>
    %cst_88 = arith.constant 1.000000e+00 : f32
    %326 = vector.broadcast %cst_88 : f32 to vector<8x128xf32>
    %327 = arith.addf %326, %325 : vector<8x128xf32>
    %328 = arith.divf %326, %327 : vector<8x128xf32>
    %329 = vector.extract_strided_slice %309 {offsets = [0, 256], sizes = [8, 128], strides = [1, 1]} : vector<8x384xf32> to vector<8x128xf32>
    %330 = arith.addf %329, %303 : vector<8x128xf32>
    %331 = vector.extract_strided_slice %312 {offsets = [0, 256], sizes = [8, 128], strides = [1, 1]} : vector<8x384xf32> to vector<8x128xf32>
    %332 = arith.mulf %320, %331 : vector<8x128xf32>
    %333 = arith.addf %330, %332 : vector<8x128xf32>
    %334 = math.tanh %333 : vector<8x128xf32>
    %335 = arith.subf %305, %334 : vector<8x128xf32>
    %336 = arith.mulf %328, %335 : vector<8x128xf32>
    %337 = arith.addf %334, %336 : vector<8x128xf32>
    %c0_89 = arith.constant 0 : index
    %338 = arith.index_cast %307 : i32 to index
    %c0_90 = arith.constant 0 : index
    %339 = vector.load %arg11[%c0_89, %338, %c0_90] : memref<1x64x128xf32, #tpu.memory_space<vmem>>, vector<1x8x128xf32>
    %340 = vector.shape_cast %339 : vector<1x8x128xf32> to vector<8x128xf32>
    %341 = vector.shape_cast %337 : vector<8x128xf32> to vector<1x8x128xf32>
    tpu.vector_store %arg11[%c0_89, %338, %c0_90], %341 {strides = array<i32>} : memref<1x64x128xf32, #tpu.memory_space<vmem>>, vector<1x8x128xf32>,
    %c1_i32_91 = arith.constant 1 : i32
    %c8_i32_92 = arith.constant 8 : i32
    %342 = arith.muli %c1_i32_91, %c8_i32_92 : i32
    %343 = tpu.assume_multiple %342, 8 : i32
    %344 = arith.index_cast %343 : i32 to index
    %c0_93 = arith.constant 0 : index
    %345 = vector.load %arg13[%344, %c0_93] : memref<64x384xf32, #tpu.memory_space<vmem>>, vector<8x384xf32>
    %346 = arith.truncf %337 : vector<8x128xf32> to vector<8x128xbf16>
    %cst_94 = arith.constant dense<0.000000e+00> : vector<8x384xf32>
    %347 = tpu.matmul %346, %293, %cst_94 {dimension_numbers = #tpu.dot_dimension_numbers<[1], [0], [0], [1], [0, 0, 1, 1], [], []>} : vector<8x128xbf16>, vector<128x384xbf16>, vector<8x384xf32> -> vector<8x384xf32>
    %348 = arith.addf %347, %301 : vector<8x384xf32>
    %349 = vector.extract_strided_slice %345 {offsets = [0, 0], sizes = [8, 128], strides = [1, 1]} : vector<8x384xf32> to vector<8x128xf32>
    %350 = vector.extract_strided_slice %348 {offsets = [0, 0], sizes = [8, 128], strides = [1, 1]} : vector<8x384xf32> to vector<8x128xf32>
    %351 = arith.addf %349, %350 : vector<8x128xf32>
    %352 = arith.negf %351 : vector<8x128xf32>
    %353 = math.exp %352 : vector<8x128xf32>
    %cst_95 = arith.constant 1.000000e+00 : f32
    %354 = vector.broadcast %cst_95 : f32 to vector<8x128xf32>
    %355 = arith.addf %354, %353 : vector<8x128xf32>
    %356 = arith.divf %354, %355 : vector<8x128xf32>
    %357 = vector.extract_strided_slice %345 {offsets = [0, 128], sizes = [8, 128], strides = [1, 1]} : vector<8x384xf32> to vector<8x128xf32>
    %358 = vector.extract_strided_slice %348 {offsets = [0, 128], sizes = [8, 128], strides = [1, 1]} : vector<8x384xf32> to vector<8x128xf32>
    %359 = arith.addf %357, %358 : vector<8x128xf32>
    %360 = arith.negf %359 : vector<8x128xf32>
    %361 = math.exp %360 : vector<8x128xf32>
    %cst_96 = arith.constant 1.000000e+00 : f32
    %362 = vector.broadcast %cst_96 : f32 to vector<8x128xf32>
    %363 = arith.addf %362, %361 : vector<8x128xf32>
    %364 = arith.divf %362, %363 : vector<8x128xf32>
    %365 = vector.extract_strided_slice %345 {offsets = [0, 256], sizes = [8, 128], strides = [1, 1]} : vector<8x384xf32> to vector<8x128xf32>
    %366 = arith.addf %365, %303 : vector<8x128xf32>
    %367 = vector.extract_strided_slice %348 {offsets = [0, 256], sizes = [8, 128], strides = [1, 1]} : vector<8x384xf32> to vector<8x128xf32>
    %368 = arith.mulf %356, %367 : vector<8x128xf32>
    %369 = arith.addf %366, %368 : vector<8x128xf32>
    %370 = math.tanh %369 : vector<8x128xf32>
    %371 = arith.subf %337, %370 : vector<8x128xf32>
    %372 = arith.mulf %364, %371 : vector<8x128xf32>
    %373 = arith.addf %370, %372 : vector<8x128xf32>
    %c0_97 = arith.constant 0 : index
    %374 = arith.index_cast %343 : i32 to index
    %c0_98 = arith.constant 0 : index
    %375 = vector.load %arg11[%c0_97, %374, %c0_98] : memref<1x64x128xf32, #tpu.memory_space<vmem>>, vector<1x8x128xf32>
    %376 = vector.shape_cast %375 : vector<1x8x128xf32> to vector<8x128xf32>
    %377 = vector.shape_cast %373 : vector<8x128xf32> to vector<1x8x128xf32>
    tpu.vector_store %arg11[%c0_97, %374, %c0_98], %377 {strides = array<i32>} : memref<1x64x128xf32, #tpu.memory_space<vmem>>, vector<1x8x128xf32>,
    %c2_i32_99 = arith.constant 2 : i32
    %c8_i32_100 = arith.constant 8 : i32
    %378 = arith.muli %c2_i32_99, %c8_i32_100 : i32
    %379 = tpu.assume_multiple %378, 8 : i32
    %380 = arith.index_cast %379 : i32 to index
    %c0_101 = arith.constant 0 : index
    %381 = vector.load %arg13[%380, %c0_101] : memref<64x384xf32, #tpu.memory_space<vmem>>, vector<8x384xf32>
    %382 = arith.truncf %373 : vector<8x128xf32> to vector<8x128xbf16>
    %cst_102 = arith.constant dense<0.000000e+00> : vector<8x384xf32>
    %383 = tpu.matmul %382, %293, %cst_102 {dimension_numbers = #tpu.dot_dimension_numbers<[1], [0], [0], [1], [0, 0, 1, 1], [], []>} : vector<8x128xbf16>, vector<128x384xbf16>, vector<8x384xf32> -> vector<8x384xf32>
    %384 = arith.addf %383, %301 : vector<8x384xf32>
    %385 = vector.extract_strided_slice %381 {offsets = [0, 0], sizes = [8, 128], strides = [1, 1]} : vector<8x384xf32> to vector<8x128xf32>
    %386 = vector.extract_strided_slice %384 {offsets = [0, 0], sizes = [8, 128], strides = [1, 1]} : vector<8x384xf32> to vector<8x128xf32>
    %387 = arith.addf %385, %386 : vector<8x128xf32>
    %388 = arith.negf %387 : vector<8x128xf32>
    %389 = math.exp %388 : vector<8x128xf32>
    %cst_103 = arith.constant 1.000000e+00 : f32
    %390 = vector.broadcast %cst_103 : f32 to vector<8x128xf32>
    %391 = arith.addf %390, %389 : vector<8x128xf32>
    %392 = arith.divf %390, %391 : vector<8x128xf32>
    %393 = vector.extract_strided_slice %381 {offsets = [0, 128], sizes = [8, 128], strides = [1, 1]} : vector<8x384xf32> to vector<8x128xf32>
    %394 = vector.extract_strided_slice %384 {offsets = [0, 128], sizes = [8, 128], strides = [1, 1]} : vector<8x384xf32> to vector<8x128xf32>
    %395 = arith.addf %393, %394 : vector<8x128xf32>
    %396 = arith.negf %395 : vector<8x128xf32>
    %397 = math.exp %396 : vector<8x128xf32>
    %cst_104 = arith.constant 1.000000e+00 : f32
    %398 = vector.broadcast %cst_104 : f32 to vector<8x128xf32>
    %399 = arith.addf %398, %397 : vector<8x128xf32>
    %400 = arith.divf %398, %399 : vector<8x128xf32>
    %401 = vector.extract_strided_slice %381 {offsets = [0, 256], sizes = [8, 128], strides = [1, 1]} : vector<8x384xf32> to vector<8x128xf32>
    %402 = arith.addf %401, %303 : vector<8x128xf32>
    %403 = vector.extract_strided_slice %384 {offsets = [0, 256], sizes = [8, 128], strides = [1, 1]} : vector<8x384xf32> to vector<8x128xf32>
    %404 = arith.mulf %392, %403 : vector<8x128xf32>
    %405 = arith.addf %402, %404 : vector<8x128xf32>
    %406 = math.tanh %405 : vector<8x128xf32>
    %407 = arith.subf %373, %406 : vector<8x128xf32>
    %408 = arith.mulf %400, %407 : vector<8x128xf32>
    %409 = arith.addf %406, %408 : vector<8x128xf32>
    %c0_105 = arith.constant 0 : index
    %410 = arith.index_cast %379 : i32 to index
    %c0_106 = arith.constant 0 : index
    %411 = vector.load %arg11[%c0_105, %410, %c0_106] : memref<1x64x128xf32, #tpu.memory_space<vmem>>, vector<1x8x128xf32>
    %412 = vector.shape_cast %411 : vector<1x8x128xf32> to vector<8x128xf32>
    %413 = vector.shape_cast %409 : vector<8x128xf32> to vector<1x8x128xf32>
    tpu.vector_store %arg11[%c0_105, %410, %c0_106], %413 {strides = array<i32>} : memref<1x64x128xf32, #tpu.memory_space<vmem>>, vector<1x8x128xf32>,
    %c3_i32_107 = arith.constant 3 : i32
    %c8_i32_108 = arith.constant 8 : i32
    %414 = arith.muli %c3_i32_107, %c8_i32_108 : i32
    %415 = tpu.assume_multiple %414, 8 : i32
    %416 = arith.index_cast %415 : i32 to index
    %c0_109 = arith.constant 0 : index
    %417 = vector.load %arg13[%416, %c0_109] : memref<64x384xf32, #tpu.memory_space<vmem>>, vector<8x384xf32>
    %418 = arith.truncf %409 : vector<8x128xf32> to vector<8x128xbf16>
    %cst_110 = arith.constant dense<0.000000e+00> : vector<8x384xf32>
    %419 = tpu.matmul %418, %293, %cst_110 {dimension_numbers = #tpu.dot_dimension_numbers<[1], [0], [0], [1], [0, 0, 1, 1], [], []>} : vector<8x128xbf16>, vector<128x384xbf16>, vector<8x384xf32> -> vector<8x384xf32>
    %420 = arith.addf %419, %301 : vector<8x384xf32>
    %421 = vector.extract_strided_slice %417 {offsets = [0, 0], sizes = [8, 128], strides = [1, 1]} : vector<8x384xf32> to vector<8x128xf32>
    %422 = vector.extract_strided_slice %420 {offsets = [0, 0], sizes = [8, 128], strides = [1, 1]} : vector<8x384xf32> to vector<8x128xf32>
    %423 = arith.addf %421, %422 : vector<8x128xf32>
    %424 = arith.negf %423 : vector<8x128xf32>
    %425 = math.exp %424 : vector<8x128xf32>
    %cst_111 = arith.constant 1.000000e+00 : f32
    %426 = vector.broadcast %cst_111 : f32 to vector<8x128xf32>
    %427 = arith.addf %426, %425 : vector<8x128xf32>
    %428 = arith.divf %426, %427 : vector<8x128xf32>
    %429 = vector.extract_strided_slice %417 {offsets = [0, 128], sizes = [8, 128], strides = [1, 1]} : vector<8x384xf32> to vector<8x128xf32>
    %430 = vector.extract_strided_slice %420 {offsets = [0, 128], sizes = [8, 128], strides = [1, 1]} : vector<8x384xf32> to vector<8x128xf32>
    %431 = arith.addf %429, %430 : vector<8x128xf32>
    %432 = arith.negf %431 : vector<8x128xf32>
    %433 = math.exp %432 : vector<8x128xf32>
    %cst_112 = arith.constant 1.000000e+00 : f32
    %434 = vector.broadcast %cst_112 : f32 to vector<8x128xf32>
    %435 = arith.addf %434, %433 : vector<8x128xf32>
    %436 = arith.divf %434, %435 : vector<8x128xf32>
    %437 = vector.extract_strided_slice %417 {offsets = [0, 256], sizes = [8, 128], strides = [1, 1]} : vector<8x384xf32> to vector<8x128xf32>
    %438 = arith.addf %437, %303 : vector<8x128xf32>
    %439 = vector.extract_strided_slice %420 {offsets = [0, 256], sizes = [8, 128], strides = [1, 1]} : vector<8x384xf32> to vector<8x128xf32>
    %440 = arith.mulf %428, %439 : vector<8x128xf32>
    %441 = arith.addf %438, %440 : vector<8x128xf32>
    %442 = math.tanh %441 : vector<8x128xf32>
    %443 = arith.subf %409, %442 : vector<8x128xf32>
    %444 = arith.mulf %436, %443 : vector<8x128xf32>
    %445 = arith.addf %442, %444 : vector<8x128xf32>
    %c0_113 = arith.constant 0 : index
    %446 = arith.index_cast %415 : i32 to index
    %c0_114 = arith.constant 0 : index
    %447 = vector.load %arg11[%c0_113, %446, %c0_114] : memref<1x64x128xf32, #tpu.memory_space<vmem>>, vector<1x8x128xf32>
    %448 = vector.shape_cast %447 : vector<1x8x128xf32> to vector<8x128xf32>
    %449 = vector.shape_cast %445 : vector<8x128xf32> to vector<1x8x128xf32>
    tpu.vector_store %arg11[%c0_113, %446, %c0_114], %449 {strides = array<i32>} : memref<1x64x128xf32, #tpu.memory_space<vmem>>, vector<1x8x128xf32>,
    %c4_i32_115 = arith.constant 4 : i32
    %c8_i32_116 = arith.constant 8 : i32
    %450 = arith.muli %c4_i32_115, %c8_i32_116 : i32
    %451 = tpu.assume_multiple %450, 8 : i32
    %452 = arith.index_cast %451 : i32 to index
    %c0_117 = arith.constant 0 : index
    %453 = vector.load %arg13[%452, %c0_117] : memref<64x384xf32, #tpu.memory_space<vmem>>, vector<8x384xf32>
    %454 = arith.truncf %445 : vector<8x128xf32> to vector<8x128xbf16>
    %cst_118 = arith.constant dense<0.000000e+00> : vector<8x384xf32>
    %455 = tpu.matmul %454, %293, %cst_118 {dimension_numbers = #tpu.dot_dimension_numbers<[1], [0], [0], [1], [0, 0, 1, 1], [], []>} : vector<8x128xbf16>, vector<128x384xbf16>, vector<8x384xf32> -> vector<8x384xf32>
    %456 = arith.addf %455, %301 : vector<8x384xf32>
    %457 = vector.extract_strided_slice %453 {offsets = [0, 0], sizes = [8, 128], strides = [1, 1]} : vector<8x384xf32> to vector<8x128xf32>
    %458 = vector.extract_strided_slice %456 {offsets = [0, 0], sizes = [8, 128], strides = [1, 1]} : vector<8x384xf32> to vector<8x128xf32>
    %459 = arith.addf %457, %458 : vector<8x128xf32>
    %460 = arith.negf %459 : vector<8x128xf32>
    %461 = math.exp %460 : vector<8x128xf32>
    %cst_119 = arith.constant 1.000000e+00 : f32
    %462 = vector.broadcast %cst_119 : f32 to vector<8x128xf32>
    %463 = arith.addf %462, %461 : vector<8x128xf32>
    %464 = arith.divf %462, %463 : vector<8x128xf32>
    %465 = vector.extract_strided_slice %453 {offsets = [0, 128], sizes = [8, 128], strides = [1, 1]} : vector<8x384xf32> to vector<8x128xf32>
    %466 = vector.extract_strided_slice %456 {offsets = [0, 128], sizes = [8, 128], strides = [1, 1]} : vector<8x384xf32> to vector<8x128xf32>
    %467 = arith.addf %465, %466 : vector<8x128xf32>
    %468 = arith.negf %467 : vector<8x128xf32>
    %469 = math.exp %468 : vector<8x128xf32>
    %cst_120 = arith.constant 1.000000e+00 : f32
    %470 = vector.broadcast %cst_120 : f32 to vector<8x128xf32>
    %471 = arith.addf %470, %469 : vector<8x128xf32>
    %472 = arith.divf %470, %471 : vector<8x128xf32>
    %473 = vector.extract_strided_slice %453 {offsets = [0, 256], sizes = [8, 128], strides = [1, 1]} : vector<8x384xf32> to vector<8x128xf32>
    %474 = arith.addf %473, %303 : vector<8x128xf32>
    %475 = vector.extract_strided_slice %456 {offsets = [0, 256], sizes = [8, 128], strides = [1, 1]} : vector<8x384xf32> to vector<8x128xf32>
    %476 = arith.mulf %464, %475 : vector<8x128xf32>
    %477 = arith.addf %474, %476 : vector<8x128xf32>
    %478 = math.tanh %477 : vector<8x128xf32>
    %479 = arith.subf %445, %478 : vector<8x128xf32>
    %480 = arith.mulf %472, %479 : vector<8x128xf32>
    %481 = arith.addf %478, %480 : vector<8x128xf32>
    %c0_121 = arith.constant 0 : index
    %482 = arith.index_cast %451 : i32 to index
    %c0_122 = arith.constant 0 : index
    %483 = vector.load %arg11[%c0_121, %482, %c0_122] : memref<1x64x128xf32, #tpu.memory_space<vmem>>, vector<1x8x128xf32>
    %484 = vector.shape_cast %483 : vector<1x8x128xf32> to vector<8x128xf32>
    %485 = vector.shape_cast %481 : vector<8x128xf32> to vector<1x8x128xf32>
    tpu.vector_store %arg11[%c0_121, %482, %c0_122], %485 {strides = array<i32>} : memref<1x64x128xf32, #tpu.memory_space<vmem>>, vector<1x8x128xf32>,
    %c5_i32_123 = arith.constant 5 : i32
    %c8_i32_124 = arith.constant 8 : i32
    %486 = arith.muli %c5_i32_123, %c8_i32_124 : i32
    %487 = tpu.assume_multiple %486, 8 : i32
    %488 = arith.index_cast %487 : i32 to index
    %c0_125 = arith.constant 0 : index
    %489 = vector.load %arg13[%488, %c0_125] : memref<64x384xf32, #tpu.memory_space<vmem>>, vector<8x384xf32>
    %490 = arith.truncf %481 : vector<8x128xf32> to vector<8x128xbf16>
    %cst_126 = arith.constant dense<0.000000e+00> : vector<8x384xf32>
    %491 = tpu.matmul %490, %293, %cst_126 {dimension_numbers = #tpu.dot_dimension_numbers<[1], [0], [0], [1], [0, 0, 1, 1], [], []>} : vector<8x128xbf16>, vector<128x384xbf16>, vector<8x384xf32> -> vector<8x384xf32>
    %492 = arith.addf %491, %301 : vector<8x384xf32>
    %493 = vector.extract_strided_slice %489 {offsets = [0, 0], sizes = [8, 128], strides = [1, 1]} : vector<8x384xf32> to vector<8x128xf32>
    %494 = vector.extract_strided_slice %492 {offsets = [0, 0], sizes = [8, 128], strides = [1, 1]} : vector<8x384xf32> to vector<8x128xf32>
    %495 = arith.addf %493, %494 : vector<8x128xf32>
    %496 = arith.negf %495 : vector<8x128xf32>
    %497 = math.exp %496 : vector<8x128xf32>
    %cst_127 = arith.constant 1.000000e+00 : f32
    %498 = vector.broadcast %cst_127 : f32 to vector<8x128xf32>
    %499 = arith.addf %498, %497 : vector<8x128xf32>
    %500 = arith.divf %498, %499 : vector<8x128xf32>
    %501 = vector.extract_strided_slice %489 {offsets = [0, 128], sizes = [8, 128], strides = [1, 1]} : vector<8x384xf32> to vector<8x128xf32>
    %502 = vector.extract_strided_slice %492 {offsets = [0, 128], sizes = [8, 128], strides = [1, 1]} : vector<8x384xf32> to vector<8x128xf32>
    %503 = arith.addf %501, %502 : vector<8x128xf32>
    %504 = arith.negf %503 : vector<8x128xf32>
    %505 = math.exp %504 : vector<8x128xf32>
    %cst_128 = arith.constant 1.000000e+00 : f32
    %506 = vector.broadcast %cst_128 : f32 to vector<8x128xf32>
    %507 = arith.addf %506, %505 : vector<8x128xf32>
    %508 = arith.divf %506, %507 : vector<8x128xf32>
    %509 = vector.extract_strided_slice %489 {offsets = [0, 256], sizes = [8, 128], strides = [1, 1]} : vector<8x384xf32> to vector<8x128xf32>
    %510 = arith.addf %509, %303 : vector<8x128xf32>
    %511 = vector.extract_strided_slice %492 {offsets = [0, 256], sizes = [8, 128], strides = [1, 1]} : vector<8x384xf32> to vector<8x128xf32>
    %512 = arith.mulf %500, %511 : vector<8x128xf32>
    %513 = arith.addf %510, %512 : vector<8x128xf32>
    %514 = math.tanh %513 : vector<8x128xf32>
    %515 = arith.subf %481, %514 : vector<8x128xf32>
    %516 = arith.mulf %508, %515 : vector<8x128xf32>
    %517 = arith.addf %514, %516 : vector<8x128xf32>
    %c0_129 = arith.constant 0 : index
    %518 = arith.index_cast %487 : i32 to index
    %c0_130 = arith.constant 0 : index
    %519 = vector.load %arg11[%c0_129, %518, %c0_130] : memref<1x64x128xf32, #tpu.memory_space<vmem>>, vector<1x8x128xf32>
    %520 = vector.shape_cast %519 : vector<1x8x128xf32> to vector<8x128xf32>
    %521 = vector.shape_cast %517 : vector<8x128xf32> to vector<1x8x128xf32>
    tpu.vector_store %arg11[%c0_129, %518, %c0_130], %521 {strides = array<i32>} : memref<1x64x128xf32, #tpu.memory_space<vmem>>, vector<1x8x128xf32>,
    %c6_i32_131 = arith.constant 6 : i32
    %c8_i32_132 = arith.constant 8 : i32
    %522 = arith.muli %c6_i32_131, %c8_i32_132 : i32
    %523 = tpu.assume_multiple %522, 8 : i32
    %524 = arith.index_cast %523 : i32 to index
    %c0_133 = arith.constant 0 : index
    %525 = vector.load %arg13[%524, %c0_133] : memref<64x384xf32, #tpu.memory_space<vmem>>, vector<8x384xf32>
    %526 = arith.truncf %517 : vector<8x128xf32> to vector<8x128xbf16>
    %cst_134 = arith.constant dense<0.000000e+00> : vector<8x384xf32>
    %527 = tpu.matmul %526, %293, %cst_134 {dimension_numbers = #tpu.dot_dimension_numbers<[1], [0], [0], [1], [0, 0, 1, 1], [], []>} : vector<8x128xbf16>, vector<128x384xbf16>, vector<8x384xf32> -> vector<8x384xf32>
    %528 = arith.addf %527, %301 : vector<8x384xf32>
    %529 = vector.extract_strided_slice %525 {offsets = [0, 0], sizes = [8, 128], strides = [1, 1]} : vector<8x384xf32> to vector<8x128xf32>
    %530 = vector.extract_strided_slice %528 {offsets = [0, 0], sizes = [8, 128], strides = [1, 1]} : vector<8x384xf32> to vector<8x128xf32>
    %531 = arith.addf %529, %530 : vector<8x128xf32>
    %532 = arith.negf %531 : vector<8x128xf32>
    %533 = math.exp %532 : vector<8x128xf32>
    %cst_135 = arith.constant 1.000000e+00 : f32
    %534 = vector.broadcast %cst_135 : f32 to vector<8x128xf32>
    %535 = arith.addf %534, %533 : vector<8x128xf32>
    %536 = arith.divf %534, %535 : vector<8x128xf32>
    %537 = vector.extract_strided_slice %525 {offsets = [0, 128], sizes = [8, 128], strides = [1, 1]} : vector<8x384xf32> to vector<8x128xf32>
    %538 = vector.extract_strided_slice %528 {offsets = [0, 128], sizes = [8, 128], strides = [1, 1]} : vector<8x384xf32> to vector<8x128xf32>
    %539 = arith.addf %537, %538 : vector<8x128xf32>
    %540 = arith.negf %539 : vector<8x128xf32>
    %541 = math.exp %540 : vector<8x128xf32>
    %cst_136 = arith.constant 1.000000e+00 : f32
    %542 = vector.broadcast %cst_136 : f32 to vector<8x128xf32>
    %543 = arith.addf %542, %541 : vector<8x128xf32>
    %544 = arith.divf %542, %543 : vector<8x128xf32>
    %545 = vector.extract_strided_slice %525 {offsets = [0, 256], sizes = [8, 128], strides = [1, 1]} : vector<8x384xf32> to vector<8x128xf32>
    %546 = arith.addf %545, %303 : vector<8x128xf32>
    %547 = vector.extract_strided_slice %528 {offsets = [0, 256], sizes = [8, 128], strides = [1, 1]} : vector<8x384xf32> to vector<8x128xf32>
    %548 = arith.mulf %536, %547 : vector<8x128xf32>
    %549 = arith.addf %546, %548 : vector<8x128xf32>
    %550 = math.tanh %549 : vector<8x128xf32>
    %551 = arith.subf %517, %550 : vector<8x128xf32>
    %552 = arith.mulf %544, %551 : vector<8x128xf32>
    %553 = arith.addf %550, %552 : vector<8x128xf32>
    %c0_137 = arith.constant 0 : index
    %554 = arith.index_cast %523 : i32 to index
    %c0_138 = arith.constant 0 : index
    %555 = vector.load %arg11[%c0_137, %554, %c0_138] : memref<1x64x128xf32, #tpu.memory_space<vmem>>, vector<1x8x128xf32>
    %556 = vector.shape_cast %555 : vector<1x8x128xf32> to vector<8x128xf32>
    %557 = vector.shape_cast %553 : vector<8x128xf32> to vector<1x8x128xf32>
    tpu.vector_store %arg11[%c0_137, %554, %c0_138], %557 {strides = array<i32>} : memref<1x64x128xf32, #tpu.memory_space<vmem>>, vector<1x8x128xf32>,
    %c7_i32_139 = arith.constant 7 : i32
    %c8_i32_140 = arith.constant 8 : i32
    %558 = arith.muli %c7_i32_139, %c8_i32_140 : i32
    %559 = tpu.assume_multiple %558, 8 : i32
    %560 = arith.index_cast %559 : i32 to index
    %c0_141 = arith.constant 0 : index
    %561 = vector.load %arg13[%560, %c0_141] : memref<64x384xf32, #tpu.memory_space<vmem>>, vector<8x384xf32>
    %562 = arith.truncf %553 : vector<8x128xf32> to vector<8x128xbf16>
    %cst_142 = arith.constant dense<0.000000e+00> : vector<8x384xf32>
    %563 = tpu.matmul %562, %293, %cst_142 {dimension_numbers = #tpu.dot_dimension_numbers<[1], [0], [0], [1], [0, 0, 1, 1], [], []>} : vector<8x128xbf16>, vector<128x384xbf16>, vector<8x384xf32> -> vector<8x384xf32>
    %564 = arith.addf %563, %301 : vector<8x384xf32>
    %565 = vector.extract_strided_slice %561 {offsets = [0, 0], sizes = [8, 128], strides = [1, 1]} : vector<8x384xf32> to vector<8x128xf32>
    %566 = vector.extract_strided_slice %564 {offsets = [0, 0], sizes = [8, 128], strides = [1, 1]} : vector<8x384xf32> to vector<8x128xf32>
    %567 = arith.addf %565, %566 : vector<8x128xf32>
    %568 = arith.negf %567 : vector<8x128xf32>
    %569 = math.exp %568 : vector<8x128xf32>
    %cst_143 = arith.constant 1.000000e+00 : f32
    %570 = vector.broadcast %cst_143 : f32 to vector<8x128xf32>
    %571 = arith.addf %570, %569 : vector<8x128xf32>
    %572 = arith.divf %570, %571 : vector<8x128xf32>
    %573 = vector.extract_strided_slice %561 {offsets = [0, 128], sizes = [8, 128], strides = [1, 1]} : vector<8x384xf32> to vector<8x128xf32>
    %574 = vector.extract_strided_slice %564 {offsets = [0, 128], sizes = [8, 128], strides = [1, 1]} : vector<8x384xf32> to vector<8x128xf32>
    %575 = arith.addf %573, %574 : vector<8x128xf32>
    %576 = arith.negf %575 : vector<8x128xf32>
    %577 = math.exp %576 : vector<8x128xf32>
    %cst_144 = arith.constant 1.000000e+00 : f32
    %578 = vector.broadcast %cst_144 : f32 to vector<8x128xf32>
    %579 = arith.addf %578, %577 : vector<8x128xf32>
    %580 = arith.divf %578, %579 : vector<8x128xf32>
    %581 = vector.extract_strided_slice %561 {offsets = [0, 256], sizes = [8, 128], strides = [1, 1]} : vector<8x384xf32> to vector<8x128xf32>
    %582 = arith.addf %581, %303 : vector<8x128xf32>
    %583 = vector.extract_strided_slice %564 {offsets = [0, 256], sizes = [8, 128], strides = [1, 1]} : vector<8x384xf32> to vector<8x128xf32>
    %584 = arith.mulf %572, %583 : vector<8x128xf32>
    %585 = arith.addf %582, %584 : vector<8x128xf32>
    %586 = math.tanh %585 : vector<8x128xf32>
    %587 = arith.subf %553, %586 : vector<8x128xf32>
    %588 = arith.mulf %580, %587 : vector<8x128xf32>
    %589 = arith.addf %586, %588 : vector<8x128xf32>
    %c0_145 = arith.constant 0 : index
    %590 = arith.index_cast %559 : i32 to index
    %c0_146 = arith.constant 0 : index
    %591 = vector.load %arg11[%c0_145, %590, %c0_146] : memref<1x64x128xf32, #tpu.memory_space<vmem>>, vector<1x8x128xf32>
    %592 = vector.shape_cast %591 : vector<1x8x128xf32> to vector<8x128xf32>
    %593 = vector.shape_cast %589 : vector<8x128xf32> to vector<1x8x128xf32>
    tpu.vector_store %arg11[%c0_145, %590, %c0_146], %593 {strides = array<i32>} : memref<1x64x128xf32, #tpu.memory_space<vmem>>, vector<1x8x128xf32>,
    %c8_i32_147 = arith.constant 8 : i32
    %c1_148 = arith.constant 1 : index
    %c0_149 = arith.constant 0 : index
    %c0_150 = arith.constant 0 : index
    %594 = vector.load %arg14[%c1_148, %c0_149, %c0_150] : memref<2x8x128xf32, #tpu.memory_space<vmem>>, vector<1x8x128xf32>
    %595 = vector.shape_cast %594 : vector<1x8x128xf32> to vector<8x128xf32>
    %596 = vector.shape_cast %589 : vector<8x128xf32> to vector<1x8x128xf32>
    tpu.vector_store %arg14[%c1_148, %c0_149, %c0_150], %596 {strides = array<i32>} : memref<2x8x128xf32, #tpu.memory_space<vmem>>, vector<1x8x128xf32>,
    %c0_i32_151 = arith.constant 0 : i32
    %597 = arith.cmpi eq, %arg1, %c0_i32_151 : i32
    %598 = arith.extui %597 : i1 to i32
    %c0_i32_152 = arith.constant 0 : i32
    %599 = arith.cmpi ne, %598, %c0_i32_152 : i32
    scf.if %599 {
      %c0_153 = arith.constant 0 : index
      %c0_154 = arith.constant 0 : index
      %c0_155 = arith.constant 0 : index
      %600 = vector.load %arg14[%c0_153, %c0_154, %c0_155] : memref<2x8x128xf32, #tpu.memory_space<vmem>>, vector<2x8x128xf32>
      %c0_156 = arith.constant 0 : index
      %c0_157 = arith.constant 0 : index
      %c0_158 = arith.constant 0 : index
      %c0_159 = arith.constant 0 : index
      %601 = vector.load %arg12[%c0_156, %c0_157, %c0_158, %c0_159] : memref<1x2x8x128xf32, #tpu.memory_space<vmem>>, vector<1x2x8x128xf32>
      %602 = vector.shape_cast %601 : vector<1x2x8x128xf32> to vector<2x8x128xf32>
      %603 = vector.shape_cast %600 : vector<2x8x128xf32> to vector<1x2x8x128xf32>
      tpu.vector_store %arg12[%c0_156, %c0_157, %c0_158, %c0_159], %603 {strides = array<i32>} : memref<1x2x8x128xf32, #tpu.memory_space<vmem>>, vector<1x2x8x128xf32>,
    } else {
    }
    return
  }
  func.func @transform_0(%arg0: i32, %arg1: i32) -> (i32, i32, i32) {
    %c0_i32 = arith.constant 0 : i32
    %c0_i32_0 = arith.constant 0 : i32
    return %arg0, %arg1, %c0_i32 : i32, i32, i32
  }
  func.func @transform_1(%arg0: i32, %arg1: i32) -> (i32, i32) {
    %c0_i32 = arith.constant 0 : i32
    %c0_i32_0 = arith.constant 0 : i32
    %c0_i32_1 = arith.constant 0 : i32
    return %c0_i32, %c0_i32_0 : i32, i32
  }
  func.func @transform_2(%arg0: i32, %arg1: i32) -> (i32, i32) {
    %c0_i32 = arith.constant 0 : i32
    %c0_i32_0 = arith.constant 0 : i32
    %c0_i32_1 = arith.constant 0 : i32
    return %c0_i32, %c0_i32_0 : i32, i32
  }
  func.func @transform_3(%arg0: i32, %arg1: i32) -> (i32, i32) {
    %c0_i32 = arith.constant 0 : i32
    %c0_i32_0 = arith.constant 0 : i32
    %c0_i32_1 = arith.constant 0 : i32
    return %c0_i32, %c0_i32_0 : i32, i32
  }
  func.func @transform_4(%arg0: i32, %arg1: i32) -> (i32, i32) {
    %c0_i32 = arith.constant 0 : i32
    %c0_i32_0 = arith.constant 0 : i32
    %c0_i32_1 = arith.constant 0 : i32
    return %c0_i32, %c0_i32_0 : i32, i32
  }
  func.func @transform_5(%arg0: i32, %arg1: i32) -> (i32, i32) {
    %c0_i32 = arith.constant 0 : i32
    %c0_i32_0 = arith.constant 0 : i32
    %c0_i32_1 = arith.constant 0 : i32
    return %c0_i32, %c0_i32_0 : i32, i32
  }
  func.func @transform_6(%arg0: i32, %arg1: i32) -> (i32, i32) {
    %c0_i32 = arith.constant 0 : i32
    %c0_i32_0 = arith.constant 0 : i32
    %c0_i32_1 = arith.constant 0 : i32
    return %c0_i32, %c0_i32_0 : i32, i32
  }
  func.func @transform_7(%arg0: i32, %arg1: i32) -> (i32, i32) {
    %c0_i32 = arith.constant 0 : i32
    %c0_i32_0 = arith.constant 0 : i32
    %c0_i32_1 = arith.constant 0 : i32
    return %c0_i32, %c0_i32_0 : i32, i32
  }
  func.func @transform_8(%arg0: i32, %arg1: i32) -> (i32, i32) {
    %c0_i32 = arith.constant 0 : i32
    %c0_i32_0 = arith.constant 0 : i32
    %c0_i32_1 = arith.constant 0 : i32
    return %c0_i32, %c0_i32_0 : i32, i32
  }
  func.func @transform_9(%arg0: i32, %arg1: i32) -> (i32, i32, i32) {
    %c0_i32 = arith.constant 0 : i32
    %c0_i32_0 = arith.constant 0 : i32
    return %arg0, %arg1, %c0_i32 : i32, i32, i32
  }
  func.func @transform_10(%arg0: i32, %arg1: i32) -> (i32, i32, i32, i32) {
    %c0_i32 = arith.constant 0 : i32
    %c0_i32_0 = arith.constant 0 : i32
    %c0_i32_1 = arith.constant 0 : i32
    %c0_i32_2 = arith.constant 0 : i32
    return %arg0, %c0_i32, %c0_i32_0, %c0_i32_1 : i32, i32, i32, i32
  }
}

</mosaic_0001>

<bundles_post_ra>
// kernel: tpu_custom_call.1
= control target key start
LH: loop header
LB: loop body
LE: loop exit
PB: predicated region body
PF: predicated region fallthrough
CT: control target
= control target key end

     0   :  { %16 = vsyncpa [#allocation6], 0  ;;  %s4458_s0 = inlined_call_operand.hbm [shape: bf16[1,64,128], index: 0, kind: input, shape index: {}]   ;;  %s4459_s1 = inlined_call_operand.hbm [shape: bf16[128,384], index: 1, kind: input, shape index: {}]   ;;  %s4460_s2 = inlined_call_operand.hbm [shape: bf16[128,384], index: 2, kind: input, shape index: {}]   ;;  %s4461_s3 = inlined_call_operand.hbm [shape: f32[1,384], index: 3, kind: input, shape index: {}]   ;;  %s4462_s4 = inlined_call_operand.vmem [shape: f32[1,128], index: 4, kind: input, shape index: {}]   ;;  %s4463_s5 = inlined_call_operand.hbm [shape: bf16[128,384], index: 5, kind: input, shape index: {}]   ;;  %s4464_s6 = inlined_call_operand.hbm [shape: bf16[128,384], index: 6, kind: input, shape index: {}]   ;;  %s4465_s7 = inlined_call_operand.vmem [shape: f32[1,384], index: 7, kind: input, shape index: {}]   ;;  %s4466_s8 = inlined_call_operand.vmem [shape: f32[1,128], index: 8, kind: input, shape index: {}]   ;;  %s4467_s9 = inlined_call_operand.hbm [shape: f32[1,64,128], index: 9, kind: output, shape index: {0}]   ;;  %s4468_s10 = inlined_call_operand.hbm [shape: f32[1,2,8,128], index: 10, kind: output, shape index: {1}]  }
   0x1   :  { %17 = vsyncpa [#allocation9], 0 }
   0x2   :  { %18 = vsyncpa [#allocation12], 0 }
   0x3   :  { %19 = vsyncpa [#allocation15], 0 }
   0x4   :  { %20 = vsyncpa [#allocation7], 0  ;;  %s39_s15 = sshll.u32 %s4459_s1, 4  ;;  %s40_s15 = int_to_ptr.hbm [resolvable:$true] %s39_s15 }
   0x5   :  { %21 = vsyncpa [#allocation18], 0  ;;  %s3532_s16 = smov [#allocation8]   ;;  %s66_s20 = sshll.u32 %s4461_s3, 4  ;;  %s67_s20 = int_to_ptr.hbm [resolvable:$true] %s66_s20 }
   0x6   :  { %s41_s17 = sshll.u32 %s3532_s16, 4  ;;  %s3533_s21 = smov 192   ;;  %s42_s17 = int_to_ptr.vmem [resolvable:$true] %s41_s17 }
   0x7   :  { %s3534_s22 = smov 12   ;;  %s3535_s23 = smov [#allocation11]  }
   0x8   :  { %47 = dma.hbm_to_vmem [thread:$0]  %s40_s15, 3072, %s42_s17, [#allocation9], %s3533_s21, %s3533_s21, %s3534_s22  }
   0x9   :  { %s68_s24 = sshll.u32 %s3535_s23, 4  ;;  %s26_s26 = sshll.u32 %s4458_s0, 4  ;;  %s69_s24 = int_to_ptr.vmem [resolvable:$true] %s68_s24  ;;  %s27_s26 = int_to_ptr.hbm [resolvable:$true] %s26_s26 }
   0xa   :  { %71 = dma.hbm_to_vmem [thread:$0]  %s67_s20, 48, %s69_s24, [#allocation12]  }
   0xb   :  { %s3536_s27 = smov [#allocation5]   ;;  %s52_s30 = sshll.u32 %s4460_s2, 4  ;;  %s53_s30 = int_to_ptr.hbm [resolvable:$true] %s52_s30 }
   0xc   :  { %s28_s28 = sshll.u32 %s3536_s27, 4  ;;  %s3537_s11 = smov 64   ;;  %s29_s28 = int_to_ptr.vmem [resolvable:$true] %s28_s28 }
   0xd   :  { %s3538_s12 = smov 4   ;;  %s3539_s13 = smov [#allocation10]  }
   0xe   :  { %34 = dma.hbm_to_vmem [thread:$0]  %s27_s26, 512, %s29_s28, [#allocation6], %s3537_s11, %s3537_s11, %s3538_s12  }
   0xf   :  { %s54_s14 = sshll.u32 %s3539_s13, 4  ;;  %s78_s0 = sshll.u32 %s4463_s5, 4  ;;  %s55_s14 = int_to_ptr.vmem [resolvable:$true] %s54_s14  ;;  %s79_s0 = int_to_ptr.hbm [resolvable:$true] %s78_s0 }
  0x10   :  { %60 = dma.hbm_to_vmem [thread:$0]  %s53_s30, 3072, %s55_s14, [#allocation9], %s3533_s21, %s3533_s21, %s3534_s22  }
  0x11   :  { %s91_s2 = sshll.u32 %s4464_s6, 4  ;;  %s3540_s19 = smov [#allocation13]   ;;  %s92_s2 = int_to_ptr.hbm [resolvable:$true] %s91_s2 }
  0x12   :  { %s80_s20 = sshll.u32 %s3540_s19, 4  ;;  %s3541_s23 = smov [#allocation14]   ;;  %s81_s20 = int_to_ptr.vmem [resolvable:$true] %s80_s20 }
  0x13   :  { %86 = dma.hbm_to_vmem [thread:$0]  %s79_s0, 3072, %s81_s20, [#allocation12], %s3533_s21, %s3533_s21, %s3534_s22  }
  0x14   :  { %s93_s5 = sshll.u32 %s3541_s23, 4  ;;  %s94_s5 = int_to_ptr.vmem [resolvable:$true] %s93_s5 }
  0x15   :  { %99 = dma.hbm_to_vmem [thread:$0]  %s92_s2, 3072, %s94_s5, [#allocation15], %s3533_s21, %s3533_s21, %s3534_s22  }
  0x16   :  { %3520 = dma.done.wait [#allocation6], 512  }
  0x17   :  { %3521 = vsyncadd [#allocation6], 4294966784 }
  0x18   :  { %3522 = dma.done.wait [#allocation9], 6144  }
  0x19   :  { %3523 = vsyncadd [#allocation9], 4294961152 }
  0x1a   :  { %3524 = dma.done.wait [#allocation12], 3120  }
  0x1b   :  { %3525 = vsyncadd [#allocation12], 4294964176 }
  0x1c   :  { %3526 = dma.done.wait [#allocation15], 3072  }
  0x1d   :  { %3527 = vsyncadd [#allocation15], 4294964224  ;;  %v2719_v0 = vld [vmem:[#allocation8 + $0xa8] sm:$0xf]  ;;  %v3071_v1 = vld [vmem:[#allocation8 + $0xb0] sm:$0xf0] }
  0x1e   :  { %v2815_v2 = vld [vmem:[#allocation10 + $0xa8] sm:$0xf]  ;;  %v2720_v3 = vor.u32 %v3071_v1, %v2719_v0  ;;  %v3095_v4 = vld [vmem:[#allocation10 + $0xb0] sm:$0xf0]  ;;  %v2707_v5 = vld [vmem:[#allocation8 + $0x90] sm:$0xf] }
  0x1f   :  { %v3068_v6 = vld [vmem:[#allocation8 + $0x98] sm:$0xf0]  ;;  %v3632_v7 = vor.u32 %v3095_v4, %v2815_v2  ;;  %v2803_v8 = vld [vmem:[#allocation10 + $0x90] sm:$0xf]  ;;  %v2695_v12 = vld [vmem:[#allocation8 + $0x78] sm:$0xf] }
  0x20   :  { %v3092_v9 = vld [vmem:[#allocation10 + $0x98] sm:$0xf0]  ;;  %360 = vmatpush.bf16.msra.mxu0 %v2720_v3  ;;  %v2708_v10 = vor.u32 %v3068_v6, %v2707_v5  ;;  %v3065_v13 = vld [vmem:[#allocation8 + $0x80] sm:$0xf0]  ;;  %v2791_v14 = vld [vmem:[#allocation10 + $0x78] sm:$0xf] }
  0x21   :  { %617 = vmatpush.bf16.msra.mxu3 %v3632_v7  ;;  %v3635_v11 = vor.u32 %v3092_v9, %v2803_v8  ;;  %v3089_v15 = vld [vmem:[#allocation10 + $0x80] sm:$0xf0]  ;;  %v2696_v16 = vor.u32 %v3065_v13, %v2695_v12  ;;  %v2683_v18 = vld [vmem:[#allocation8 + $0x60] sm:$0xf]  ;;  %v3062_v19 = vld [vmem:[#allocation8 + $0x68] sm:$0xf0] }
  0x22   :  { %v3638_v17 = vor.u32 %v3089_v15, %v2791_v14  ;;  %v2779_v20 = vld [vmem:[#allocation10 + $0x60] sm:$0xf]  ;;  %v3086_v21 = vld [vmem:[#allocation10 + $0x68] sm:$0xf0]  ;;  %v2684_v22 = vor.u32 %v3062_v19, %v2683_v18  ;;  %v2671_v24 = vld [vmem:[#allocation8 + $0x48] sm:$0xf] }
  0x23   :  { %v3641_v23 = vor.u32 %v3086_v21, %v2779_v20  ;;  %v3059_v25 = vld [vmem:[#allocation8 + $0x50] sm:$0xf0]  ;;  %v2767_v26 = vld [vmem:[#allocation10 + $0x48] sm:$0xf]  ;;  %v3070_v28 = vld [vmem:[#allocation8 + $0xac] sm:$0xf] }
  0x24   :  { %361 = vmatpush.bf16.msra.mxu0 %v2708_v10  ;;  %v3083_v27 = vld [vmem:[#allocation10 + $0x50] sm:$0xf0]  ;;  %v2721_v29 = vld [vmem:[#allocation8 + $0xb4] sm:$0xf0]  ;;  %v2672_v31 = vor.u32 %v3059_v25, %v2671_v24  ;;  %v2709_v33 = vld [vmem:[#allocation8 + $0x9c] sm:$0xf0] }
  0x25   :  { %618 = vmatpush.bf16.msra.mxu3 %v3635_v11  ;;  %v2724_v30 = vor.u32 %v3070_v28, %v2721_v29  ;;  %v3067_v32 = vld [vmem:[#allocation8 + $0x94] sm:$0xf]  ;;  %v3644_v34 = vor.u32 %v3083_v27, %v2767_v26  ;;  %v2659_v35 = vld [vmem:[#allocation8 + $0x30] sm:$0xf]  ;;  %v3056_v36 = vld [vmem:[#allocation8 + $0x38] sm:$0xf0] }
  0x26   :  { %v2755_v37 = vld [vmem:[#allocation10 + $0x30] sm:$0xf]  ;;  %v2712_v38 = vor.u32 %v3067_v32, %v2709_v33  ;;  %v3080_v39 = vld [vmem:[#allocation10 + $0x38] sm:$0xf0]  ;;  %v2697_v41 = vld [vmem:[#allocation8 + $0x84] sm:$0xf0]  ;;  %v2660_v43 = vor.u32 %v3056_v36, %v2659_v35 }
  0x27   :  { %389 = vmatpush.bf16.msra.mxu1 %v2724_v30  ;;  %v3064_v40 = vld [vmem:[#allocation8 + $0x7c] sm:$0xf]  ;;  %v2647_v42 = vld [vmem:[#allocation8 + $0x18] sm:$0xf]  ;;  %v3053_v44 = vld [vmem:[#allocation8 + $0x20] sm:$0xf0]  ;;  %v3647_v47 = vor.u32 %v3080_v39, %v2755_v37 }
  0x28   :  { %362 = vmatpush.bf16.msra.mxu0 %v2696_v16  ;;  %v2743_v45 = vld [vmem:[#allocation10 + $0x18] sm:$0xf]  ;;  %v3077_v46 = vld [vmem:[#allocation10 + $0x20] sm:$0xf0]  ;;  %v2700_v48 = vor.u32 %v3064_v40, %v2697_v41  ;;  %v2685_v50 = vld [vmem:[#allocation8 + $0x6c] sm:$0xf0]  ;;  %v2648_v54 = vor.u32 %v3053_v44, %v2647_v42 }
  0x29   :  { %619 = vmatpush.bf16.msra.mxu3 %v3638_v17  ;;  %v3061_v49 = vld [vmem:[#allocation8 + $0x64] sm:$0xf]  ;;  %v2727_v51 = vld [vmem:[#allocation8 + $0xb0] sm:$0xf]  ;;  %v3072_v52 = vld [vmem:[#allocation8 + $0xb8] sm:$0xf0]  ;;  %v3650_v58 = vor.u32 %v3077_v46, %v2743_v45 }
  0x2a   :  { %v2728_v53 = vor.u32 %v3072_v52, %v2727_v51  ;;  %v2635_v55 = vld [vmem:[#allocation8] sm:$0xf]  ;;  %v3050_v56 = vld [vmem:[#allocation8 + $0x8] sm:$0xf0]  ;;  %v2817_v61 = vld [vmem:[#allocation10 + $0xb4] sm:$0xf0]  ;;  %v2688_v62 = vor.u32 %v3061_v49, %v2685_v50 }
  0x2b   :  { %390 = vmatpush.bf16.msra.mxu1 %v2712_v38  ;;  %v2731_v57 = vld [vmem:[#allocation10] sm:$0xf]  ;;  %v3074_v59 = vld [vmem:[#allocation10 + $0x8] sm:$0xf0]  ;;  %v2823_v63 = vld [vmem:[#allocation10 + $0xb0] sm:$0xf]  ;;  %v2636_v5 = vor.u32 %v3050_v56, %v2635_v55 }
  0x2c   :  { %363 = vmatpush.bf16.msra.mxu0 %v2684_v22  ;;  %v3094_v60 = vld [vmem:[#allocation10 + $0xac] sm:$0xf]  ;;  %v3096_v0 = vld [vmem:[#allocation10 + $0xb8] sm:$0xf0]  ;;  %418 = vmatpush.bf16.msra.mxu2 %v2728_v53  ;;  %v2715_v1 = vld [vmem:[#allocation8 + $0x98] sm:$0xf]  ;;  %v3653_v8 = vor.u32 %v3074_v59, %v2731_v57 }
  0x2d   :  { %620 = vmatpush.bf16.msra.mxu3 %v3641_v23  ;;  %v3058_v2 = vld [vmem:[#allocation8 + $0x4c] sm:$0xf]  ;;  %v2673_v3 = vld [vmem:[#allocation8 + $0x54] sm:$0xf0]  ;;  %v3069_v4 = vld [vmem:[#allocation8 + $0xa0] sm:$0xf0]  ;;  %v3657_v10 = vor.u32 %v3096_v0, %v2823_v63  ;;  %v3659_v14 = vor.u32 %v3094_v60, %v2817_v61 }
  0x2e   :  { %v2716_v6 = vor.u32 %v3069_v4, %v2715_v1  ;;  %v3655_v9 = vld [vmem:[#allocation5] sm:$0xff]  ;;  %v3091_v12 = vld [vmem:[#allocation10 + $0x94] sm:$0xf]  ;;  %v2811_v13 = vld [vmem:[#allocation10 + $0x98] sm:$0xf]  ;;  %v2676_v16 = vor.u32 %v3058_v2, %v2673_v3  ;;  %v4469_v38 = vmov 0.0|0.0  }
  0x2f   :  { %391 = vmatpush.bf16.msra.mxu1 %v2700_v48  ;;  %v3093_v15 = vld [vmem:[#allocation10 + $0xa0] sm:$0xf0]  ;;  %v2703_v18 = vld [vmem:[#allocation8 + $0x80] sm:$0xf]  ;;  %v3066_v19 = vld [vmem:[#allocation8 + $0x88] sm:$0xf0] }
  0x30   :  { %364 = vmatpush.bf16.msra.mxu0 %v2672_v31  ;;  %419 = vmatpush.bf16.msra.mxu2 %v2716_v6  ;;  %v2805_v20 = vld [vmem:[#allocation10 + $0x9c] sm:$0xf0]  ;;  %v3055_v21 = vld [vmem:[#allocation8 + $0x34] sm:$0xf]  ;;  %v2704_v24 = vor.u32 %v3066_v19, %v2703_v18  ;;  %v3088_v25 = vld [vmem:[#allocation10 + $0x7c] sm:$0xf]  ;;  %v3663_v26 = vor.u32 %v3093_v15, %v2811_v13 }
  0x31   :  { %621 = vmatpush.bf16.msra.mxu3 %v3644_v34  ;;  %v2661_v22 = vld [vmem:[#allocation8 + $0x3c] sm:$0xf0]  ;;  %v3666_v28 = vor.u32 %v3091_v12, %v2805_v20  ;;  %v3090_v29 = vld [vmem:[#allocation10 + $0x88] sm:$0xf0]  ;;  %v2691_v31 = vld [vmem:[#allocation8 + $0x68] sm:$0xf] }
  0x32   :  { %v2799_v27 = vld [vmem:[#allocation10 + $0x80] sm:$0xf]  ;;  %v2664_v30 = vor.u32 %v3055_v21, %v2661_v22  ;;  %v3063_v32 = vld [vmem:[#allocation8 + $0x70] sm:$0xf0]  ;;  %v2793_v33 = vld [vmem:[#allocation10 + $0x84] sm:$0xf0] }
  0x33   :  { %392 = vmatpush.bf16.msra.mxu1 %v2688_v62  ;;  %v3052_v35 = vld [vmem:[#allocation8 + $0x1c] sm:$0xf]  ;;  %v2649_v36 = vld [vmem:[#allocation8 + $0x24] sm:$0xf0]  ;;  %v2692_v37 = vor.u32 %v3063_v32, %v2691_v31  ;;  %v2679_v39 = vld [vmem:[#allocation8 + $0x50] sm:$0xf]  ;;  %v3671_v41 = vor.u32 %v3090_v29, %v2799_v27  ;;  %v3674_v42 = vor.u32 %v3088_v25, %v2793_v33 }
  0x34   :  { %365 = vmatpush.bf16.msra.mxu0 %v2660_v43  ;;  %420 = vmatpush.bf16.msra.mxu2 %v2704_v24  ;;  %v3060_v40 = vld [vmem:[#allocation8 + $0x58] sm:$0xf0]  ;;  %v3085_v43 = vld [vmem:[#allocation10 + $0x64] sm:$0xf]  ;;  %v2787_v44 = vld [vmem:[#allocation10 + $0x68] sm:$0xf]  ;;  %v2652_v46 = vor.u32 %v3052_v35, %v2649_v36 }
  0x35   :  { %622 = vmatpush.bf16.msra.mxu3 %v3647_v47  ;;  %v3087_v45 = vld [vmem:[#allocation10 + $0x70] sm:$0xf0]  ;;  %v2781_v48 = vld [vmem:[#allocation10 + $0x6c] sm:$0xf0]  ;;  %v3049_v49 = vld [vmem:[#allocation8 + $0x4] sm:$0xf]  ;;  %v2680_v51 = vor.u32 %v3060_v40, %v2679_v39 }
  0x36   :  { %v2637_v50 = vld [vmem:[#allocation8 + $0xc] sm:$0xf0]  ;;  %v2667_v52 = vld [vmem:[#allocation8 + $0x38] sm:$0xf]  ;;  %v3057_v53 = vld [vmem:[#allocation8 + $0x40] sm:$0xf0]  ;;  %v3680_v55 = vor.u32 %v3085_v43, %v2781_v48 }
  0x37   :  { %393 = vmatpush.bf16.msra.mxu1 %v2676_v16  ;;  %v2775_v56 = vld [vmem:[#allocation10 + $0x50] sm:$0xf]  ;;  %v3084_v57 = vld [vmem:[#allocation10 + $0x58] sm:$0xf0]  ;;  %v2640_v59 = vor.u32 %v3049_v49, %v2637_v50  ;;  %v3082_v60 = vld [vmem:[#allocation10 + $0x4c] sm:$0xf]  ;;  %v2668_v62 = vor.u32 %v3057_v53, %v2667_v52 }
  0x38   :  { %366 = vmatpush.bf16.msra.mxu0 %v2648_v54  ;;  %421 = vmatpush.bf16.msra.mxu2 %v2692_v37  ;;  %v3677_v54 = vor.u32 %v3087_v45, %v2787_v44  ;;  %v2769_v61 = vld [vmem:[#allocation10 + $0x54] sm:$0xf0]  ;;  %v2655_v63 = vld [vmem:[#allocation8 + $0x20] sm:$0xf]  ;;  %v3054_v0 = vld [vmem:[#allocation8 + $0x28] sm:$0xf0]  ;;  %v3683_v1 = vor.u32 %v3084_v57, %v2775_v56 }
  0x39   :  { %623 = vmatpush.bf16.msra.mxu3 %v3650_v58  ;;  %v3686_v2 = vor.u32 %v3082_v60, %v2769_v61  ;;  %v2763_v3 = vld [vmem:[#allocation10 + $0x38] sm:$0xf]  ;;  %v3081_v4 = vld [vmem:[#allocation10 + $0x40] sm:$0xf0]  ;;  %v3079_v6 = vld [vmem:[#allocation10 + $0x34] sm:$0xf]  ;;  %v2656_v13 = vor.u32 %v3054_v0, %v2655_v63 }
  0x3a   :  { %v2757_v12 = vld [vmem:[#allocation10 + $0x3c] sm:$0xf0]  ;;  %v3691_v15 = vor.u32 %v3081_v4, %v2763_v3  ;;  %v3076_v18 = vld [vmem:[#allocation10 + $0x1c] sm:$0xf]  ;;  %v2643_v19 = vld [vmem:[#allocation8 + $0x8] sm:$0xf] }
  0x3b   :  { %394 = vmatpush.bf16.msra.mxu1 %v2664_v30  ;;  %v3694_v16 = vor.u32 %v3079_v6, %v2757_v12  ;;  %v3051_v20 = vld [vmem:[#allocation8 + $0x10] sm:$0xf0]  ;;  %v2745_v21 = vld [vmem:[#allocation10 + $0x24] sm:$0xf0]  ;;  %v2751_v22 = vld [vmem:[#allocation10 + $0x20] sm:$0xf] }
  0x3c   :  { %367 = vmatpush.bf16.msra.mxu0 %v2636_v5  ;;  %422 = vmatpush.bf16.msra.mxu2 %v2680_v51  ;;  %v3098_v5 = vld [vmem:[#allocation5 + $0x8] sm:$0xff]  ;;  %v2644_v25 = vor.u32 %v3051_v20, %v2643_v19  ;;  %v3701_v29 = vor.u32 %v3076_v18, %v2745_v21  ;;  %v3075_v31 = vld [vmem:[#allocation10 + $0x10] sm:$0xf0]  ;;  %v3073_v32 = vld [vmem:[#allocation10 + $0x4] sm:$0xf]  ;;  %s3543_s28 = smov [#allocation16]  }
  0x3d   :  { %624 = vmatpush.bf16.msra.mxu3 %v3653_v8  ;;  %v3078_v24 = vld [vmem:[#allocation10 + $0x28] sm:$0xf0]  ;;  %v2739_v30 = vld [vmem:[#allocation10 + $0x8] sm:$0xf]  ;;  %v2733_v33 = vld [vmem:[#allocation10 + $0xc] sm:$0xf0] }
  0x3e   :  { %v3698_v27 = vor.u32 %v3078_v24, %v2751_v22  ;;  %v3706_v35 = vor.u32 %v3075_v31, %v2739_v30  ;;  %v3709_v36 = vor.u32 %v3073_v32, %v2733_v33  ;;  %v3099_v37 = vld [vmem:[#allocation5 + $0x10] sm:$0xff]  ;;  %v198_v40 = vld [vmem:[#allocation11] sm:$0x7]  ;;  %s2576_s30 = sshll.u32 %s4467_s9, 4  ;;  %s3544_s11 = smov [#allocation17]   ;;  %s2577_s30 = int_to_ptr.hbm [resolvable:$true] %s2576_s30 }
  0x3f   :  { %368 = vmatmul.bf16.vlgmr.msra.gmra.mxu0 %v3655_v9  ;;  %395 = vmatpush.bf16.msra.mxu1 %v2652_v46  ;;  %v3778_v45 = vperm.slane %v198_v40, 0  ;;  %v3787_v57 = vperm.slane %v198_v40, 1  ;;  %v3799_v22 = vld [vmem:[%s4462_s4] ss:$0 sm:$0xff]  ;;  %s2587_s12 = sshll.u32 %s3544_s11, 4  ;;  %s2589_s15 = sshll.u32 %s4468_s10, 4  ;;  %s2588_s12 = int_to_ptr.vmem [resolvable:$true] %s2587_s12  ;;  %s2590_s15 = int_to_ptr.hbm [resolvable:$true] %s2589_s15 }
  0x40   :  { %643 = vmatpush.bf16.msrb.mxu0 %v3657_v10  ;;  %625 = vmatmul.bf16.vlgmr.msra.gmra.mxu3 %v4469_v38  ;;  %s3545_s16 = smov 128   ;;  %s3546_s0 = smov 8  }
  0x41   :  { %630 = vmatpush.bf16.msrb.mxu3 %v3659_v14  ;;  %423 = vmatpush.bf16.msra.mxu2 %v2668_v62 }
  0x43   :  { %396 = vmatpush.bf16.msra.mxu1 %v2640_v59 }
  0x44   :  { %644 = vmatpush.bf16.msrb.mxu0 %v3663_v26 }
  0x45   :  { %631 = vmatpush.bf16.msrb.mxu3 %v3666_v28  ;;  %424 = vmatpush.bf16.msra.mxu2 %v2656_v13 }
  0x46   :  { %397 = vmatmul.bf16.vlgmr.msra.gmra.mxu1 %v3655_v9 }
  0x47   :  { %711 = vmatpush.bf16.msrb.mxu1 %v3632_v7 }
  0x48   :  { %645 = vmatpush.bf16.msrb.mxu0 %v3671_v41 }
  0x49   :  { %632 = vmatpush.bf16.msrb.mxu3 %v3674_v42  ;;  %425 = vmatpush.bf16.msra.mxu2 %v2644_v25 }
  0x4b   :  { %712 = vmatpush.bf16.msrb.mxu1 %v3635_v11 }
  0x4c   :  { %646 = vmatpush.bf16.msrb.mxu0 %v3677_v54  ;;  %426 = vmatmul.bf16.vlgmr.msra.gmra.mxu2 %v3655_v9  ;;  %v3100_v9 = vld [vmem:[#allocation5 + $0x18] sm:$0xff] }
  0x4d   :  { %633 = vmatpush.bf16.msrb.mxu3 %v3680_v55  ;;  %724 = vmatpush.bf16.msrb.mxu2 %v3659_v14 }
  0x4f   :  { %373 = vmatmul.bf16.gmra.mxu0 %v3098_v5  ;;  %713 = vmatpush.bf16.msrb.mxu1 %v3638_v17 }
  0x50   :  { %647 = vmatpush.bf16.msrb.mxu0 %v3683_v1 }
  0x51   :  { %634 = vmatpush.bf16.msrb.mxu3 %v3686_v2  ;;  %725 = vmatpush.bf16.msrb.mxu2 %v3666_v28 }
  0x53   :  { %714 = vmatpush.bf16.msrb.mxu1 %v3641_v23 }
  0x54   :  { %648 = vmatpush.bf16.msrb.mxu0 %v3691_v15 }
  0x55   :  { %635 = vmatpush.bf16.msrb.mxu3 %v3694_v16  ;;  %726 = vmatpush.bf16.msrb.mxu2 %v3674_v42 }
  0x56   :  { %402 = vmatmul.bf16.gmra.mxu1 %v3098_v5 }
  0x57   :  { %715 = vmatpush.bf16.msrb.mxu1 %v3644_v34 }
  0x58   :  { %649 = vmatpush.bf16.msrb.mxu0 %v3698_v27 }
  0x59   :  { %636 = vmatpush.bf16.msrb.mxu3 %v3701_v29  ;;  %727 = vmatpush.bf16.msrb.mxu2 %v3680_v55 }
  0x5b   :  { %716 = vmatpush.bf16.msrb.mxu1 %v3647_v47 }
  0x5c   :  { %650 = vmatpush.bf16.msrb.mxu0 %v3706_v35  ;;  %431 = vmatmul.bf16.gmra.mxu2 %v3098_v5 }
  0x5d   :  { %637 = vmatpush.bf16.msrb.mxu3 %v3709_v36  ;;  %728 = vmatpush.bf16.msrb.mxu2 %v3686_v2 }
  0x5f   :  { %378 = vmatmul.bf16.gmra.mxu0 %v3099_v37  ;;  %717 = vmatpush.bf16.msrb.mxu1 %v3650_v58 }
  0x60   :  { %806 = vmatpush.bf16.msra.mxu0 %v3632_v7  ;;  %638 = vmatmul.bf16.vlgmr.msrb.gmra.mxu3 %v4469_v38 }
  0x61   :  { %737 = vmatpush.bf16.msra.mxu3 %v3657_v10  ;;  %729 = vmatpush.bf16.msrb.mxu2 %v3694_v16 }
  0x63   :  { %718 = vmatpush.bf16.msrb.mxu1 %v3653_v8 }
  0x64   :  { %807 = vmatpush.bf16.msra.mxu0 %v3635_v11 }
  0x65   :  { %738 = vmatpush.bf16.msra.mxu3 %v3663_v26  ;;  %730 = vmatpush.bf16.msrb.mxu2 %v3701_v29 }
  0x66   :  { %407 = vmatmul.bf16.gmra.mxu1 %v3099_v37 }
  0x67   :  { %819 = vmatpush.bf16.msra.mxu1 %v3659_v14 }
  0x68   :  { %808 = vmatpush.bf16.msra.mxu0 %v3638_v17 }
  0x69   :  { %739 = vmatpush.bf16.msra.mxu3 %v3671_v41  ;;  %731 = vmatpush.bf16.msrb.mxu2 %v3709_v36 }
  0x6b   :  { %820 = vmatpush.bf16.msra.mxu1 %v3666_v28 }
  0x6c   :  { %809 = vmatpush.bf16.msra.mxu0 %v3641_v23  ;;  %436 = vmatmul.bf16.gmra.mxu2 %v3099_v37 }
  0x6d   :  { %740 = vmatpush.bf16.msra.mxu3 %v3677_v54  ;;  %832 = vmatpush.bf16.msra.mxu2 %v3657_v10 }
  0x6f   :  { %383 = vmatmul.bf16.gmra.mxu0 %v3100_v9  ;;  %821 = vmatpush.bf16.msra.mxu1 %v3674_v42 }
  0x70   :  { %810 = vmatpush.bf16.msra.mxu0 %v3644_v34 }
  0x71   :  { %741 = vmatpush.bf16.msra.mxu3 %v3683_v1  ;;  %833 = vmatpush.bf16.msra.mxu2 %v3663_v26 }
  0x73   :  { %822 = vmatpush.bf16.msra.mxu1 %v3680_v55 }
  0x74   :  { %811 = vmatpush.bf16.msra.mxu0 %v3647_v47 }
  0x75   :  { %742 = vmatpush.bf16.msra.mxu3 %v3691_v15  ;;  %834 = vmatpush.bf16.msra.mxu2 %v3671_v41 }
  0x76   :  { %412 = vmatmul.bf16.gmra.mxu1 %v3100_v9 }
  0x77   :  { %823 = vmatpush.bf16.msra.mxu1 %v3686_v2 }
  0x78   :  { %812 = vmatpush.bf16.msra.mxu0 %v3650_v58 }
  0x79   :  { %743 = vmatpush.bf16.msra.mxu3 %v3698_v27  ;;  %835 = vmatpush.bf16.msra.mxu2 %v3677_v54 }
  0x7b   :  { %824 = vmatpush.bf16.msra.mxu1 %v3694_v16 }
  0x7c   :  { %813 = vmatpush.bf16.msra.mxu0 %v3653_v8  ;;  %441 = vmatmul.bf16.gmra.mxu2 %v3100_v9 }
  0x7d   :  { %744 = vmatpush.bf16.msra.mxu3 %v3706_v35  ;;  %836 = vmatpush.bf16.msra.mxu2 %v3683_v1 }
  0x7f   :  { %651 = vmatmul.bf16.vlgmr.msrb.gmra.mxu0 %v4469_v38  ;;  %825 = vmatpush.bf16.msra.mxu1 %v3701_v29 }
  0x80   :  { %914 = vmatpush.bf16.msrb.mxu0 %v3659_v14 }
  0x81   :  { %901 = vmatpush.bf16.msrb.mxu3 %v3632_v7  ;;  %837 = vmatpush.bf16.msra.mxu2 %v3691_v15 }
  0x83   :  { %826 = vmatpush.bf16.msra.mxu1 %v3709_v36 }
  0x84   :  { %915 = vmatpush.bf16.msrb.mxu0 %v3666_v28 }
  0x85   :  { %902 = vmatpush.bf16.msrb.mxu3 %v3635_v11  ;;  %838 = vmatpush.bf16.msra.mxu2 %v3698_v27 }
  0x88   :  { %916 = vmatpush.bf16.msrb.mxu0 %v3674_v42 }
  0x89   :  { %903 = vmatpush.bf16.msrb.mxu3 %v3638_v17  ;;  %839 = vmatpush.bf16.msra.mxu2 %v3706_v35 }
  0x8c   :  { %917 = vmatpush.bf16.msrb.mxu0 %v3680_v55 }
  0x8d   :  { %904 = vmatpush.bf16.msrb.mxu3 %v3641_v23 }
  0x90   :  { %918 = vmatpush.bf16.msrb.mxu0 %v3686_v2 }
  0x91   :  { %905 = vmatpush.bf16.msrb.mxu3 %v3644_v34 }
  0x94   :  { %919 = vmatpush.bf16.msrb.mxu0 %v3694_v16 }
  0x95   :  { %906 = vmatpush.bf16.msrb.mxu3 %v3647_v47 }
  0x98   :  { %920 = vmatpush.bf16.msrb.mxu0 %v3701_v29 }
  0x99   :  { %907 = vmatpush.bf16.msrb.mxu3 %v3650_v58 }
  0x9c   :  { %921 = vmatpush.bf16.msrb.mxu0 %v3709_v36 }
  0x9d   :  { %908 = vmatpush.bf16.msrb.mxu3 %v3653_v8 }
  0xbc   :  { %v369_v39 = vpop.f32.mrf.mxu0 }
  0xc3   :  { %v626_v43 = vpop.f32.mrf.mxu3  ;;  %v398_v61 = vpop.f32.mrf.mxu1 }
  0xc4   :  { %v3776_v44 = vpop.f32.mrf.mxu0  ;;  %v627_v46 = vadd.f32 %v626_v43, %v3778_v45 }
  0xc6   :  { %v656_v50 = vadd.f32 %v627_v46, %v369_v39  ;;  %v3806_v39 = vperm.slane %v198_v40, 2 }
  0xc8   :  { %v2825_v51 = vmul.f32 -1.442695, %v656_v50 }
  0xca   :  { %3166 = vpow2.f32 %v2825_v51 }
  0xcb   :  { %v628_v48 = vpop.f32.mrf.mxu3 }
  0xcc   :  { %v3781_v49 = vpop.f32.mrf.mxu0 }
  0xcf   :  { %v427_v63 = vpop.f32.mrf.mxu2 }
  0xd0   :  { %v3167_v53 = vpop.eup %3166 }
  0xd1   :  { %v660_v59 = vadd.f32 1.0, %v3167_v53 }
  0xd3   :  { %3168 = vrcp.f32 %v660_v59  ;;  %v672_v9 = vand.u32 2147483648, %v660_v59  ;;  %vm666_vm1 = vweird.f32 %v660_v59  ;;  %v670_v43 = vand.u32 2147483647, %v660_v59 }
  0xd4   :  { %v3783_v52 = vpop.f32.mrf.mxu0 }
  0xd5   :  { %v673_v53 = vor.u32 1.1754944e-38, %v672_v9  ;;  %vm671_vm3 = vcmp.eq.f32.partialorder %v670_v43, 8.507059e+37 }
  0xd7   :  { %v3792_v13 = vpop.f32.mrf.mxu2 }
  0xd9   :  { %v3169_v5 = vpop.eup %3168 }
  0xda   :  { %v662_v12 = vmul.f32 %v3169_v5, %v660_v59  ;;  %vm667_vm0 = vweird.f32 %v3169_v5 }
  0xdb   :  { %vm668_vm2 = vmor %vm666_vm1, %vm667_vm0 }
  0xdc   :  { %v3785_v56 = vpop.f32.mrf.mxu0  ;;  %v663_v21 = vsub.f32 1.0, %v662_v12 }
  0xde   :  { %v664_v24 = vmul.f32 %v3169_v5, %v663_v21 }
  0xdf   :  { %v432_v25 = vpop.f32.mrf.mxu2 }
  0xe0   :  { %v3804_v31 = vadd.f32 %v3799_v22, %v432_v25  ;;  %v665_v33 = vadd.f32 %v3169_v5, %v664_v24 }
  0xe2   :  { %v669_v46 = vsel %vm668_vm2, %v3169_v5, %v665_v33 }
  0xe3   :  { %v639_v60 = vpop.f32.mrf.mxu3 }
  0xe4   :  { %v640_v62 = vadd.f32 %v639_v60, %v3787_v57  ;;  %v3790_v3 = vpop.f32.mrf.mxu0  ;;  %v696_v60 = vadd.f32 %v3799_v22, %v427_v63 }
  0xe6   :  { %v676_v0 = vadd.f32 %v640_v62, %v398_v61  ;;  %v674_v62 = vsel %vm671_vm3, %v673_v53, %v669_v46 }
  0xe7   :  { %v3808_v48 = vpop.f32.mrf.mxu2 }
  0xe8   :  { %v2826_v4 = vmul.f32 -1.442695, %v676_v0 }
  0xea   :  { %3170 = vpow2.f32 %v2826_v4 }
  0xeb   :  { %v641_v6 = vpop.f32.mrf.mxu3 }
  0xec   :  { %v3794_v18 = vpop.f32.mrf.mxu0 }
  0xef   :  { %v437_v59 = vpop.f32.mrf.mxu2 }
  0xf0   :  { %v3171_v19 = vpop.eup %3170  ;;  %v3813_v21 = vadd.f32 %v3799_v22, %v437_v59 }
  0xf1   :  { %v680_v20 = vadd.f32 1.0, %v3171_v19 }
  0xf3   :  { %3172 = vrcp.f32 %v680_v20  ;;  %vm686_vm4 = vweird.f32 %v680_v20  ;;  %v692_v40 = vand.u32 2147483648, %v680_v20  ;;  %v690_v19 = vand.u32 2147483647, %v680_v20 }
  0xf4   :  { %v3801_v30 = vpop.f32.mrf.mxu0 }
  0xf5   :  { %4471 = vst [vmem:[#allocation25_spill] sm:$0xff] %v3801_v30  ;;  %v693_v63 = vor.u32 1.1754944e-38, %v692_v40  ;;  %vm691_vm7 = vcmp.eq.f32.partialorder %v690_v19, 8.507059e+37 }
  0xf7   :  { %v3815_v9 = vpop.f32.mrf.mxu2 }
  0xf9   :  { %v3173_v32 = vpop.eup %3172 }
  0xfa   :  { %v682_v37 = vmul.f32 %v3173_v32, %v680_v20  ;;  %vm687_vm5 = vweird.f32 %v3173_v32 }
  0xfb   :  { %vm688_vm6 = vmor %vm686_vm4, %vm687_vm5 }
  0xfc   :  { %v683_v50 = vsub.f32 1.0, %v682_v37  ;;  %v652_v51 = vpop.f32.mrf.mxu0 }
  0xfd   :  { %v653_v61 = vadd.f32 %v652_v51, %v3806_v39  ;;  %v400_v51 = vpop.f32.mrf.mxu1 }
  0xfe   :  { %v684_v4 = vmul.f32 %v3173_v32, %v683_v50 }
  0xff   :  { %v697_v0 = vmul.f32 %v674_v62, %v653_v61  ;;  %v442_v20 = vpop.f32.mrf.mxu2 }
 0x100   :  { %v685_v12 = vadd.f32 %v3173_v32, %v684_v4 }
 0x101   :  { %v698_v6 = vadd.f32 %v697_v0, %v696_v60 }
 0x102   :  { %v689_v24 = vsel %vm688_vm6, %v3173_v32, %v685_v12  ;;  %v3823_v32 = vadd.f32 %v3799_v22, %v442_v20 }
 0x103   :  { %3174 = vtanh.f32 %v698_v6  ;;  %v694_v37 = vsel %vm691_vm7, %v693_v63, %v689_v24 }
 0x104   :  { %v654_v5 = vpop.f32.mrf.mxu0  ;;  %4472 = vst [vmem:[#allocation26_spill] sm:$0xff] %v3823_v32 }
 0x105   :  { %v3848_v53 = vpop.f32.mrf.mxu1 }
 0x107   :  { %v3860_v6 = vpop.f32.mrf.mxu2 }
 0x108   :  { %4475 = vst [vmem:[#allocation29_spill] sm:$0xff] %v3860_v6 }
 0x109   :  { %v3175_v25 = vpop.eup %3174 }
 0x10a   :  { %v700_v33 = vsub.f32 0.0, %v3175_v25 }
 0x10c   :  { %v701_v43 = vmul.f32 %v700_v33, %v694_v37 }
 0x10d   :  { %v3850_v60 = vpop.f32.mrf.mxu1 }
 0x10e   :  { %v3817_v46 = vadd.f32 %v3175_v25, %v701_v43 }
 0x110   :  { %v710_v50 = vpack.c.bf16 %v3817_v46, %v3817_v46 }
 0x112   :  { %719 = vmatmul.bf16.vlgmr.msrb.gmra.mxu1 %v710_v50  ;;  %732 = vmatmul.bf16.vlgmr.msrb.gmra.mxu2 %v710_v50 }
 0x113   :  { %745 = vmatmul.bf16.vlgmr.msra.gmra.mxu3 %v710_v50  ;;  %927 = vmatpush.bf16.msrb.mxu1 %v3657_v10 }
 0x114   :  { %996 = vmatpush.bf16.msrb.mxu2 %v3632_v7  ;;  %1009 = vmatpush.bf16.msra.mxu3 %v3659_v14 }
 0x115   :  { %v3852_v61 = vpop.f32.mrf.mxu1 }
 0x117   :  { %928 = vmatpush.bf16.msrb.mxu1 %v3663_v26 }
 0x118   :  { %997 = vmatpush.bf16.msrb.mxu2 %v3635_v11  ;;  %1010 = vmatpush.bf16.msra.mxu3 %v3666_v28 }
 0x11b   :  { %929 = vmatpush.bf16.msrb.mxu1 %v3671_v41 }
 0x11c   :  { %998 = vmatpush.bf16.msrb.mxu2 %v3638_v17  ;;  %1011 = vmatpush.bf16.msra.mxu3 %v3674_v42 }
 0x11d   :  { %v3854_v62 = vpop.f32.mrf.mxu1 }
 0x11f   :  { %930 = vmatpush.bf16.msrb.mxu1 %v3677_v54 }
 0x120   :  { %999 = vmatpush.bf16.msrb.mxu2 %v3641_v23  ;;  %1012 = vmatpush.bf16.msra.mxu3 %v3680_v55 }
 0x123   :  { %931 = vmatpush.bf16.msrb.mxu1 %v3683_v1 }
 0x124   :  { %1000 = vmatpush.bf16.msrb.mxu2 %v3644_v34  ;;  %1013 = vmatpush.bf16.msra.mxu3 %v3686_v2 }
 0x125   :  { %v3856_v0 = vpop.f32.mrf.mxu1 }
 0x126   :  { %4473 = vst [vmem:[#allocation27_spill] sm:$0xff] %v3856_v0 }
 0x127   :  { %932 = vmatpush.bf16.msrb.mxu1 %v3691_v15 }
 0x128   :  { %1001 = vmatpush.bf16.msrb.mxu2 %v3647_v47  ;;  %1014 = vmatpush.bf16.msra.mxu3 %v3694_v16 }
 0x12b   :  { %933 = vmatpush.bf16.msrb.mxu1 %v3698_v27 }
 0x12c   :  { %1002 = vmatpush.bf16.msrb.mxu2 %v3650_v58  ;;  %1015 = vmatpush.bf16.msra.mxu3 %v3701_v29 }
 0x12d   :  { %v3858_v4 = vpop.f32.mrf.mxu1 }
 0x12e   :  { %4474 = vst [vmem:[#allocation28_spill] sm:$0xff] %v3858_v4 }
 0x12f   :  { %934 = vmatpush.bf16.msrb.mxu1 %v3706_v35 }
 0x130   :  { %1003 = vmatpush.bf16.msrb.mxu2 %v3653_v8  ;;  %1016 = vmatpush.bf16.msra.mxu3 %v3709_v36 }
 0x18f   :  { %v720_v40 = vpop.f32.mrf.mxu1 }
 0x190   :  { %v721_v59 = vadd.f32 %v720_v40, %v3778_v45 }
 0x192   :  { %v750_v5 = vadd.f32 %v721_v59, %v3776_v44 }
 0x194   :  { %v2827_v12 = vmul.f32 -1.442695, %v750_v5 }
 0x195   :  { %v733_v19 = vpop.f32.mrf.mxu2 }
 0x196   :  { %3176 = vpow2.f32 %v2827_v12  ;;  %v734_v63 = vadd.f32 %v733_v19, %v3787_v57  ;;  %v746_v24 = vpop.f32.mrf.mxu3 }
 0x197   :  { %v722_v25 = vpop.f32.mrf.mxu1 }
 0x198   :  { %v770_v33 = vadd.f32 %v734_v63, %v400_v51 }
 0x19a   :  { %v2828_v37 = vmul.f32 -1.442695, %v770_v33 }
 0x19c   :  { %v3177_v43 = vpop.eup %3176  ;;  %3178 = vpow2.f32 %v2828_v37 }
 0x19d   :  { %v754_v50 = vadd.f32 1.0, %v3177_v43  ;;  %v735_v20 = vpop.f32.mrf.mxu2  ;;  %v790_v43 = vadd.f32 %v3799_v22, %v3792_v13 }
 0x19e   :  { %v748_v38 = vpop.f32.mrf.mxu3 }
 0x19f   :  { %3180 = vrcp.f32 %v754_v50  ;;  %v766_v5 = vand.u32 2147483648, %v754_v50  ;;  %v764_v19 = vand.u32 2147483647, %v754_v50  ;;  %vm760_vm9 = vweird.f32 %v754_v50 }
 0x1a0   :  { %v747_v38 = vadd.f32 %v746_v24, %v3806_v39 }
 0x1a1   :  { %v767_v63 = vor.u32 1.1754944e-38, %v766_v5  ;;  %vm765_vm11 = vcmp.eq.f32.partialorder %v764_v19, 8.507059e+37 }
 0x1a2   :  { %v3179_v6 = vpop.eup %3178 }
 0x1a3   :  { %v774_v30 = vadd.f32 1.0, %v3179_v6 }
 0x1a5   :  { %v3181_v40 = vpop.eup %3180  ;;  %3182 = vrcp.f32 %v774_v30  ;;  %v786_v0 = vand.u32 2147483648, %v774_v30  ;;  %vm780_vm13 = vweird.f32 %v774_v30 }
 0x1a6   :  { %v756_v44 = vmul.f32 %v3181_v40, %v754_v50  ;;  %vm761_vm8 = vweird.f32 %v3181_v40  ;;  %v784_v50 = vand.u32 2147483647, %v774_v30 }
 0x1a7   :  { %vm762_vm10 = vmor %vm760_vm9, %vm761_vm8 }
 0x1a8   :  { %v757_v59 = vsub.f32 1.0, %v756_v44  ;;  %vm785_vm15 = vcmp.eq.f32.partialorder %v784_v50, 8.507059e+37 }
 0x1aa   :  { %v758_v12 = vmul.f32 %v3181_v40, %v757_v59 }
 0x1ab   :  { %v3183_v4 = vpop.eup %3182 }
 0x1ac   :  { %v776_v25 = vmul.f32 %v3183_v4, %v774_v30  ;;  %v759_v51 = vadd.f32 %v3181_v40, %v758_v12  ;;  %vm781_vm12 = vweird.f32 %v3183_v4 }
 0x1ad   :  { %vm782_vm14 = vmor %vm780_vm13, %vm781_vm12 }
 0x1ae   :  { %v777_v33 = vsub.f32 1.0, %v776_v25  ;;  %v763_v37 = vsel %vm762_vm10, %v3181_v40, %v759_v51  ;;  %v787_v25 = vor.u32 1.1754944e-38, %v786_v0 }
 0x1af   :  { %v768_v6 = vsel %vm765_vm11, %v767_v63, %v763_v37 }
 0x1b0   :  { %v791_v20 = vmul.f32 %v768_v6, %v747_v38  ;;  %v778_v44 = vmul.f32 %v3183_v4, %v777_v33 }
 0x1b2   :  { %v792_v59 = vadd.f32 %v791_v20, %v790_v43  ;;  %v779_v32 = vadd.f32 %v3183_v4, %v778_v44 }
 0x1b4   :  { %3184 = vtanh.f32 %v792_v59  ;;  %v783_v5 = vsel %vm782_vm14, %v3183_v4, %v779_v32 }
 0x1b5   :  { %v788_v40 = vsel %vm785_vm15, %v787_v25, %v783_v5 }
 0x1ba   :  { %v3185_v12 = vpop.eup %3184 }
 0x1bb   :  { %v794_v24 = vsub.f32 %v3817_v46, %v3185_v12 }
 0x1bd   :  { %v795_v19 = vmul.f32 %v794_v24, %v788_v40 }
 0x1bf   :  { %v3869_v51 = vadd.f32 %v3185_v12, %v795_v19 }
 0x1c1   :  { %v805_v13 = vpack.c.bf16 %v3869_v51, %v3869_v51 }
 0x1c3   :  { %814 = vmatmul.bf16.vlgmr.msra.gmra.mxu0 %v805_v13  ;;  %827 = vmatmul.bf16.vlgmr.msra.gmra.mxu1 %v805_v13 }
 0x1c4   :  { %840 = vmatmul.bf16.vlgmr.msra.gmra.mxu2 %v805_v13  ;;  %1022 = vmatpush.bf16.msra.mxu0 %v3657_v10 }
 0x1c5   :  { %1091 = vmatpush.bf16.msra.mxu1 %v3632_v7  ;;  %1104 = vmatpush.bf16.msra.mxu2 %v3659_v14 }
 0x1c8   :  { %1023 = vmatpush.bf16.msra.mxu0 %v3663_v26 }
 0x1c9   :  { %1092 = vmatpush.bf16.msra.mxu1 %v3635_v11  ;;  %1105 = vmatpush.bf16.msra.mxu2 %v3666_v28 }
 0x1cc   :  { %1024 = vmatpush.bf16.msra.mxu0 %v3671_v41 }
 0x1cd   :  { %1093 = vmatpush.bf16.msra.mxu1 %v3638_v17  ;;  %1106 = vmatpush.bf16.msra.mxu2 %v3674_v42 }
 0x1d0   :  { %1025 = vmatpush.bf16.msra.mxu0 %v3677_v54 }
 0x1d1   :  { %1094 = vmatpush.bf16.msra.mxu1 %v3641_v23  ;;  %1107 = vmatpush.bf16.msra.mxu2 %v3680_v55 }
 0x1d4   :  { %1026 = vmatpush.bf16.msra.mxu0 %v3683_v1 }
 0x1d5   :  { %1095 = vmatpush.bf16.msra.mxu1 %v3644_v34  ;;  %1108 = vmatpush.bf16.msra.mxu2 %v3686_v2 }
 0x1d8   :  { %1027 = vmatpush.bf16.msra.mxu0 %v3691_v15 }
 0x1d9   :  { %1096 = vmatpush.bf16.msra.mxu1 %v3647_v47  ;;  %1109 = vmatpush.bf16.msra.mxu2 %v3694_v16 }
 0x1dc   :  { %1028 = vmatpush.bf16.msra.mxu0 %v3698_v27 }
 0x1dd   :  { %1097 = vmatpush.bf16.msra.mxu1 %v3650_v58  ;;  %1110 = vmatpush.bf16.msra.mxu2 %v3701_v29 }
 0x1e0   :  { %1029 = vmatpush.bf16.msra.mxu0 %v3706_v35 }
 0x1e1   :  { %1098 = vmatpush.bf16.msra.mxu1 %v3653_v8  ;;  %1111 = vmatpush.bf16.msra.mxu2 %v3709_v36 }
 0x240   :  { %v815_v30 = vpop.f32.mrf.mxu0  ;;  %v828_v32 = vpop.f32.mrf.mxu1 }
 0x241   :  { %v816_v0 = vadd.f32 %v815_v30, %v3778_v45  ;;  %v829_v4 = vadd.f32 %v828_v32, %v3787_v57 }
 0x243   :  { %v845_v63 = vadd.f32 %v816_v0, %v3781_v49  ;;  %v865_v33 = vadd.f32 %v829_v4, %v3848_v53 }
 0x245   :  { %v2829_v38 = vmul.f32 -1.442695, %v845_v63  ;;  %v2830_v37 = vmul.f32 -1.442695, %v865_v33 }
 0x247   :  { %3186 = vpow2.f32 %v2829_v38  ;;  %v841_v6 = vpop.f32.mrf.mxu2 }
 0x248   :  { %3188 = vpow2.f32 %v2830_v37  ;;  %v817_v43 = vpop.f32.mrf.mxu0  ;;  %v830_v20 = vpop.f32.mrf.mxu1  ;;  %v842_v63 = vadd.f32 %v841_v6, %v3806_v39 }
 0x24d   :  { %v3187_v44 = vpop.eup %3186 }
 0x24e   :  { %v3189_v59 = vpop.eup %3188  ;;  %v849_v50 = vadd.f32 1.0, %v3187_v44 }
 0x24f   :  { %v869_v5 = vadd.f32 1.0, %v3189_v59  ;;  %v843_v12 = vpop.f32.mrf.mxu2 }
 0x250   :  { %3190 = vrcp.f32 %v849_v50  ;;  %v861_v53 = vand.u32 2147483648, %v849_v50  ;;  %v859_v30 = vand.u32 2147483647, %v849_v50  ;;  %vm855_vm1 = vweird.f32 %v849_v50 }
 0x251   :  { %3192 = vrcp.f32 %v869_v5  ;;  %v881_v59 = vand.u32 2147483648, %v869_v5  ;;  %vm875_vm5 = vweird.f32 %v869_v5  ;;  %v879_v12 = vand.u32 2147483647, %v869_v5 }
 0x252   :  { %v862_v4 = vor.u32 1.1754944e-38, %v861_v53  ;;  %vm860_vm3 = vcmp.eq.f32.partialorder %v859_v30, 8.507059e+37 }
 0x253   :  { %vm880_vm7 = vcmp.eq.f32.partialorder %v879_v12, 8.507059e+37 }
 0x256   :  { %v3191_v25 = vpop.eup %3190 }
 0x257   :  { %v3193_v24 = vpop.eup %3192  ;;  %v851_v40 = vmul.f32 %v3191_v25, %v849_v50  ;;  %vm856_vm0 = vweird.f32 %v3191_v25 }
 0x258   :  { %v871_v19 = vmul.f32 %v3193_v24, %v869_v5  ;;  %vm857_vm2 = vmor %vm855_vm1, %vm856_vm0  ;;  %vm876_vm4 = vweird.f32 %v3193_v24 }
 0x259   :  { %v852_v49 = vsub.f32 1.0, %v851_v40  ;;  %vm877_vm6 = vmor %vm875_vm5, %vm876_vm4 }
 0x25a   :  { %v872_v0 = vsub.f32 1.0, %v871_v19 }
 0x25b   :  { %v853_v13 = vmul.f32 %v3191_v25, %v852_v49  ;;  %v882_v49 = vor.u32 1.1754944e-38, %v881_v59 }
 0x25c   :  { %v873_v43 = vmul.f32 %v3193_v24, %v872_v0 }
 0x25d   :  { %v854_v32 = vadd.f32 %v3191_v25, %v853_v13 }
 0x25e   :  { %v874_v44 = vadd.f32 %v3193_v24, %v873_v43 }
 0x25f   :  { %v858_v33 = vsel %vm857_vm2, %v3191_v25, %v854_v32 }
 0x260   :  { %v863_v38 = vsel %vm860_vm3, %v862_v4, %v858_v33  ;;  %v878_v50 = vsel %vm877_vm6, %v3193_v24, %v874_v44 }
 0x261   :  { %v886_v37 = vmul.f32 %v863_v38, %v842_v63  ;;  %v883_v6 = vsel %vm880_vm7, %v882_v49, %v878_v50 }
 0x263   :  { %v887_v20 = vadd.f32 %v886_v37, %v3804_v31 }
 0x265   :  { %3194 = vtanh.f32 %v887_v20 }
 0x26b   :  { %v3195_v40 = vpop.eup %3194 }
 0x26c   :  { %v889_v19 = vsub.f32 %v3869_v51, %v3195_v40 }
 0x26e   :  { %v890_v25 = vmul.f32 %v889_v19, %v883_v6 }
 0x270   :  { %v3904_v53 = vadd.f32 %v3195_v40, %v890_v25 }
 0x272   :  { %v900_v31 = vpack.c.bf16 %v3904_v53, %v3904_v53 }
 0x274   :  { %909 = vmatmul.bf16.vlgmr.msrb.gmra.mxu3 %v900_v31  ;;  %922 = vmatmul.bf16.vlgmr.msrb.gmra.mxu0 %v900_v31 }
 0x275   :  { %935 = vmatmul.bf16.vlgmr.msrb.gmra.mxu1 %v900_v31  ;;  %1117 = vmatpush.bf16.msrb.mxu3 %v3657_v10 }
 0x276   :  { %1186 = vmatpush.bf16.msrb.mxu0 %v3632_v7  ;;  %1199 = vmatpush.bf16.msrb.mxu1 %v3659_v14 }
 0x279   :  { %1118 = vmatpush.bf16.msrb.mxu3 %v3663_v26 }
 0x27a   :  { %1187 = vmatpush.bf16.msrb.mxu0 %v3635_v11  ;;  %1200 = vmatpush.bf16.msrb.mxu1 %v3666_v28 }
 0x27d   :  { %1119 = vmatpush.bf16.msrb.mxu3 %v3671_v41 }
 0x27e   :  { %1188 = vmatpush.bf16.msrb.mxu0 %v3638_v17  ;;  %1201 = vmatpush.bf16.msrb.mxu1 %v3674_v42 }
 0x281   :  { %1120 = vmatpush.bf16.msrb.mxu3 %v3677_v54 }
 0x282   :  { %1189 = vmatpush.bf16.msrb.mxu0 %v3641_v23  ;;  %1202 = vmatpush.bf16.msrb.mxu1 %v3680_v55 }
 0x285   :  { %1121 = vmatpush.bf16.msrb.mxu3 %v3683_v1 }
 0x286   :  { %1190 = vmatpush.bf16.msrb.mxu0 %v3644_v34  ;;  %1203 = vmatpush.bf16.msrb.mxu1 %v3686_v2 }
 0x289   :  { %1122 = vmatpush.bf16.msrb.mxu3 %v3691_v15 }
 0x28a   :  { %1191 = vmatpush.bf16.msrb.mxu0 %v3647_v47  ;;  %1204 = vmatpush.bf16.msrb.mxu1 %v3694_v16 }
 0x28d   :  { %1123 = vmatpush.bf16.msrb.mxu3 %v3698_v27 }
 0x28e   :  { %1192 = vmatpush.bf16.msrb.mxu0 %v3650_v58  ;;  %1205 = vmatpush.bf16.msrb.mxu1 %v3701_v29 }
 0x291   :  { %1124 = vmatpush.bf16.msrb.mxu3 %v3706_v35 }
 0x292   :  { %1193 = vmatpush.bf16.msrb.mxu0 %v3653_v8  ;;  %1206 = vmatpush.bf16.msrb.mxu1 %v3709_v36 }
 0x2f1   :  { %v923_v5 = vpop.f32.mrf.mxu0 }
 0x2f2   :  { %v924_v24 = vadd.f32 %v923_v5, %v3787_v57  ;;  %v936_v13 = vpop.f32.mrf.mxu1 }
 0x2f4   :  { %v960_v30 = vadd.f32 %v924_v24, %v3850_v60 }
 0x2f6   :  { %v2832_v32 = vmul.f32 -1.442695, %v960_v30  ;;  %v937_v30 = vadd.f32 %v936_v13, %v3806_v39 }
 0x2f7   :  { %v910_v0 = vpop.f32.mrf.mxu3 }
 0x2f8   :  { %v911_v4 = vadd.f32 %v910_v0, %v3778_v45  ;;  %3196 = vpow2.f32 %v2832_v32 }
 0x2f9   :  { %v925_v63 = vpop.f32.mrf.mxu0 }
 0x2fa   :  { %v940_v33 = vadd.f32 %v911_v4, %v3783_v52  ;;  %v938_v38 = vpop.f32.mrf.mxu1  ;;  %v980_v4 = vadd.f32 %v3799_v22, %v3808_v48 }
 0x2fc   :  { %v2831_v37 = vmul.f32 -1.442695, %v940_v33 }
 0x2fe   :  { %3198 = vpow2.f32 %v2831_v37  ;;  %v3197_v20 = vpop.eup %3196 }
 0x2ff   :  { %v912_v43 = vpop.f32.mrf.mxu3  ;;  %v964_v59 = vadd.f32 1.0, %v3197_v20 }
 0x301   :  { %v976_v43 = vand.u32 2147483648, %v964_v59  ;;  %vm970_vm13 = vweird.f32 %v964_v59  ;;  %v974_v20 = vand.u32 2147483647, %v964_v59 }
 0x303   :  { %vm975_vm15 = vcmp.eq.f32.partialorder %v974_v20, 8.507059e+37 }
 0x304   :  { %v3199_v44 = vpop.eup %3198 }
 0x305   :  { %v944_v12 = vadd.f32 1.0, %v3199_v44 }
 0x307   :  { %3200 = vrcp.f32 %v944_v12  ;;  %v956_v6 = vand.u32 2147483648, %v944_v12  ;;  %v954_v52 = vand.u32 2147483647, %v944_v12  ;;  %vm950_vm9 = vweird.f32 %v944_v12 }
 0x308   :  { %3202 = vrcp.f32 %v964_v59 }
 0x309   :  { %v957_v24 = vor.u32 1.1754944e-38, %v956_v6  ;;  %vm955_vm11 = vcmp.eq.f32.partialorder %v954_v52, 8.507059e+37 }
 0x30d   :  { %v3201_v50 = vpop.eup %3200 }
 0x30e   :  { %v3203_v60 = vpop.eup %3202  ;;  %v946_v40 = vmul.f32 %v3201_v50, %v944_v12  ;;  %vm951_vm8 = vweird.f32 %v3201_v50 }
 0x30f   :  { %v966_v19 = vmul.f32 %v3203_v60, %v964_v59  ;;  %vm952_vm10 = vmor %vm950_vm9, %vm951_vm8  ;;  %vm971_vm12 = vweird.f32 %v3203_v60 }
 0x310   :  { %v947_v49 = vsub.f32 1.0, %v946_v40  ;;  %vm972_vm14 = vmor %vm970_vm13, %vm971_vm12  ;;  %v977_v40 = vor.u32 1.1754944e-38, %v976_v43 }
 0x311   :  { %v967_v5 = vsub.f32 1.0, %v966_v19 }
 0x312   :  { %v948_v25 = vmul.f32 %v3201_v50, %v947_v49 }
 0x313   :  { %v968_v33 = vmul.f32 %v3203_v60, %v967_v5 }
 0x314   :  { %v949_v31 = vadd.f32 %v3201_v50, %v948_v25 }
 0x315   :  { %v969_v37 = vadd.f32 %v3203_v60, %v968_v33 }
 0x316   :  { %v953_v32 = vsel %vm952_vm10, %v3201_v50, %v949_v31 }
 0x317   :  { %v958_v0 = vsel %vm955_vm11, %v957_v24, %v953_v32  ;;  %v973_v44 = vsel %vm972_vm14, %v3203_v60, %v969_v37 }
 0x318   :  { %v981_v63 = vmul.f32 %v958_v0, %v937_v30  ;;  %v978_v50 = vsel %vm975_vm15, %v977_v40, %v973_v44 }
 0x31a   :  { %v982_v38 = vadd.f32 %v981_v63, %v980_v4 }
 0x31c   :  { %3204 = vtanh.f32 %v982_v38 }
 0x322   :  { %v3205_v12 = vpop.eup %3204 }
 0x323   :  { %v984_v13 = vsub.f32 %v3904_v53, %v3205_v12 }
 0x325   :  { %v985_v49 = vmul.f32 %v984_v13, %v978_v50 }
 0x327   :  { %v3940_v19 = vadd.f32 %v3205_v12, %v985_v49 }
 0x329   :  { %v995_v48 = vpack.c.bf16 %v3940_v19, %v3940_v19 }
 0x32b   :  { %1004 = vmatmul.bf16.vlgmr.msrb.gmra.mxu2 %v995_v48  ;;  %1017 = vmatmul.bf16.vlgmr.msra.gmra.mxu3 %v995_v48 }
 0x32c   :  { %1030 = vmatmul.bf16.vlgmr.msra.gmra.mxu0 %v995_v48  ;;  %1212 = vmatpush.bf16.msrb.mxu2 %v3657_v10 }
 0x32d   :  { %1281 = vmatpush.bf16.msra.mxu3 %v3632_v7  ;;  %1294 = vmatpush.bf16.msra.mxu0 %v3659_v14 }
 0x330   :  { %1213 = vmatpush.bf16.msrb.mxu2 %v3663_v26 }
 0x331   :  { %1282 = vmatpush.bf16.msra.mxu3 %v3635_v11  ;;  %1295 = vmatpush.bf16.msra.mxu0 %v3666_v28 }
 0x334   :  { %1214 = vmatpush.bf16.msrb.mxu2 %v3671_v41 }
 0x335   :  { %1283 = vmatpush.bf16.msra.mxu3 %v3638_v17  ;;  %1296 = vmatpush.bf16.msra.mxu0 %v3674_v42 }
 0x338   :  { %1215 = vmatpush.bf16.msrb.mxu2 %v3677_v54 }
 0x339   :  { %1284 = vmatpush.bf16.msra.mxu3 %v3641_v23  ;;  %1297 = vmatpush.bf16.msra.mxu0 %v3680_v55 }
 0x33c   :  { %1216 = vmatpush.bf16.msrb.mxu2 %v3683_v1 }
 0x33d   :  { %1285 = vmatpush.bf16.msra.mxu3 %v3644_v34  ;;  %1298 = vmatpush.bf16.msra.mxu0 %v3686_v2 }
 0x340   :  { %1217 = vmatpush.bf16.msrb.mxu2 %v3691_v15 }
 0x341   :  { %1286 = vmatpush.bf16.msra.mxu3 %v3647_v47  ;;  %1299 = vmatpush.bf16.msra.mxu0 %v3694_v16 }
 0x344   :  { %1218 = vmatpush.bf16.msrb.mxu2 %v3698_v27 }
 0x345   :  { %1287 = vmatpush.bf16.msra.mxu3 %v3650_v58  ;;  %1300 = vmatpush.bf16.msra.mxu0 %v3701_v29 }
 0x348   :  { %1219 = vmatpush.bf16.msrb.mxu2 %v3706_v35 }
 0x349   :  { %1288 = vmatpush.bf16.msra.mxu3 %v3653_v8  ;;  %1301 = vmatpush.bf16.msra.mxu0 %v3709_v36 }
 0x3a9   :  { %v1031_v7 = vpop.f32.mrf.mxu0 }
 0x3aa   :  { %v1032_v32 = vadd.f32 %v1031_v7, %v3806_v39 }
 0x3ae   :  { %v1005_v11 = vpop.f32.mrf.mxu2  ;;  %v1018_v17 = vpop.f32.mrf.mxu3 }
 0x3af   :  { %v1006_v23 = vadd.f32 %v1005_v11, %v3778_v45  ;;  %v1019_v34 = vadd.f32 %v1018_v17, %v3787_v57 }
 0x3b1   :  { %v1035_v47 = vadd.f32 %v1006_v23, %v3785_v56  ;;  %v1055_v14 = vadd.f32 %v1019_v34, %v3852_v61  ;;  %v1033_v58 = vpop.f32.mrf.mxu0  ;;  %v3123_v23 = vld [vmem:[#allocation13 + $0xb0] sm:$0xf0] }
 0x3b3   :  { %v2833_v28 = vmul.f32 -1.442695, %v1035_v47  ;;  %v2834_v42 = vmul.f32 -1.442695, %v1055_v14  ;;  %v3120_v47 = vld [vmem:[#allocation13 + $0x98] sm:$0xf0] }
 0x3b5   :  { %3206 = vpow2.f32 %v2833_v28  ;;  %v2903_v28 = vld [vmem:[#allocation13 + $0x78] sm:$0xf] }
 0x3b6   :  { %3208 = vpow2.f32 %v2834_v42  ;;  %v1007_v55 = vpop.f32.mrf.mxu2  ;;  %v1020_v8 = vpop.f32.mrf.mxu3 }
 0x3b7   :  { %v2891_v55 = vld [vmem:[#allocation13 + $0x60] sm:$0xf]  ;;  %v3114_v8 = vld [vmem:[#allocation13 + $0x68] sm:$0xf0] }
 0x3bb   :  { %v3207_v2 = vpop.eup %3206 }
 0x3bc   :  { %v3209_v16 = vpop.eup %3208  ;;  %v1039_v29 = vadd.f32 1.0, %v3207_v2 }
 0x3bd   :  { %v1059_v36 = vadd.f32 1.0, %v3209_v16 }
 0x3be   :  { %3210 = vrcp.f32 %v1039_v29  ;;  %v1051_v56 = vand.u32 2147483648, %v1039_v29  ;;  %v1049_v31 = vand.u32 2147483647, %v1039_v29  ;;  %vm1045_vm1 = vweird.f32 %v1039_v29 }
 0x3bf   :  { %3212 = vrcp.f32 %v1059_v36  ;;  %v1071_v43 = vand.u32 2147483648, %v1059_v36  ;;  %vm1065_vm5 = vweird.f32 %v1059_v36  ;;  %v1069_v20 = vand.u32 2147483647, %v1059_v36 }
 0x3c0   :  { %v1052_v24 = vor.u32 1.1754944e-38, %v1051_v56  ;;  %vm1050_vm3 = vcmp.eq.f32.partialorder %v1049_v31, 8.507059e+37 }
 0x3c1   :  { %v1072_v40 = vor.u32 1.1754944e-38, %v1071_v43  ;;  %vm1070_vm7 = vcmp.eq.f32.partialorder %v1069_v20, 8.507059e+37  ;;  %v3102_v43 = vld [vmem:[#allocation13 + $0x8] sm:$0xf0] }
 0x3c4   :  { %v3211_v59 = vpop.eup %3210 }
 0x3c5   :  { %v3213_v60 = vpop.eup %3212  ;;  %v1041_v6 = vmul.f32 %v3211_v59, %v1039_v29  ;;  %vm1046_vm0 = vweird.f32 %v3211_v59 }
 0x3c6   :  { %v1061_v52 = vmul.f32 %v3213_v60, %v1059_v36  ;;  %vm1047_vm2 = vmor %vm1045_vm1, %vm1046_vm0  ;;  %vm1066_vm4 = vweird.f32 %v3213_v60  ;;  %v2892_v36 = vor.u32 %v3114_v8, %v2891_v55 }
 0x3c7   :  { %v1042_v25 = vsub.f32 1.0, %v1041_v6  ;;  %vm1067_vm6 = vmor %vm1065_vm5, %vm1066_vm4  ;;  %v2879_v6 = vld [vmem:[#allocation13 + $0x48] sm:$0xf] }
 0x3c8   :  { %v1062_v30 = vsub.f32 1.0, %v1061_v52  ;;  %v2867_v52 = vld [vmem:[#allocation13 + $0x30] sm:$0xf] }
 0x3c9   :  { %v1043_v61 = vmul.f32 %v3211_v59, %v1042_v25  ;;  %v3111_v25 = vld [vmem:[#allocation13 + $0x50] sm:$0xf0] }
 0x3ca   :  { %v1063_v33 = vmul.f32 %v3213_v60, %v1062_v30  ;;  %v2880_v56 = vor.u32 %v3111_v25, %v2879_v6  ;;  %v2855_v30 = vld [vmem:[#allocation13 + $0x18] sm:$0xf]  ;;  %v4476_v25 = vld [vmem:[#allocation27_spill] sm:$0xff] }
 0x3cb   :  { %v1044_v5 = vadd.f32 %v3211_v59, %v1043_v61  ;;  %v3108_v61 = vld [vmem:[#allocation13 + $0x38] sm:$0xf0] }
 0x3cc   :  { %v1064_v37 = vadd.f32 %v3213_v60, %v1063_v33 }
 0x3cd   :  { %v1048_v0 = vsel %vm1047_vm2, %v3211_v59, %v1044_v5 }
 0x3ce   :  { %v1053_v4 = vsel %vm1050_vm3, %v1052_v24, %v1048_v0  ;;  %v1068_v44 = vsel %vm1067_vm6, %v3213_v60, %v1064_v37  ;;  %v2868_v24 = vor.u32 %v3108_v61, %v2867_v52  ;;  %v2843_v37 = vld [vmem:[#allocation13] sm:$0xf]  ;;  %v3122_v52 = vld [vmem:[#allocation13 + $0xac] sm:$0xf]  ;;  %v2929_v61 = vld [vmem:[#allocation13 + $0xb4] sm:$0xf0] }
 0x3cf   :  { %v1076_v63 = vmul.f32 %v1053_v4, %v1032_v32  ;;  %v1073_v50 = vsel %vm1070_vm7, %v1072_v40, %v1068_v44  ;;  %v3105_v32 = vld [vmem:[#allocation13 + $0x20] sm:$0xf0] }
 0x3d1   :  { %v1077_v38 = vadd.f32 %v1076_v63, %v3813_v21  ;;  %v2856_v63 = vor.u32 %v3105_v32, %v2855_v30 }
 0x3d3   :  { %3214 = vtanh.f32 %v1077_v38 }
 0x3d9   :  { %v3215_v12 = vpop.eup %3214 }
 0x3da   :  { %v1079_v13 = vsub.f32 %v3940_v19, %v3215_v12 }
 0x3dc   :  { %v1080_v49 = vmul.f32 %v1079_v13, %v1073_v50  ;;  %v2844_v13 = vor.u32 %v3102_v43, %v2843_v37  ;;  %v2917_v37 = vld [vmem:[#allocation13 + $0x9c] sm:$0xf0]  ;;  %v2923_v43 = vld [vmem:[#allocation13 + $0x98] sm:$0xf] }
 0x3de   :  { %v3975_v48 = vadd.f32 %v3215_v12, %v1080_v49 }
 0x3e0   :  { %v1090_v21 = vpack.c.bf16 %v3975_v48, %v3975_v48 }
 0x3e2   :  { %1099 = vmatmul.bf16.vlgmr.msra.gmra.mxu1 %v1090_v21  ;;  %1112 = vmatmul.bf16.vlgmr.msra.gmra.mxu2 %v1090_v21 }
 0x3e3   :  { %1125 = vmatmul.bf16.vlgmr.msrb.gmra.mxu3 %v1090_v21  ;;  %1307 = vmatpush.bf16.msra.mxu1 %v3657_v10  ;;  %v2927_v10 = vld [vmem:[#allocation13 + $0xa8] sm:$0xf] }
 0x3e7   :  { %1308 = vmatpush.bf16.msra.mxu1 %v3663_v26  ;;  %v2928_v26 = vor.u32 %v3123_v23, %v2927_v10 }
 0x3e9   :  { %1576 = vmatpush.bf16.msra.mxu2 %v2928_v26 }
 0x3eb   :  { %1309 = vmatpush.bf16.msra.mxu1 %v3671_v41 }
 0x3ef   :  { %1310 = vmatpush.bf16.msra.mxu1 %v3677_v54 }
 0x3f3   :  { %1311 = vmatpush.bf16.msra.mxu1 %v3683_v1 }
 0x3f7   :  { %1312 = vmatpush.bf16.msra.mxu1 %v3691_v15  ;;  %v2915_v15 = vld [vmem:[#allocation13 + $0x90] sm:$0xf] }
 0x3f8   :  { %v2916_v14 = vor.u32 %v3120_v47, %v2915_v15 }
 0x3fa   :  { %1577 = vmatpush.bf16.msra.mxu2 %v2916_v14 }
 0x3fb   :  { %1313 = vmatpush.bf16.msra.mxu1 %v3698_v27 }
 0x3ff   :  { %1314 = vmatpush.bf16.msra.mxu1 %v3706_v35 }
 0x45f   :  { %v1100_v7 = vpop.f32.mrf.mxu1 }
 0x460   :  { %v1101_v11 = vadd.f32 %v1100_v7, %v3778_v45 }
 0x462   :  { %v1130_v17 = vadd.f32 %v1101_v11, %v3790_v3  ;;  %v3117_v3 = vld [vmem:[#allocation13 + $0x80] sm:$0xf0]  ;;  %v1170_v11 = vadd.f32 %v3799_v22, %v3815_v9 }
 0x463   :  { %v2904_v42 = vor.u32 %v3117_v3, %v2903_v28  ;;  %v3023_v3 = vld [vmem:[#allocation14 + $0xa8] sm:$0xf] }
 0x464   :  { %v2835_v34 = vmul.f32 -1.442695, %v1130_v17 }
 0x465   :  { %v1113_v41 = vpop.f32.mrf.mxu2  ;;  %1578 = vmatpush.bf16.msra.mxu2 %v2904_v42  ;;  %v3147_v42 = vld [vmem:[#allocation14 + $0xb0] sm:$0xf0] }
 0x466   :  { %3216 = vpow2.f32 %v2835_v34  ;;  %v1114_v54 = vadd.f32 %v1113_v41, %v3787_v57  ;;  %v1126_v1 = vpop.f32.mrf.mxu3  ;;  %v4014_v55 = vor.u32 %v3147_v42, %v3023_v3  ;;  %v2893_v3 = vld [vmem:[#allocation13 + $0x6c] sm:$0xf0]  ;;  %v2899_v42 = vld [vmem:[#allocation13 + $0x68] sm:$0xf] }
 0x467   :  { %v1102_v27 = vpop.f32.mrf.mxu1  ;;  %v1127_v49 = vadd.f32 %v1126_v1, %v3806_v39 }
 0x468   :  { %v1150_v35 = vadd.f32 %v1114_v54, %v3854_v62 }
 0x469   :  { %1579 = vmatpush.bf16.msra.mxu2 %v2892_v36 }
 0x46a   :  { %v2836_v58 = vmul.f32 -1.442695, %v1150_v35  ;;  %v4001_v35 = vpack.c.bf16 %v3869_v51, %v3817_v46  ;;  %v3011_v46 = vld [vmem:[#allocation14 + $0x90] sm:$0xf]  ;;  %v3144_v51 = vld [vmem:[#allocation14 + $0x98] sm:$0xf0] }
 0x46b   :  { %v4017_v8 = vor.u32 %v3144_v51, %v3011_v46  ;;  %v3115_v51 = vld [vmem:[#allocation13 + $0x70] sm:$0xf0] }
 0x46c   :  { %v3217_v2 = vpop.eup %3216  ;;  %3218 = vpow2.f32 %v2836_v58  ;;  %v4006_v58 = vpack.c.bf16 %v3940_v19, %v3904_v53  ;;  %v2999_v53 = vld [vmem:[#allocation14 + $0x78] sm:$0xf]  ;;  %v3141_v19 = vld [vmem:[#allocation14 + $0x80] sm:$0xf0] }
 0x46d   :  { %v1134_v16 = vadd.f32 1.0, %v3217_v2  ;;  %v1115_v29 = vpop.f32.mrf.mxu2  ;;  %1580 = vmatpush.bf16.msra.mxu2 %v2880_v56  ;;  %v4020_v2 = vor.u32 %v3141_v19, %v2999_v53  ;;  %v2900_v53 = vor.u32 %v3115_v51, %v2899_v42  ;;  %v2939_v19 = vld [vmem:[#allocation14] sm:$0xf] }
 0x46e   :  { %v1128_v59 = vpop.f32.mrf.mxu3 }
 0x46f   :  { %3220 = vrcp.f32 %v1134_v16  ;;  %v1146_v4 = vand.u32 2147483648, %v1134_v16  ;;  %v1144_v38 = vand.u32 2147483647, %v1134_v16  ;;  %vm1140_vm9 = vweird.f32 %v1134_v16  ;;  %v2987_v59 = vld [vmem:[#allocation14 + $0x60] sm:$0xf] }
 0x471   :  { %1581 = vmatpush.bf16.msra.mxu2 %v2868_v24  ;;  %v1147_v40 = vor.u32 1.1754944e-38, %v1146_v4  ;;  %vm1145_vm11 = vcmp.eq.f32.partialorder %v1144_v38, 8.507059e+37  ;;  %v3124_v24 = vld [vmem:[#allocation13 + $0xb8] sm:$0xf0]  ;;  %v2975_v4 = vld [vmem:[#allocation14 + $0x48] sm:$0xf] }
 0x472   :  { %v3219_v60 = vpop.eup %3218  ;;  %v3119_v38 = vld [vmem:[#allocation13 + $0x94] sm:$0xf] }
 0x473   :  { %v1154_v62 = vadd.f32 1.0, %v3219_v60  ;;  %v3138_v60 = vld [vmem:[#allocation14 + $0x68] sm:$0xf0] }
 0x474   :  { %v4027_v56 = vor.u32 %v3138_v60, %v2987_v59  ;;  %v2887_v60 = vld [vmem:[#allocation13 + $0x50] sm:$0xf] }
 0x475   :  { %v3221_v31 = vpop.eup %3220  ;;  %3222 = vrcp.f32 %v1154_v62  ;;  %1582 = vmatpush.bf16.msra.mxu2 %v2856_v63  ;;  %v1166_v34 = vand.u32 2147483648, %v1154_v62  ;;  %vm1160_vm13 = vweird.f32 %v1154_v62  ;;  %v1164_v41 = vand.u32 2147483647, %v1154_v62  ;;  %v3135_v63 = vld [vmem:[#allocation14 + $0x50] sm:$0xf0] }
 0x476   :  { %v1136_v5 = vmul.f32 %v3221_v31, %v1134_v16  ;;  %vm1141_vm8 = vweird.f32 %v3221_v31 }
 0x477   :  { %vm1142_vm10 = vmor %vm1140_vm9, %vm1141_vm8  ;;  %v1167_v1 = vor.u32 1.1754944e-38, %v1166_v34  ;;  %vm1165_vm15 = vcmp.eq.f32.partialorder %v1164_v41, 8.507059e+37 }
 0x478   :  { %v1137_v0 = vsub.f32 1.0, %v1136_v5  ;;  %v2932_v5 = vor.u32 %v3122_v52, %v2929_v61 }
 0x479   :  { %1583 = vmatpush.bf16.msra.mxu2 %v2844_v13 }
 0x47a   :  { %v1138_v33 = vmul.f32 %v3221_v31, %v1137_v0  ;;  %1605 = vmatpush.bf16.msrb.mxu3 %v2932_v5  ;;  %v2869_v5 = vld [vmem:[#allocation13 + $0x3c] sm:$0xf0] }
 0x47b   :  { %v3223_v20 = vpop.eup %3222 }
 0x47c   :  { %v1156_v44 = vmul.f32 %v3223_v20, %v1154_v62  ;;  %v1139_v12 = vadd.f32 %v3221_v31, %v1138_v33  ;;  %vm1161_vm12 = vweird.f32 %v3223_v20 }
 0x47d   :  { %vm1162_vm14 = vmor %vm1160_vm13, %vm1161_vm12 }
 0x47e   :  { %v1157_v50 = vsub.f32 1.0, %v1156_v44  ;;  %v1143_v21 = vsel %vm1142_vm10, %v3221_v31, %v1139_v12  ;;  %v2935_v31 = vld [vmem:[#allocation13 + $0xb0] sm:$0xf]  ;;  %v2920_v12 = vor.u32 %v3119_v38, %v2917_v37 }
 0x47f   :  { %v1148_v7 = vsel %vm1145_vm11, %v1147_v40, %v1143_v21  ;;  %v2936_v0 = vor.u32 %v3124_v24, %v2935_v31  ;;  %v3121_v40 = vld [vmem:[#allocation13 + $0xa0] sm:$0xf0]  ;;  %v3107_v31 = vld [vmem:[#allocation13 + $0x34] sm:$0xf]  ;;  %v2875_v24 = vld [vmem:[#allocation13 + $0x38] sm:$0xf] }
 0x480   :  { %v1171_v17 = vmul.f32 %v1148_v7, %v1127_v49  ;;  %v1158_v10 = vmul.f32 %v3223_v20, %v1157_v50  ;;  %v2924_v13 = vor.u32 %v3121_v40, %v2923_v43  ;;  %1606 = vmatpush.bf16.msrb.mxu3 %v2920_v12  ;;  %v2963_v50 = vld [vmem:[#allocation14 + $0x30] sm:$0xf]  ;;  %v3132_v49 = vld [vmem:[#allocation14 + $0x38] sm:$0xf0]  ;;  %v2863_v40 = vld [vmem:[#allocation13 + $0x20] sm:$0xf] }
 0x481   :  { %v4035_v21 = vor.u32 %v3132_v49, %v2963_v50  ;;  %v3116_v7 = vld [vmem:[#allocation13 + $0x7c] sm:$0xf] }
 0x482   :  { %v1172_v23 = vadd.f32 %v1171_v17, %v1170_v11  ;;  %v1159_v26 = vadd.f32 %v3223_v20, %v1158_v10  ;;  %v2905_v11 = vld [vmem:[#allocation13 + $0x84] sm:$0xf0]  ;;  %v2911_v17 = vld [vmem:[#allocation13 + $0x80] sm:$0xf]  ;;  %v3104_v43 = vld [vmem:[#allocation13 + $0x1c] sm:$0xf] }
 0x483   :  { %v2908_v10 = vor.u32 %v3116_v7, %v2905_v11 }
 0x484   :  { %3224 = vtanh.f32 %v1172_v23  ;;  %v1163_v54 = vsel %vm1162_vm14, %v3223_v20, %v1159_v26  ;;  %v3118_v23 = vld [vmem:[#allocation13 + $0x88] sm:$0xf0] }
 0x485   :  { %v1168_v27 = vsel %vm1165_vm15, %v1167_v1, %v1163_v54  ;;  %v2912_v34 = vor.u32 %v3118_v23, %v2911_v17  ;;  %1607 = vmatpush.bf16.msrb.mxu3 %v2908_v10  ;;  %v3129_v1 = vld [vmem:[#allocation14 + $0x20] sm:$0xf0] }
 0x486   :  { %v3101_v23 = vld [vmem:[#allocation13 + $0x4] sm:$0xf] }
 0x48a   :  { %v3225_v15 = vpop.eup %3224 }
 0x48b   :  { %v1174_v47 = vsub.f32 %v3975_v48, %v3225_v15 }
 0x48d   :  { %v1175_v14 = vmul.f32 %v1174_v47, %v1168_v27 }
 0x48f   :  { %v3995_v22 = vadd.f32 %v3225_v15, %v1175_v14  ;;  %v2951_v15 = vld [vmem:[#allocation14 + $0x18] sm:$0xf] }
 0x490   :  { %v4040_v14 = vor.u32 %v3129_v1, %v2951_v15  ;;  %v3103_v1 = vld [vmem:[#allocation13 + $0x10] sm:$0xf0] }
 0x491   :  { %v1185_v9 = vpack.c.bf16 %v3995_v22, %v3995_v22  ;;  %v4011_v28 = vpack.c.bf16 %v3995_v22, %v3975_v48 }
 0x493   :  { %1194 = vmatmul.bf16.vlgmr.msrb.gmra.mxu0 %v1185_v9  ;;  %1207 = vmatmul.bf16.vlgmr.msrb.gmra.mxu1 %v1185_v9 }
 0x494   :  { %1220 = vmatmul.bf16.vlgmr.msrb.gmra.mxu2 %v1185_v9  ;;  %1831 = vmatpush.bf16.msrb.mxu1 %v4014_v55  ;;  %v3113_v9 = vld [vmem:[#allocation13 + $0x64] sm:$0xf] }
 0x495   :  { %1634 = vmatpush.bf16.msrb.mxu0 %v2936_v0  ;;  %v2896_v46 = vor.u32 %v3113_v9, %v2893_v3 }
 0x497   :  { %1608 = vmatpush.bf16.msrb.mxu3 %v2896_v46 }
 0x498   :  { %1832 = vmatpush.bf16.msrb.mxu1 %v4017_v8 }
 0x499   :  { %1635 = vmatpush.bf16.msrb.mxu0 %v2924_v13  ;;  %v3106_v13 = vld [vmem:[#allocation13 + $0x28] sm:$0xf0] }
 0x49a   :  { %v2864_v50 = vor.u32 %v3106_v13, %v2863_v40  ;;  %v2953_v40 = vld [vmem:[#allocation14 + $0x24] sm:$0xf0] }
 0x49c   :  { %1833 = vmatpush.bf16.msrb.mxu1 %v4020_v2 }
 0x49d   :  { %1636 = vmatpush.bf16.msrb.mxu0 %v2912_v34  ;;  %v2851_v34 = vld [vmem:[#allocation13 + $0x8] sm:$0xf] }
 0x49e   :  { %v2852_v9 = vor.u32 %v3103_v1, %v2851_v34  ;;  %v3019_v34 = vld [vmem:[#allocation14 + $0x98] sm:$0xf] }
 0x4a0   :  { %1834 = vmatpush.bf16.msrb.mxu1 %v4027_v56 }
 0x4a1   :  { %1637 = vmatpush.bf16.msrb.mxu0 %v2900_v53 }
 0x4a4   :  { %1584 = vmatmul.bf16.vlgmr.msra.gmra.mxu2 %v4001_v35 }
 0x4b4   :  { %1589 = vmatmul.bf16.gmra.mxu2 %v4006_v58 }
 0x4c4   :  { %1594 = vmatmul.bf16.gmra.mxu2 %v4011_v28 }
 0x510   :  { %v1195_v48 = vpop.f32.mrf.mxu0  ;;  %v1208_v16 = vpop.f32.mrf.mxu1 }
 0x511   :  { %v1196_v29 = vadd.f32 %v1195_v48, %v3778_v45  ;;  %v1209_v36 = vadd.f32 %v1208_v16, %v3787_v57  ;;  %v3126_v48 = vld [vmem:[#allocation14 + $0x8] sm:$0xf0] }
 0x512   :  { %v4044_v16 = vor.u32 %v3126_v48, %v2939_v19 }
 0x513   :  { %v1225_v6 = vadd.f32 %v1196_v29, %v3794_v18  ;;  %v1245_v62 = vadd.f32 %v1209_v36, %v4476_v25  ;;  %v4032_v18 = vor.u32 %v3135_v63, %v2975_v4  ;;  %v3110_v29 = vld [vmem:[#allocation13 + $0x4c] sm:$0xf]  ;;  %v2881_v36 = vld [vmem:[#allocation13 + $0x54] sm:$0xf0] }
 0x514   :  { %v2884_v59 = vor.u32 %v3110_v29, %v2881_v36 }
 0x515   :  { %v2837_v30 = vmul.f32 -1.442695, %v1225_v6  ;;  %v2838_v32 = vmul.f32 -1.442695, %v1245_v62  ;;  %1835 = vmatpush.bf16.msrb.mxu1 %v4032_v18  ;;  %v3112_v6 = vld [vmem:[#allocation13 + $0x58] sm:$0xf0] }
 0x516   :  { %v2888_v62 = vor.u32 %v3112_v6, %v2887_v60  ;;  %1609 = vmatpush.bf16.msrb.mxu3 %v2884_v59  ;;  %v3146_v60 = vld [vmem:[#allocation14 + $0xac] sm:$0xf]  ;;  %v3025_v6 = vld [vmem:[#allocation14 + $0xb4] sm:$0xf0] }
 0x517   :  { %3226 = vpow2.f32 %v2837_v30  ;;  %v4030_v33 = vpop.f32.mrf.mxu2  ;;  %v2872_v30 = vor.u32 %v3107_v31, %v2869_v5  ;;  %v3143_v31 = vld [vmem:[#allocation14 + $0x94] sm:$0xf]  ;;  %v3001_v5 = vld [vmem:[#allocation14 + $0x84] sm:$0xf0] }
 0x518   :  { %3228 = vpow2.f32 %v2838_v32  ;;  %v1197_v20 = vpop.f32.mrf.mxu0  ;;  %v1210_v44 = vpop.f32.mrf.mxu1  ;;  %1638 = vmatpush.bf16.msrb.mxu0 %v2888_v62  ;;  %v3109_v32 = vld [vmem:[#allocation13 + $0x40] sm:$0xf0]  ;;  %v1222_v17 = vadd.f32 %v4030_v33, %v3806_v39 }
 0x519   :  { %1836 = vmatpush.bf16.msrb.mxu1 %v4035_v21  ;;  %v2876_v63 = vor.u32 %v3109_v32, %v2875_v24  ;;  %v2857_v20 = vld [vmem:[#allocation13 + $0x24] sm:$0xf0]  ;;  %v2989_v32 = vld [vmem:[#allocation14 + $0x6c] sm:$0xf0] }
 0x51a   :  { %1610 = vmatpush.bf16.msrb.mxu3 %v2872_v30  ;;  %v2860_v12 = vor.u32 %v3104_v43, %v2857_v20  ;;  %v3137_v30 = vld [vmem:[#allocation14 + $0x64] sm:$0xf]  ;;  %v2965_v43 = vld [vmem:[#allocation14 + $0x3c] sm:$0xf0]  ;;  %v4478_v20 = vmov 0.0|0.0  }
 0x51c   :  { %1639 = vmatpush.bf16.msrb.mxu0 %v2876_v63  ;;  %v2977_v63 = vld [vmem:[#allocation14 + $0x54] sm:$0xf0] }
 0x51d   :  { %v3227_v26 = vpop.eup %3226  ;;  %1837 = vmatpush.bf16.msrb.mxu1 %v4040_v14 }
 0x51e   :  { %v3229_v41 = vpop.eup %3228  ;;  %v1229_v54 = vadd.f32 1.0, %v3227_v26  ;;  %1611 = vmatpush.bf16.msrb.mxu3 %v2860_v12  ;;  %v2845_v26 = vld [vmem:[#allocation13 + $0xc] sm:$0xf0]  ;;  %v3128_v12 = vld [vmem:[#allocation14 + $0x1c] sm:$0xf] }
 0x51f   :  { %v4038_v47 = vadd.f32 1.0, %v3229_v41  ;;  %v1223_v27 = vpop.f32.mrf.mxu2  ;;  %v2848_v15 = vor.u32 %v3101_v23, %v2845_v26  ;;  %v4091_v13 = vor.u32 %v3128_v12, %v2953_v40  ;;  %v3031_v23 = vld [vmem:[#allocation14 + $0xb0] sm:$0xf]  ;;  %v3148_v26 = vld [vmem:[#allocation14 + $0xb8] sm:$0xf0] }
 0x520   :  { %3230 = vrcp.f32 %v1229_v54  ;;  %v1239_v4 = vand.u32 2147483647, %v1229_v54  ;;  %v1241_v37 = vand.u32 2147483648, %v1229_v54  ;;  %vm1235_vm1 = vweird.f32 %v1229_v54  ;;  %1640 = vmatpush.bf16.msrb.mxu0 %v2864_v50  ;;  %v2941_v50 = vld [vmem:[#allocation14 + $0xc] sm:$0xf0] }
 0x521   :  { %3232 = vrcp.f32 %v4038_v47  ;;  %1838 = vmatpush.bf16.msrb.mxu1 %v4044_v16  ;;  %v1261_v33 = vand.u32 2147483648, %v4038_v47  ;;  %vm1255_vm5 = vweird.f32 %v4038_v47  ;;  %v1259_v51 = vand.u32 2147483647, %v4038_v47  ;;  %v2959_v40 = vld [vmem:[#allocation14 + $0x20] sm:$0xf] }
 0x522   :  { %vm1240_vm3 = vcmp.eq.f32.partialorder %v1239_v4, 8.507059e+37  ;;  %v1242_v11 = vor.u32 1.1754944e-38, %v1241_v37  ;;  %1612 = vmatpush.bf16.msrb.mxu3 %v2848_v15  ;;  %v3134_v4 = vld [vmem:[#allocation14 + $0x4c] sm:$0xf]  ;;  %v3131_v37 = vld [vmem:[#allocation14 + $0x34] sm:$0xf] }
 0x523   :  { %v1262_v48 = vor.u32 1.1754944e-38, %v1261_v33  ;;  %vm1260_vm7 = vcmp.eq.f32.partialorder %v1259_v51, 8.507059e+37  ;;  %v3145_v15 = vld [vmem:[#allocation14 + $0xa0] sm:$0xf0] }
 0x524   :  { %1641 = vmatpush.bf16.msrb.mxu0 %v2852_v9  ;;  %v3007_v9 = vld [vmem:[#allocation14 + $0x80] sm:$0xf] }
 0x526   :  { %v3231_v25 = vpop.eup %3230 }
 0x527   :  { %v3233_v52 = vpop.eup %3232  ;;  %v1231_v61 = vmul.f32 %v3231_v25, %v1229_v54  ;;  %vm1236_vm0 = vweird.f32 %v3231_v25  ;;  %v4477_v54 = vld [vmem:[#allocation26_spill] sm:$0xff] }
 0x528   :  { %v1251_v38 = vmul.f32 %v3233_v52, %v4038_v47  ;;  %vm1237_vm2 = vmor %vm1235_vm1, %vm1236_vm0  ;;  %vm1256_vm4 = vweird.f32 %v3233_v52  ;;  %v3013_v47 = vld [vmem:[#allocation14 + $0x9c] sm:$0xf0] }
 0x529   :  { %v1232_v0 = vsub.f32 1.0, %v1231_v61  ;;  %vm1257_vm6 = vmor %vm1255_vm5, %vm1256_vm4  ;;  %v4059_v61 = vor.u32 %v3146_v60, %v3025_v6  ;;  %v2995_v60 = vld [vmem:[#allocation14 + $0x68] sm:$0xf]  ;;  %v3139_v6 = vld [vmem:[#allocation14 + $0x70] sm:$0xf0] }
 0x52a   :  { %v1252_v7 = vsub.f32 1.0, %v1251_v38  ;;  %v4078_v38 = vor.u32 %v3134_v4, %v2977_v63  ;;  %v3133_v4 = vld [vmem:[#allocation14 + $0x40] sm:$0xf0] }
 0x52b   :  { %v1233_v44 = vmul.f32 %v3231_v25, %v1232_v0  ;;  %v4073_v0 = vor.u32 %v3137_v30, %v2989_v32  ;;  %v2971_v32 = vld [vmem:[#allocation14 + $0x38] sm:$0xf] }
 0x52c   :  { %v1253_v3 = vmul.f32 %v3233_v52, %v1252_v7 }
 0x52d   :  { %v1234_v49 = vadd.f32 %v3231_v25, %v1233_v44  ;;  %v4086_v44 = vor.u32 %v3131_v37, %v2965_v43  ;;  %v4149_v43 = vor.u32 %v3133_v4, %v2971_v32 }
 0x52e   :  { %v1254_v46 = vadd.f32 %v3233_v52, %v1253_v3  ;;  %v3142_v3 = vld [vmem:[#allocation14 + $0x88] sm:$0xf0] }
 0x52f   :  { %v1238_v10 = vsel %vm1237_vm2, %v3231_v25, %v1234_v49  ;;  %v4129_v51 = vor.u32 %v3142_v3, %v3007_v9 }
 0x530   :  { %v1243_v41 = vsel %vm1240_vm3, %v1242_v11, %v1238_v10  ;;  %v1258_v53 = vsel %vm1257_vm6, %v3233_v52, %v1254_v46  ;;  %v3140_v52 = vld [vmem:[#allocation14 + $0x7c] sm:$0xf] }
 0x531   :  { %v1266_v27 = vmul.f32 %v1243_v41, %v1222_v17  ;;  %v1263_v36 = vsel %vm1260_vm7, %v1262_v48, %v1258_v53  ;;  %v4068_v24 = vor.u32 %v3140_v52, %v3001_v5  ;;  %v4479_v17 = vld [vmem:[#allocation28_spill] sm:$0xff]  ;;  %v4119_v41 = vor.u32 %v3148_v26, %v3031_v23  ;;  %v3136_v52 = vld [vmem:[#allocation14 + $0x58] sm:$0xf0] }
 0x533   :  { %v1267_v42 = vadd.f32 %v1266_v27, %v4477_v54  ;;  %1857 = vmatpush.bf16.msrb.mxu2 %v4119_v41  ;;  %v4122_v27 = vor.u32 %v3145_v15, %v3019_v34  ;;  %v2947_v34 = vld [vmem:[#allocation14 + $0x8] sm:$0xf]  ;;  %v3127_v15 = vld [vmem:[#allocation14 + $0x10] sm:$0xf0] }
 0x535   :  { %3234 = vtanh.f32 %v1267_v42  ;;  %v4480_v42 = vld [vmem:[#allocation25_spill] sm:$0xff] }
 0x537   :  { %1858 = vmatpush.bf16.msrb.mxu2 %v4122_v27 }
 0x53b   :  { %v3235_v19 = vpop.eup %3234  ;;  %1859 = vmatpush.bf16.msrb.mxu2 %v4129_v51 }
 0x53c   :  { %v1269_v29 = vsub.f32 %v3995_v22, %v3235_v19  ;;  %v4063_v22 = vor.u32 %v3143_v31, %v3013_v47  ;;  %v2983_v47 = vld [vmem:[#allocation14 + $0x50] sm:$0xf] }
 0x53d   :  { %v4145_v5 = vor.u32 %v3136_v52, %v2983_v47 }
 0x53e   :  { %v1270_v59 = vmul.f32 %v1269_v29, %v1263_v36 }
 0x540   :  { %v4055_v25 = vadd.f32 %v3235_v19, %v1270_v59 }
 0x542   :  { %v1280_v62 = vpack.c.bf16 %v4055_v25, %v4055_v25 }
 0x544   :  { %1289 = vmatmul.bf16.vlgmr.msra.gmra.mxu3 %v1280_v62  ;;  %1302 = vmatmul.bf16.vlgmr.msra.gmra.mxu0 %v1280_v62 }
 0x545   :  { %1315 = vmatmul.bf16.vlgmr.msra.gmra.mxu1 %v1280_v62  ;;  %1922 = vmatpush.bf16.msra.mxu3 %v4014_v55  ;;  %v4141_v62 = vor.u32 %v3139_v6, %v2995_v60 }
 0x546   :  { %1844 = vmatpush.bf16.msra.mxu1 %v4059_v61  ;;  %1935 = vmatpush.bf16.msra.mxu0 %v4059_v61 }
 0x547   :  { %1860 = vmatpush.bf16.msrb.mxu2 %v4141_v62 }
 0x549   :  { %1923 = vmatpush.bf16.msra.mxu3 %v4017_v8 }
 0x54a   :  { %1845 = vmatpush.bf16.msra.mxu1 %v4063_v22  ;;  %1936 = vmatpush.bf16.msra.mxu0 %v4063_v22 }
 0x54b   :  { %1861 = vmatpush.bf16.msrb.mxu2 %v4145_v5 }
 0x54d   :  { %1924 = vmatpush.bf16.msra.mxu3 %v4020_v2 }
 0x54e   :  { %1846 = vmatpush.bf16.msra.mxu1 %v4068_v24  ;;  %1937 = vmatpush.bf16.msra.mxu0 %v4068_v24 }
 0x54f   :  { %1862 = vmatpush.bf16.msrb.mxu2 %v4149_v43 }
 0x551   :  { %1925 = vmatpush.bf16.msra.mxu3 %v4027_v56 }
 0x552   :  { %1847 = vmatpush.bf16.msra.mxu1 %v4073_v0  ;;  %1938 = vmatpush.bf16.msra.mxu0 %v4073_v0 }
 0x554   :  { %1613 = vmatmul.bf16.vlgmr.msrb.gmra.mxu3 %v4001_v35  ;;  %1642 = vmatmul.bf16.vlgmr.msrb.gmra.mxu0 %v4001_v35  ;;  %v3125_v35 = vld [vmem:[#allocation14 + $0x4] sm:$0xf] }
 0x555   :  { %1839 = vmatmul.bf16.vlgmr.msrb.gmra.mxu1 %v4478_v20  ;;  %1926 = vmatpush.bf16.msra.mxu3 %v4032_v18  ;;  %v4096_v49 = vor.u32 %v3125_v35, %v2941_v50  ;;  %v3130_v35 = vld [vmem:[#allocation14 + $0x28] sm:$0xf0] }
 0x556   :  { %1848 = vmatpush.bf16.msra.mxu1 %v4078_v38  ;;  %1939 = vmatpush.bf16.msra.mxu0 %v4078_v38  ;;  %v4157_v23 = vor.u32 %v3130_v35, %v2959_v40 }
 0x558   :  { %1863 = vmatpush.bf16.msrb.mxu2 %v4157_v23 }
 0x559   :  { %1927 = vmatpush.bf16.msra.mxu3 %v4035_v21 }
 0x55a   :  { %1849 = vmatpush.bf16.msra.mxu1 %v4086_v44  ;;  %1940 = vmatpush.bf16.msra.mxu0 %v4086_v44 }
 0x55d   :  { %1928 = vmatpush.bf16.msra.mxu3 %v4040_v14 }
 0x55e   :  { %1850 = vmatpush.bf16.msra.mxu1 %v4091_v13  ;;  %1941 = vmatpush.bf16.msra.mxu0 %v4091_v13 }
 0x561   :  { %1929 = vmatpush.bf16.msra.mxu3 %v4044_v16 }
 0x562   :  { %1851 = vmatpush.bf16.msra.mxu1 %v4096_v49  ;;  %1942 = vmatpush.bf16.msra.mxu0 %v4096_v49 }
 0x564   :  { %1618 = vmatmul.bf16.gmra.mxu3 %v4006_v58  ;;  %1647 = vmatmul.bf16.gmra.mxu0 %v4006_v58 }
 0x565   :  { %2027 = vmatpush.bf16.msrb.mxu3 %v4059_v61  ;;  %1852 = vmatmul.bf16.vlgmr.msra.gmra.mxu1 %v4478_v20 }
 0x566   :  { %1948 = vmatpush.bf16.msrb.mxu1 %v4119_v41  ;;  %2040 = vmatpush.bf16.msrb.mxu0 %v4119_v41 }
 0x569   :  { %2028 = vmatpush.bf16.msrb.mxu3 %v4063_v22 }
 0x56a   :  { %1949 = vmatpush.bf16.msrb.mxu1 %v4122_v27  ;;  %2041 = vmatpush.bf16.msrb.mxu0 %v4122_v27 }
 0x56d   :  { %2029 = vmatpush.bf16.msrb.mxu3 %v4068_v24 }
 0x56e   :  { %1950 = vmatpush.bf16.msrb.mxu1 %v4129_v51  ;;  %2042 = vmatpush.bf16.msrb.mxu0 %v4129_v51 }
 0x571   :  { %2030 = vmatpush.bf16.msrb.mxu3 %v4073_v0 }
 0x572   :  { %1951 = vmatpush.bf16.msrb.mxu1 %v4141_v62  ;;  %2043 = vmatpush.bf16.msrb.mxu0 %v4141_v62 }
 0x574   :  { %1623 = vmatmul.bf16.gmra.mxu3 %v4011_v28  ;;  %1652 = vmatmul.bf16.gmra.mxu0 %v4011_v28 }
 0x575   :  { %2031 = vmatpush.bf16.msrb.mxu3 %v4078_v38 }
 0x576   :  { %1952 = vmatpush.bf16.msrb.mxu1 %v4145_v5  ;;  %2044 = vmatpush.bf16.msrb.mxu0 %v4145_v5 }
 0x579   :  { %2032 = vmatpush.bf16.msrb.mxu3 %v4086_v44 }
 0x57a   :  { %1953 = vmatpush.bf16.msrb.mxu1 %v4149_v43  ;;  %2045 = vmatpush.bf16.msrb.mxu0 %v4149_v43 }
 0x57d   :  { %2033 = vmatpush.bf16.msrb.mxu3 %v4091_v13 }
 0x57e   :  { %1954 = vmatpush.bf16.msrb.mxu1 %v4157_v23  ;;  %2046 = vmatpush.bf16.msrb.mxu0 %v4157_v23 }
 0x581   :  { %2034 = vmatpush.bf16.msrb.mxu3 %v4096_v49 }
 0x5c1   :  { %v1303_v58 = vpop.f32.mrf.mxu0 }
 0x5c2   :  { %v1304_v7 = vadd.f32 %v1303_v58, %v3787_v57  ;;  %v4116_v11 = vpop.f32.mrf.mxu1 }
 0x5c4   :  { %v1340_v10 = vadd.f32 %v1304_v7, %v4479_v17 }
 0x5c6   :  { %v2840_v28 = vmul.f32 -1.442695, %v1340_v10 }
 0x5c7   :  { %v1290_v1 = vpop.f32.mrf.mxu3 }
 0x5c8   :  { %v1291_v57 = vadd.f32 %v1290_v1, %v3778_v45  ;;  %3236 = vpow2.f32 %v2840_v28 }
 0x5c9   :  { %v1305_v54 = vpop.f32.mrf.mxu0 }
 0x5ca   :  { %v1320_v46 = vadd.f32 %v1291_v57, %v4480_v42  ;;  %v1318_v33 = vpop.f32.mrf.mxu1  ;;  %v1317_v57 = vadd.f32 %v4116_v11, %v3806_v39  ;;  %v4164_v54 = vor.u32 %v3127_v15, %v2947_v34  ;;  %v3326_v42 = vld [vmem:[%s4462_s4] ss:$0 sm:$0xff] }
 0x5cc   :  { %v2839_v53 = vmul.f32 -1.442695, %v1320_v46  ;;  %v4481_v46 = vld [vmem:[#allocation29_spill] sm:$0xff]  ;;  %1864 = vmatpush.bf16.msrb.mxu2 %v4164_v54  ;;  %1955 = vmatpush.bf16.msrb.mxu1 %v4164_v54 }
 0x5cd   :  { %v1360_v33 = vadd.f32 %v3326_v42, %v4481_v46  ;;  %2047 = vmatpush.bf16.msrb.mxu0 %v4164_v54 }
 0x5ce   :  { %3238 = vpow2.f32 %v2839_v53  ;;  %v3237_v19 = vpop.eup %3236 }
 0x5cf   :  { %v1292_v45 = vpop.f32.mrf.mxu3  ;;  %v4138_v36 = vadd.f32 1.0, %v3237_v19 }
 0x5d0   :  { %2014 = vmatpush.bf16.msra.mxu2 %v4014_v55  ;;  %2106 = vmatpush.bf16.msra.mxu1 %v4014_v55 }
 0x5d1   :  { %vm1350_vm13 = vweird.f32 %v4138_v36 }
 0x5d2   :  { %v4136_v48 = vpop.f32.mrf.mxu1 }
 0x5d4   :  { %v3239_v29 = vpop.eup %3238  ;;  %2015 = vmatpush.bf16.msra.mxu2 %v4017_v8  ;;  %2107 = vmatpush.bf16.msra.mxu1 %v4017_v8 }
 0x5d5   :  { %v1324_v59 = vadd.f32 1.0, %v3239_v29  ;;  %v1356_v29 = vand.u32 2147483648, %v4138_v36 }
 0x5d7   :  { %3240 = vrcp.f32 %v1324_v59  ;;  %v1336_v58 = vand.u32 2147483648, %v1324_v59  ;;  %v1334_v17 = vand.u32 2147483647, %v1324_v59  ;;  %vm1330_vm9 = vweird.f32 %v1324_v59 }
 0x5d8   :  { %3242 = vrcp.f32 %v4138_v36  ;;  %2016 = vmatpush.bf16.msra.mxu2 %v4020_v2  ;;  %2108 = vmatpush.bf16.msra.mxu1 %v4020_v2 }
 0x5d9   :  { %v1337_v1 = vor.u32 1.1754944e-38, %v1336_v58  ;;  %vm1335_vm11 = vcmp.eq.f32.partialorder %v1334_v17, 8.507059e+37  ;;  %v1614_v17 = vpop.f32.mrf.mxu3 }
 0x5da   :  { %v1842_v31 = vpop.f32.mrf.mxu1 }
 0x5db   :  { %v1357_v31 = vor.u32 1.1754944e-38, %v1356_v29 }
 0x5dc   :  { %2017 = vmatpush.bf16.msra.mxu2 %v4027_v56  ;;  %2109 = vmatpush.bf16.msra.mxu1 %v4027_v56 }
 0x5dd   :  { %v3241_v30 = vpop.eup %3240 }
 0x5de   :  { %v3243_v63 = vpop.eup %3242  ;;  %v1326_v37 = vmul.f32 %v3241_v30, %v1324_v59  ;;  %vm1331_vm8 = vweird.f32 %v3241_v30  ;;  %v1354_v59 = vand.u32 2147483647, %v4138_v36 }
 0x5df   :  { %v1346_v50 = vmul.f32 %v3243_v63, %v4138_v36  ;;  %vm1332_vm10 = vmor %vm1330_vm9, %vm1331_vm8  ;;  %vm1351_vm12 = vweird.f32 %v3243_v63 }
 0x5e0   :  { %v1327_v12 = vsub.f32 1.0, %v1326_v37  ;;  %vm1352_vm14 = vmor %vm1350_vm13, %vm1351_vm12  ;;  %vm1355_vm15 = vcmp.eq.f32.partialorder %v1354_v59, 8.507059e+37  ;;  %2018 = vmatpush.bf16.msra.mxu2 %v4032_v18  ;;  %2110 = vmatpush.bf16.msra.mxu1 %v4032_v18 }
 0x5e1   :  { %v1347_v28 = vsub.f32 1.0, %v1346_v50 }
 0x5e2   :  { %v1328_v7 = vmul.f32 %v3241_v30, %v1327_v12  ;;  %v4154_v10 = vpop.f32.mrf.mxu1 }
 0x5e3   :  { %v1348_v45 = vmul.f32 %v3243_v63, %v1347_v28 }
 0x5e4   :  { %v1329_v26 = vadd.f32 %v3241_v30, %v1328_v7  ;;  %2019 = vmatpush.bf16.msra.mxu2 %v4035_v21  ;;  %2111 = vmatpush.bf16.msra.mxu1 %v4035_v21 }
 0x5e5   :  { %v1349_v19 = vadd.f32 %v3243_v63, %v1348_v45 }
 0x5e6   :  { %v1333_v9 = vsel %vm1332_vm10, %v3241_v30, %v1329_v26 }
 0x5e7   :  { %v1338_v3 = vsel %vm1335_vm11, %v1337_v1, %v1333_v9  ;;  %v1353_v60 = vsel %vm1352_vm14, %v3243_v63, %v1349_v19 }
 0x5e8   :  { %v1361_v53 = vmul.f32 %v1338_v3, %v1317_v57  ;;  %v1358_v52 = vsel %vm1355_vm15, %v1357_v31, %v1353_v60  ;;  %2020 = vmatpush.bf16.msra.mxu2 %v4040_v14  ;;  %2112 = vmatpush.bf16.msra.mxu1 %v4040_v14  ;;  %v4235_v60 = vld [vmem:[%s4466_s8] ss:$0 sm:$0xff]  ;;  %v1643_v31 = vpop.f32.mrf.mxu0 }
 0x5ea   :  { %v1362_v39 = vadd.f32 %v1361_v53, %v1360_v33  ;;  %v1855_v11 = vpop.f32.mrf.mxu1 }
 0x5ec   :  { %3244 = vtanh.f32 %v1362_v39  ;;  %2021 = vmatpush.bf16.msra.mxu2 %v4044_v16  ;;  %2113 = vmatpush.bf16.msra.mxu1 %v4044_v16 }
 0x5f2   :  { %v3245_v6 = vpop.eup %3244 }
 0x5f3   :  { %v1364_v47 = vsub.f32 %v4055_v25, %v3245_v6 }
 0x5f5   :  { %v1365_v30 = vmul.f32 %v1364_v47, %v1358_v52 }
 0x5f7   :  { %v1366_v32 = vadd.f32 %v3245_v6, %v1365_v30 }
 0x5f9   :  { %v1447_v36 = vpack.c.bf16 %v1366_v32, %v4055_v25  ;;  %2568 = vst [vmem:[#allocation17] sm:$0xff] %v1366_v32  ;;  %v1585_v25 = vpop.f32.mrf.mxu2 }
 0x5fb   :  { %1599 = vmatmul.bf16.gmra.mxu2 %v1447_v36  ;;  %1628 = vmatmul.bf16.gmra.mxu3 %v1447_v36 }
 0x5fc   :  { %1657 = vmatmul.bf16.gmra.mxu0 %v1447_v36 }
 0x601   :  { %v4205_v4 = vpop.f32.mrf.mxu2 }
 0x609   :  { %v4212_v37 = vpop.f32.mrf.mxu2 }
 0x60b   :  { %1865 = vmatmul.bf16.vlgmr.msrb.gmra.mxu2 %v4478_v20  ;;  %v1434_v20 = vld [vmem:[%s4465_s7] sm:$0x7] }
 0x60c   :  { %2119 = vmatpush.bf16.msrb.mxu2 %v4059_v61  ;;  %v4210_v63 = vperm.slane %v1434_v20, 0  ;;  %v4218_v58 = vperm.slane %v1434_v20, 1  ;;  %v4230_v29 = vperm.slane %v1434_v20, 2 }
 0x60e   :  { %v1841_v12 = vadd.f32 %v4136_v48, %v4210_v63  ;;  %v1854_v7 = vadd.f32 %v4154_v10, %v4218_v58 }
 0x610   :  { %2120 = vmatpush.bf16.msrb.mxu2 %v4063_v22  ;;  %v1870_v40 = vadd.f32 %v1841_v12, %v1585_v25  ;;  %v1890_v15 = vadd.f32 %v1854_v7, %v1614_v17  ;;  %v1910_v25 = vadd.f32 %v4235_v60, %v1643_v31 }
 0x611   :  { %v4216_v35 = vpop.f32.mrf.mxu2 }
 0x612   :  { %v3033_v50 = vmul.f32 -1.442695, %v1870_v40  ;;  %v3034_v1 = vmul.f32 -1.442695, %v1890_v15 }
 0x614   :  { %2121 = vmatpush.bf16.msrb.mxu2 %v4068_v24  ;;  %3246 = vpow2.f32 %v3033_v50 }
 0x618   :  { %2122 = vmatpush.bf16.msrb.mxu2 %v4073_v0 }
 0x619   :  { %v4222_v34 = vpop.f32.mrf.mxu2 }
 0x61a   :  { %v3247_v26 = vpop.eup %3246 }
 0x61b   :  { %v1874_v28 = vadd.f32 1.0, %v3247_v26 }
 0x61c   :  { %2123 = vmatpush.bf16.msrb.mxu2 %v4078_v38 }
 0x61d   :  { %3248 = vrcp.f32 %v1874_v28  ;;  %v1886_v19 = vand.u32 2147483648, %v1874_v28  ;;  %vm1880_vm1 = vweird.f32 %v1874_v28  ;;  %v1884_v59 = vand.u32 2147483647, %v1874_v28 }
 0x61e   :  { %3250 = vpow2.f32 %v3034_v1 }
 0x61f   :  { %v1887_v30 = vor.u32 1.1754944e-38, %v1886_v19  ;;  %vm1885_vm3 = vcmp.eq.f32.partialorder %v1884_v59, 8.507059e+37 }
 0x620   :  { %2124 = vmatpush.bf16.msrb.mxu2 %v4086_v44 }
 0x621   :  { %v4224_v48 = vpop.f32.mrf.mxu2 }
 0x623   :  { %v3249_v57 = vpop.eup %3248 }
 0x624   :  { %2125 = vmatpush.bf16.msrb.mxu2 %v4091_v13  ;;  %v3251_v9 = vpop.eup %3250  ;;  %v1876_v42 = vmul.f32 %v3249_v57, %v1874_v28  ;;  %vm1881_vm0 = vweird.f32 %v3249_v57 }
 0x625   :  { %v1894_v3 = vadd.f32 1.0, %v3251_v9  ;;  %vm1882_vm2 = vmor %vm1880_vm1, %vm1881_vm0 }
 0x626   :  { %v1877_v33 = vsub.f32 1.0, %v1876_v42 }
 0x627   :  { %3252 = vrcp.f32 %v1894_v3  ;;  %v1906_v17 = vand.u32 2147483648, %v1894_v3  ;;  %vm1900_vm5 = vweird.f32 %v1894_v3  ;;  %v1904_v26 = vand.u32 2147483647, %v1894_v3 }
 0x628   :  { %2126 = vmatpush.bf16.msrb.mxu2 %v4096_v49  ;;  %v1878_v10 = vmul.f32 %v3249_v57, %v1877_v33 }
 0x629   :  { %v1907_v1 = vor.u32 1.1754944e-38, %v1906_v17  ;;  %vm1905_vm7 = vcmp.eq.f32.partialorder %v1904_v26, 8.507059e+37 }
 0x62a   :  { %v1879_v39 = vadd.f32 %v3249_v57, %v1878_v10 }
 0x62c   :  { %v1883_v6 = vsel %vm1882_vm2, %v3249_v57, %v1879_v39 }
 0x62d   :  { %v3253_v45 = vpop.eup %3252  ;;  %v1888_v36 = vsel %vm1885_vm3, %v1887_v30, %v1883_v6 }
 0x62e   :  { %v1896_v11 = vmul.f32 %v3253_v45, %v1894_v3  ;;  %vm1901_vm4 = vweird.f32 %v3253_v45  ;;  %v1645_v3 = vpop.f32.mrf.mxu0 }
 0x62f   :  { %vm1902_vm6 = vmor %vm1900_vm5, %vm1901_vm4 }
 0x630   :  { %v1897_v47 = vsub.f32 1.0, %v1896_v11 }
 0x632   :  { %v1898_v12 = vmul.f32 %v3253_v45, %v1897_v47 }
 0x634   :  { %v1899_v7 = vadd.f32 %v3253_v45, %v1898_v12 }
 0x636   :  { %v1903_v15 = vsel %vm1902_vm6, %v3253_v45, %v1899_v7  ;;  %v1616_v45 = vpop.f32.mrf.mxu3  ;;  %v4268_v39 = vpop.f32.mrf.mxu0 }
 0x637   :  { %v1908_v9 = vsel %vm1905_vm7, %v1907_v1, %v1903_v15 }
 0x63e   :  { %v4270_v11 = vpop.f32.mrf.mxu3  ;;  %v4272_v19 = vpop.f32.mrf.mxu0 }
 0x646   :  { %v4274_v59 = vpop.f32.mrf.mxu3  ;;  %v4276_v6 = vpop.f32.mrf.mxu0 }
 0x64e   :  { %v4278_v31 = vpop.f32.mrf.mxu3  ;;  %v4280_v47 = vpop.f32.mrf.mxu0 }
 0x679   :  { %v4284_v30 = vpop.f32.mrf.mxu0 }
 0x67a   :  { %4483 = vst [vmem:[#allocation26_spill] sm:$0xff] %v4284_v30 }
 0x67e   :  { %v4226_v46 = vpop.f32.mrf.mxu2 }
 0x686   :  { %v4228_v53 = vpop.f32.mrf.mxu2 }
 0x687   :  { %4482 = vst [vmem:[#allocation27_spill] sm:$0xff] %v4228_v53 }
 0x68e   :  { %v1866_v52 = vpop.f32.mrf.mxu2 }
 0x68f   :  { %v1867_v32 = vadd.f32 %v1866_v52, %v4230_v29  ;;  %v4282_v52 = vpop.f32.mrf.mxu3 }
 0x691   :  { %v1911_v20 = vmul.f32 %v1888_v36, %v1867_v32  ;;  %v4288_v36 = vpop.f32.mrf.mxu0 }
 0x692   :  { %4485 = vst [vmem:[#allocation25_spill] sm:$0xff] %v4288_v36 }
 0x693   :  { %v1912_v40 = vadd.f32 %v1911_v20, %v1910_v25 }
 0x695   :  { %3254 = vtanh.f32 %v1912_v40 }
 0x696   :  { %v1868_v50 = vpop.f32.mrf.mxu2 }
 0x697   :  { %v4286_v32 = vpop.f32.mrf.mxu3 }
 0x698   :  { %4484 = vst [vmem:[#allocation28_spill] sm:$0xff] %v4286_v32 }
 0x69b   :  { %v3255_v28 = vpop.eup %3254 }
 0x69c   :  { %v1914_v57 = vsub.f32 0.0, %v3255_v28 }
 0x69e   :  { %v1915_v42 = vmul.f32 %v1914_v57, %v1908_v9 }
 0x69f   :  { %v4290_v25 = vpop.f32.mrf.mxu3 }
 0x6a0   :  { %v4239_v33 = vadd.f32 %v3255_v28, %v1915_v42  ;;  %4486 = vst [vmem:[#allocation29_spill] sm:$0xff] %v4290_v25 }
 0x6a2   :  { %1917 = vst [vmem:[#allocation16] sm:$0xff] %v4239_v33  ;;  %v1921_v10 = vpack.c.bf16 %v4239_v33, %v4239_v33 }
 0x6a4   :  { %1930 = vmatmul.bf16.vlgmr.msra.gmra.mxu3 %v1921_v10  ;;  %1943 = vmatmul.bf16.vlgmr.msra.gmra.mxu0 %v1921_v10 }
 0x6a5   :  { %1956 = vmatmul.bf16.vlgmr.msrb.gmra.mxu1 %v1921_v10  ;;  %2132 = vmatpush.bf16.msra.mxu3 %v4119_v41 }
 0x6a6   :  { %2198 = vmatpush.bf16.msra.mxu0 %v4014_v55  ;;  %2211 = vmatpush.bf16.msrb.mxu1 %v4059_v61 }
 0x6a9   :  { %2133 = vmatpush.bf16.msra.mxu3 %v4122_v27 }
 0x6aa   :  { %2199 = vmatpush.bf16.msra.mxu0 %v4017_v8  ;;  %2212 = vmatpush.bf16.msrb.mxu1 %v4063_v22 }
 0x6ad   :  { %2134 = vmatpush.bf16.msra.mxu3 %v4129_v51 }
 0x6ae   :  { %2200 = vmatpush.bf16.msra.mxu0 %v4020_v2  ;;  %2213 = vmatpush.bf16.msrb.mxu1 %v4068_v24 }
 0x6b1   :  { %2135 = vmatpush.bf16.msra.mxu3 %v4141_v62 }
 0x6b2   :  { %2201 = vmatpush.bf16.msra.mxu0 %v4027_v56  ;;  %2214 = vmatpush.bf16.msrb.mxu1 %v4073_v0 }
 0x6b5   :  { %2136 = vmatpush.bf16.msra.mxu3 %v4145_v5 }
 0x6b6   :  { %2202 = vmatpush.bf16.msra.mxu0 %v4032_v18  ;;  %2215 = vmatpush.bf16.msrb.mxu1 %v4078_v38 }
 0x6b9   :  { %2137 = vmatpush.bf16.msra.mxu3 %v4149_v43 }
 0x6ba   :  { %2203 = vmatpush.bf16.msra.mxu0 %v4035_v21  ;;  %2216 = vmatpush.bf16.msrb.mxu1 %v4086_v44 }
 0x6bd   :  { %2138 = vmatpush.bf16.msra.mxu3 %v4157_v23 }
 0x6be   :  { %2204 = vmatpush.bf16.msra.mxu0 %v4040_v14  ;;  %2217 = vmatpush.bf16.msrb.mxu1 %v4091_v13 }
 0x6c1   :  { %2139 = vmatpush.bf16.msra.mxu3 %v4164_v54 }
 0x6c2   :  { %2205 = vmatpush.bf16.msra.mxu0 %v4044_v16  ;;  %2218 = vmatpush.bf16.msrb.mxu1 %v4096_v49 }
 0x721   :  { %v1944_v20 = vpop.f32.mrf.mxu0 }
 0x722   :  { %v1945_v12 = vadd.f32 %v1944_v20, %v4218_v58  ;;  %v1957_v40 = vpop.f32.mrf.mxu1 }
 0x724   :  { %v1981_v50 = vadd.f32 %v1945_v12, %v1616_v45 }
 0x726   :  { %v3036_v7 = vmul.f32 -1.442695, %v1981_v50 }
 0x727   :  { %v1931_v17 = vpop.f32.mrf.mxu3 }
 0x728   :  { %v1932_v26 = vadd.f32 %v1931_v17, %v4210_v63  ;;  %3256 = vpow2.f32 %v3036_v7 }
 0x729   :  { %v1946_v15 = vpop.f32.mrf.mxu0 }
 0x72a   :  { %v1961_v28 = vadd.f32 %v1932_v26, %v4205_v4  ;;  %v1959_v1 = vpop.f32.mrf.mxu1 }
 0x72b   :  { %v1958_v1 = vadd.f32 %v1957_v40, %v4230_v29 }
 0x72c   :  { %v3035_v57 = vmul.f32 -1.442695, %v1961_v28 }
 0x72e   :  { %3258 = vpow2.f32 %v3035_v57  ;;  %v3257_v42 = vpop.eup %3256 }
 0x72f   :  { %v1933_v9 = vpop.f32.mrf.mxu3  ;;  %v1985_v36 = vadd.f32 1.0, %v3257_v42  ;;  %v2001_v42 = vadd.f32 %v4235_v60, %v1645_v3 }
 0x731   :  { %vm1991_vm13 = vweird.f32 %v1985_v36 }
 0x734   :  { %v3259_v10 = vpop.eup %3258 }
 0x735   :  { %v1965_v25 = vadd.f32 1.0, %v3259_v10 }
 0x737   :  { %3260 = vrcp.f32 %v1965_v25  ;;  %v1977_v17 = vand.u32 2147483648, %v1965_v25  ;;  %v1975_v4 = vand.u32 2147483647, %v1965_v25  ;;  %vm1971_vm9 = vweird.f32 %v1965_v25 }
 0x738   :  { %3262 = vrcp.f32 %v1985_v36 }
 0x739   :  { %v1978_v28 = vor.u32 1.1754944e-38, %v1977_v17  ;;  %vm1976_vm11 = vcmp.eq.f32.partialorder %v1975_v4, 8.507059e+37 }
 0x73d   :  { %v3261_v20 = vpop.eup %3260 }
 0x73e   :  { %v3263_v45 = vpop.eup %3262  ;;  %v1967_v12 = vmul.f32 %v3261_v20, %v1965_v25  ;;  %vm1972_vm8 = vweird.f32 %v3261_v20 }
 0x73f   :  { %v1987_v53 = vmul.f32 %v3263_v45, %v1985_v36  ;;  %vm1973_vm10 = vmor %vm1971_vm9, %vm1972_vm8  ;;  %vm1992_vm12 = vweird.f32 %v3263_v45 }
 0x740   :  { %v1968_v50 = vsub.f32 1.0, %v1967_v12  ;;  %vm1993_vm14 = vmor %vm1991_vm13, %vm1992_vm12 }
 0x741   :  { %v1988_v7 = vsub.f32 1.0, %v1987_v53 }
 0x742   :  { %v1969_v15 = vmul.f32 %v3261_v20, %v1968_v50  ;;  %v1997_v50 = vand.u32 2147483648, %v1985_v36 }
 0x743   :  { %v1989_v30 = vmul.f32 %v3263_v45, %v1988_v7 }
 0x744   :  { %v1970_v26 = vadd.f32 %v3261_v20, %v1969_v15  ;;  %v1995_v15 = vand.u32 2147483647, %v1985_v36  ;;  %v1998_v17 = vor.u32 1.1754944e-38, %v1997_v50 }
 0x745   :  { %v1990_v32 = vadd.f32 %v3263_v45, %v1989_v30 }
 0x746   :  { %v1974_v57 = vsel %vm1973_vm10, %v3261_v20, %v1970_v26  ;;  %vm1996_vm15 = vcmp.eq.f32.partialorder %v1995_v15, 8.507059e+37 }
 0x747   :  { %v1979_v9 = vsel %vm1976_vm11, %v1978_v28, %v1974_v57  ;;  %v1994_v53 = vsel %vm1993_vm14, %v3263_v45, %v1990_v32 }
 0x748   :  { %v2002_v10 = vmul.f32 %v1979_v9, %v1958_v1  ;;  %v1999_v20 = vsel %vm1996_vm15, %v1998_v17, %v1994_v53 }
 0x74a   :  { %v2003_v12 = vadd.f32 %v2002_v10, %v2001_v42 }
 0x74c   :  { %3264 = vtanh.f32 %v2003_v12 }
 0x752   :  { %v3265_v25 = vpop.eup %3264 }
 0x753   :  { %v2005_v40 = vsub.f32 %v4239_v33, %v3265_v25 }
 0x755   :  { %v2006_v4 = vmul.f32 %v2005_v40, %v1999_v20 }
 0x757   :  { %v4298_v26 = vadd.f32 %v3265_v25, %v2006_v4 }
 0x759   :  { %2009 = vst [vmem:[#allocation16 + $0x8] sm:$0xff] %v4298_v26  ;;  %v2013_v3 = vpack.c.bf16 %v4298_v26, %v4298_v26 }
 0x75b   :  { %2022 = vmatmul.bf16.vlgmr.msra.gmra.mxu2 %v2013_v3  ;;  %2035 = vmatmul.bf16.vlgmr.msrb.gmra.mxu3 %v2013_v3 }
 0x75c   :  { %2048 = vmatmul.bf16.vlgmr.msrb.gmra.mxu0 %v2013_v3  ;;  %2224 = vmatpush.bf16.msra.mxu2 %v4119_v41 }
 0x75d   :  { %2290 = vmatpush.bf16.msrb.mxu3 %v4014_v55  ;;  %2303 = vmatpush.bf16.msrb.mxu0 %v4059_v61 }
 0x760   :  { %2225 = vmatpush.bf16.msra.mxu2 %v4122_v27 }
 0x761   :  { %2291 = vmatpush.bf16.msrb.mxu3 %v4017_v8  ;;  %2304 = vmatpush.bf16.msrb.mxu0 %v4063_v22 }
 0x764   :  { %2226 = vmatpush.bf16.msra.mxu2 %v4129_v51 }
 0x765   :  { %2292 = vmatpush.bf16.msrb.mxu3 %v4020_v2  ;;  %2305 = vmatpush.bf16.msrb.mxu0 %v4068_v24 }
 0x768   :  { %2227 = vmatpush.bf16.msra.mxu2 %v4141_v62 }
 0x769   :  { %2293 = vmatpush.bf16.msrb.mxu3 %v4027_v56  ;;  %2306 = vmatpush.bf16.msrb.mxu0 %v4073_v0 }
 0x76c   :  { %2228 = vmatpush.bf16.msra.mxu2 %v4145_v5 }
 0x76d   :  { %2294 = vmatpush.bf16.msrb.mxu3 %v4032_v18  ;;  %2307 = vmatpush.bf16.msrb.mxu0 %v4078_v38 }
 0x770   :  { %2229 = vmatpush.bf16.msra.mxu2 %v4149_v43 }
 0x771   :  { %2295 = vmatpush.bf16.msrb.mxu3 %v4035_v21  ;;  %2308 = vmatpush.bf16.msrb.mxu0 %v4086_v44 }
 0x774   :  { %2230 = vmatpush.bf16.msra.mxu2 %v4157_v23 }
 0x775   :  { %2296 = vmatpush.bf16.msrb.mxu3 %v4040_v14  ;;  %2309 = vmatpush.bf16.msrb.mxu0 %v4091_v13 }
 0x778   :  { %2231 = vmatpush.bf16.msra.mxu2 %v4164_v54 }
 0x779   :  { %2297 = vmatpush.bf16.msrb.mxu3 %v4044_v16  ;;  %2310 = vmatpush.bf16.msrb.mxu0 %v4096_v49 }
 0x7d9   :  { %v2049_v33 = vpop.f32.mrf.mxu0 }
 0x7de   :  { %v2023_v30 = vpop.f32.mrf.mxu2  ;;  %v2036_v32 = vpop.f32.mrf.mxu3 }
 0x7df   :  { %v2024_v36 = vadd.f32 %v2023_v30, %v4210_v63  ;;  %v2037_v45 = vadd.f32 %v2036_v32, %v4218_v58 }
 0x7e1   :  { %v2053_v7 = vadd.f32 %v2024_v36, %v4212_v37  ;;  %v2073_v28 = vadd.f32 %v2037_v45, %v4270_v11  ;;  %v2051_v1 = vpop.f32.mrf.mxu0  ;;  %v2050_v45 = vadd.f32 %v2049_v33, %v4230_v29 }
 0x7e2   :  { %v2093_v1 = vadd.f32 %v4235_v60, %v4268_v39 }
 0x7e3   :  { %v3037_v57 = vmul.f32 -1.442695, %v2053_v7  ;;  %v3038_v9 = vmul.f32 -1.442695, %v2073_v28 }
 0x7e5   :  { %3266 = vpow2.f32 %v3037_v57 }
 0x7e6   :  { %3268 = vpow2.f32 %v3038_v9  ;;  %v2025_v42 = vpop.f32.mrf.mxu2  ;;  %v2038_v10 = vpop.f32.mrf.mxu3 }
 0x7eb   :  { %v3267_v12 = vpop.eup %3266 }
 0x7ec   :  { %v3269_v50 = vpop.eup %3268  ;;  %v2057_v15 = vadd.f32 1.0, %v3267_v12 }
 0x7ed   :  { %v2077_v53 = vadd.f32 1.0, %v3269_v50 }
 0x7ee   :  { %3270 = vrcp.f32 %v2057_v15  ;;  %v2069_v37 = vand.u32 2147483648, %v2057_v15  ;;  %v2067_v3 = vand.u32 2147483647, %v2057_v15  ;;  %vm2063_vm1 = vweird.f32 %v2057_v15 }
 0x7ef   :  { %3272 = vrcp.f32 %v2077_v53  ;;  %v2089_v12 = vand.u32 2147483648, %v2077_v53  ;;  %vm2083_vm5 = vweird.f32 %v2077_v53  ;;  %v2087_v50 = vand.u32 2147483647, %v2077_v53 }
 0x7f0   :  { %v2070_v32 = vor.u32 1.1754944e-38, %v2069_v37  ;;  %vm2068_vm3 = vcmp.eq.f32.partialorder %v2067_v3, 8.507059e+37 }
 0x7f1   :  { %vm2088_vm7 = vcmp.eq.f32.partialorder %v2087_v50, 8.507059e+37 }
 0x7f4   :  { %v3271_v25 = vpop.eup %3270 }
 0x7f5   :  { %v3273_v17 = vpop.eup %3272  ;;  %v2059_v40 = vmul.f32 %v3271_v25, %v2057_v15  ;;  %vm2064_vm0 = vweird.f32 %v3271_v25 }
 0x7f6   :  { %v2079_v4 = vmul.f32 %v3273_v17, %v2077_v53  ;;  %vm2065_vm2 = vmor %vm2063_vm1, %vm2064_vm0  ;;  %vm2084_vm4 = vweird.f32 %v3273_v17 }
 0x7f7   :  { %v2060_v20 = vsub.f32 1.0, %v2059_v40  ;;  %vm2085_vm6 = vmor %vm2083_vm5, %vm2084_vm4 }
 0x7f8   :  { %v2080_v36 = vsub.f32 1.0, %v2079_v4 }
 0x7f9   :  { %v2061_v11 = vmul.f32 %v3271_v25, %v2060_v20  ;;  %v2090_v20 = vor.u32 1.1754944e-38, %v2089_v12 }
 0x7fa   :  { %v2081_v9 = vmul.f32 %v3273_v17, %v2080_v36 }
 0x7fb   :  { %v2062_v30 = vadd.f32 %v3271_v25, %v2061_v11 }
 0x7fc   :  { %v2082_v10 = vadd.f32 %v3273_v17, %v2081_v9 }
 0x7fd   :  { %v2066_v7 = vsel %vm2065_vm2, %v3271_v25, %v2062_v30 }
 0x7fe   :  { %v2071_v28 = vsel %vm2068_vm3, %v2070_v32, %v2066_v7  ;;  %v2086_v15 = vsel %vm2085_vm6, %v3273_v17, %v2082_v10 }
 0x7ff   :  { %v2094_v57 = vmul.f32 %v2071_v28, %v2050_v45  ;;  %v2091_v25 = vsel %vm2088_vm7, %v2090_v20, %v2086_v15 }
 0x801   :  { %v2095_v42 = vadd.f32 %v2094_v57, %v2093_v1 }
 0x803   :  { %3274 = vtanh.f32 %v2095_v42 }
 0x809   :  { %v3275_v40 = vpop.eup %3274 }
 0x80a   :  { %v2097_v33 = vsub.f32 %v4298_v26, %v3275_v40 }
 0x80c   :  { %v2098_v37 = vmul.f32 %v2097_v33, %v2091_v25 }
 0x80e   :  { %v4335_v4 = vadd.f32 %v3275_v40, %v2098_v37 }
 0x810   :  { %2101 = vst [vmem:[#allocation16 + $0x10] sm:$0xff] %v4335_v4  ;;  %v2105_v39 = vpack.c.bf16 %v4335_v4, %v4335_v4 }
 0x812   :  { %2114 = vmatmul.bf16.vlgmr.msra.gmra.mxu1 %v2105_v39  ;;  %2127 = vmatmul.bf16.vlgmr.msrb.gmra.mxu2 %v2105_v39 }
 0x813   :  { %2140 = vmatmul.bf16.vlgmr.msra.gmra.mxu3 %v2105_v39  ;;  %2316 = vmatpush.bf16.msra.mxu1 %v4119_v41 }
 0x814   :  { %2382 = vmatpush.bf16.msrb.mxu2 %v4014_v55  ;;  %2395 = vmatpush.bf16.msra.mxu3 %v4059_v61 }
 0x817   :  { %2317 = vmatpush.bf16.msra.mxu1 %v4122_v27 }
 0x818   :  { %2383 = vmatpush.bf16.msrb.mxu2 %v4017_v8  ;;  %2396 = vmatpush.bf16.msra.mxu3 %v4063_v22 }
 0x81b   :  { %2318 = vmatpush.bf16.msra.mxu1 %v4129_v51 }
 0x81c   :  { %2384 = vmatpush.bf16.msrb.mxu2 %v4020_v2  ;;  %2397 = vmatpush.bf16.msra.mxu3 %v4068_v24 }
 0x81f   :  { %2319 = vmatpush.bf16.msra.mxu1 %v4141_v62 }
 0x820   :  { %2385 = vmatpush.bf16.msrb.mxu2 %v4027_v56  ;;  %2398 = vmatpush.bf16.msra.mxu3 %v4073_v0 }
 0x823   :  { %2320 = vmatpush.bf16.msra.mxu1 %v4145_v5 }
 0x824   :  { %2386 = vmatpush.bf16.msrb.mxu2 %v4032_v18  ;;  %2399 = vmatpush.bf16.msra.mxu3 %v4078_v38 }
 0x827   :  { %2321 = vmatpush.bf16.msra.mxu1 %v4149_v43 }
 0x828   :  { %2387 = vmatpush.bf16.msrb.mxu2 %v4035_v21  ;;  %2400 = vmatpush.bf16.msra.mxu3 %v4086_v44 }
 0x82b   :  { %2322 = vmatpush.bf16.msra.mxu1 %v4157_v23 }
 0x82c   :  { %2388 = vmatpush.bf16.msrb.mxu2 %v4040_v14  ;;  %2401 = vmatpush.bf16.msra.mxu3 %v4091_v13 }
 0x82f   :  { %2323 = vmatpush.bf16.msra.mxu1 %v4164_v54 }
 0x830   :  { %2389 = vmatpush.bf16.msrb.mxu2 %v4044_v16  ;;  %2402 = vmatpush.bf16.msra.mxu3 %v4096_v49 }
 0x88f   :  { %v2115_v26 = vpop.f32.mrf.mxu1 }
 0x890   :  { %v2116_v53 = vadd.f32 %v2115_v26, %v4210_v63 }
 0x892   :  { %v2145_v17 = vadd.f32 %v2116_v53, %v4216_v35 }
 0x894   :  { %v3039_v11 = vmul.f32 -1.442695, %v2145_v17 }
 0x895   :  { %v2128_v3 = vpop.f32.mrf.mxu2 }
 0x896   :  { %3276 = vpow2.f32 %v3039_v11  ;;  %v2129_v30 = vadd.f32 %v2128_v3, %v4218_v58  ;;  %v2141_v32 = vpop.f32.mrf.mxu3  ;;  %v2185_v11 = vadd.f32 %v4235_v60, %v4272_v19 }
 0x897   :  { %v2117_v36 = vpop.f32.mrf.mxu1  ;;  %v2142_v26 = vadd.f32 %v2141_v32, %v4230_v29 }
 0x898   :  { %v2165_v45 = vadd.f32 %v2129_v30, %v4274_v59 }
 0x89a   :  { %v3040_v7 = vmul.f32 -1.442695, %v2165_v45 }
 0x89c   :  { %v3277_v28 = vpop.eup %3276  ;;  %3278 = vpow2.f32 %v3040_v7 }
 0x89d   :  { %v2149_v1 = vadd.f32 1.0, %v3277_v28  ;;  %v2130_v57 = vpop.f32.mrf.mxu2 }
 0x89e   :  { %v2143_v9 = vpop.f32.mrf.mxu3 }
 0x89f   :  { %3280 = vrcp.f32 %v2149_v1  ;;  %v2161_v15 = vand.u32 2147483648, %v2149_v1  ;;  %v2159_v20 = vand.u32 2147483647, %v2149_v1  ;;  %vm2155_vm9 = vweird.f32 %v2149_v1 }
 0x8a1   :  { %v2162_v37 = vor.u32 1.1754944e-38, %v2161_v15  ;;  %vm2160_vm11 = vcmp.eq.f32.partialorder %v2159_v20, 8.507059e+37 }
 0x8a2   :  { %v3279_v42 = vpop.eup %3278 }
 0x8a3   :  { %v2169_v10 = vadd.f32 1.0, %v3279_v42 }
 0x8a5   :  { %v3281_v12 = vpop.eup %3280  ;;  %3282 = vrcp.f32 %v2169_v10  ;;  %v2181_v7 = vand.u32 2147483648, %v2169_v10  ;;  %vm2175_vm13 = vweird.f32 %v2169_v10  ;;  %v2179_v28 = vand.u32 2147483647, %v2169_v10 }
 0x8a6   :  { %v2151_v35 = vmul.f32 %v3281_v12, %v2149_v1  ;;  %vm2156_vm8 = vweird.f32 %v3281_v12 }
 0x8a7   :  { %vm2157_vm10 = vmor %vm2155_vm9, %vm2156_vm8  ;;  %v2182_v9 = vor.u32 1.1754944e-38, %v2181_v7  ;;  %vm2180_vm15 = vcmp.eq.f32.partialorder %v2179_v28, 8.507059e+37 }
 0x8a8   :  { %v2152_v50 = vsub.f32 1.0, %v2151_v35 }
 0x8aa   :  { %v2153_v40 = vmul.f32 %v3281_v12, %v2152_v50 }
 0x8ab   :  { %v3283_v33 = vpop.eup %3282 }
 0x8ac   :  { %v2171_v25 = vmul.f32 %v3283_v33, %v2169_v10  ;;  %v2154_v59 = vadd.f32 %v3281_v12, %v2153_v40  ;;  %vm2176_vm12 = vweird.f32 %v3283_v33 }
 0x8ad   :  { %vm2177_vm14 = vmor %vm2175_vm13, %vm2176_vm12 }
 0x8ae   :  { %v2172_v39 = vsub.f32 1.0, %v2171_v25  ;;  %v2158_v53 = vsel %vm2157_vm10, %v3281_v12, %v2154_v59 }
 0x8af   :  { %v2163_v17 = vsel %vm2160_vm11, %v2162_v37, %v2158_v53  ;;  %v2277_v53 = vadd.f32 %v4235_v60, %v4276_v6 }
 0x8b0   :  { %v2186_v3 = vmul.f32 %v2163_v17, %v2142_v26  ;;  %v2173_v30 = vmul.f32 %v3283_v33, %v2172_v39 }
 0x8b2   :  { %v2187_v36 = vadd.f32 %v2186_v3, %v2185_v11  ;;  %v2174_v45 = vadd.f32 %v3283_v33, %v2173_v30 }
 0x8b4   :  { %3284 = vtanh.f32 %v2187_v36  ;;  %v2178_v1 = vsel %vm2177_vm14, %v3283_v33, %v2174_v45 }
 0x8b5   :  { %v2183_v42 = vsel %vm2180_vm15, %v2182_v9, %v2178_v1 }
 0x8ba   :  { %v3285_v57 = vpop.eup %3284 }
 0x8bb   :  { %v2189_v32 = vsub.f32 %v4335_v4, %v3285_v57 }
 0x8bd   :  { %v2190_v12 = vmul.f32 %v2189_v32, %v2183_v42 }
 0x8bf   :  { %v4372_v35 = vadd.f32 %v3285_v57, %v2190_v12 }
 0x8c1   :  { %2193 = vst [vmem:[#allocation16 + $0x18] sm:$0xff] %v4372_v35  ;;  %v2197_v19 = vpack.c.bf16 %v4372_v35, %v4372_v35 }
 0x8c3   :  { %2206 = vmatmul.bf16.vlgmr.msra.gmra.mxu0 %v2197_v19  ;;  %2219 = vmatmul.bf16.vlgmr.msrb.gmra.mxu1 %v2197_v19 }
 0x8c4   :  { %2232 = vmatmul.bf16.vlgmr.msra.gmra.mxu2 %v2197_v19  ;;  %2408 = vmatpush.bf16.msra.mxu0 %v4119_v41 }
 0x8c5   :  { %2474 = vmatpush.bf16.msrb.mxu1 %v4014_v55  ;;  %2487 = vmatpush.bf16.msra.mxu2 %v4059_v61 }
 0x8c8   :  { %2409 = vmatpush.bf16.msra.mxu0 %v4122_v27 }
 0x8c9   :  { %2475 = vmatpush.bf16.msrb.mxu1 %v4017_v8  ;;  %2488 = vmatpush.bf16.msra.mxu2 %v4063_v22 }
 0x8cc   :  { %2410 = vmatpush.bf16.msra.mxu0 %v4129_v51 }
 0x8cd   :  { %2476 = vmatpush.bf16.msrb.mxu1 %v4020_v2  ;;  %2489 = vmatpush.bf16.msra.mxu2 %v4068_v24 }
 0x8d0   :  { %2411 = vmatpush.bf16.msra.mxu0 %v4141_v62 }
 0x8d1   :  { %2477 = vmatpush.bf16.msrb.mxu1 %v4027_v56  ;;  %2490 = vmatpush.bf16.msra.mxu2 %v4073_v0 }
 0x8d4   :  { %2412 = vmatpush.bf16.msra.mxu0 %v4145_v5 }
 0x8d5   :  { %2478 = vmatpush.bf16.msrb.mxu1 %v4032_v18  ;;  %2491 = vmatpush.bf16.msra.mxu2 %v4078_v38 }
 0x8d8   :  { %2413 = vmatpush.bf16.msra.mxu0 %v4149_v43 }
 0x8d9   :  { %2479 = vmatpush.bf16.msrb.mxu1 %v4035_v21  ;;  %2492 = vmatpush.bf16.msra.mxu2 %v4086_v44 }
 0x8dc   :  { %2414 = vmatpush.bf16.msra.mxu0 %v4157_v23 }
 0x8dd   :  { %2480 = vmatpush.bf16.msrb.mxu1 %v4040_v14  ;;  %2493 = vmatpush.bf16.msra.mxu2 %v4091_v13 }
 0x8e0   :  { %2415 = vmatpush.bf16.msra.mxu0 %v4164_v54 }
 0x8e1   :  { %2481 = vmatpush.bf16.msrb.mxu1 %v4044_v16  ;;  %2494 = vmatpush.bf16.msra.mxu2 %v4096_v49 }
 0x940   :  { %v2207_v55 = vpop.f32.mrf.mxu0  ;;  %v2220_v8 = vpop.f32.mrf.mxu1 }
 0x941   :  { %v2208_v2 = vadd.f32 %v2207_v55, %v4210_v63  ;;  %v2221_v56 = vadd.f32 %v2220_v8, %v4218_v58 }
 0x943   :  { %v2237_v18 = vadd.f32 %v2208_v2, %v4222_v34  ;;  %v2257_v21 = vadd.f32 %v2221_v56, %v4278_v31 }
 0x945   :  { %v3041_v61 = vmul.f32 -1.442695, %v2237_v18  ;;  %v3042_v14 = vmul.f32 -1.442695, %v2257_v21 }
 0x947   :  { %3286 = vpow2.f32 %v3041_v61  ;;  %v2233_v22 = vpop.f32.mrf.mxu2 }
 0x948   :  { %3288 = vpow2.f32 %v3042_v14  ;;  %v2209_v24 = vpop.f32.mrf.mxu0  ;;  %v2222_v0 = vpop.f32.mrf.mxu1  ;;  %v2234_v37 = vadd.f32 %v2233_v22, %v4230_v29 }
 0x94d   :  { %v3287_v16 = vpop.eup %3286 }
 0x94e   :  { %v3289_v38 = vpop.eup %3288  ;;  %v2241_v44 = vadd.f32 1.0, %v3287_v16 }
 0x94f   :  { %v2261_v13 = vadd.f32 1.0, %v3289_v38  ;;  %v2235_v49 = vpop.f32.mrf.mxu2 }
 0x950   :  { %3290 = vrcp.f32 %v2241_v44  ;;  %v2253_v31 = vand.u32 2147483648, %v2241_v44  ;;  %v2251_v20 = vand.u32 2147483647, %v2241_v44  ;;  %vm2247_vm1 = vweird.f32 %v2241_v44 }
 0x951   :  { %3292 = vrcp.f32 %v2261_v13  ;;  %v2273_v36 = vand.u32 2147483648, %v2261_v13  ;;  %vm2267_vm5 = vweird.f32 %v2261_v13  ;;  %v2271_v45 = vand.u32 2147483647, %v2261_v13 }
 0x952   :  { %v2254_v59 = vor.u32 1.1754944e-38, %v2253_v31  ;;  %vm2252_vm3 = vcmp.eq.f32.partialorder %v2251_v20, 8.507059e+37 }
 0x953   :  { %v2274_v1 = vor.u32 1.1754944e-38, %v2273_v36  ;;  %vm2272_vm7 = vcmp.eq.f32.partialorder %v2271_v45, 8.507059e+37 }
 0x956   :  { %v3291_v4 = vpop.eup %3290 }
 0x957   :  { %v3293_v10 = vpop.eup %3292  ;;  %v2243_v50 = vmul.f32 %v3291_v4, %v2241_v44  ;;  %vm2248_vm0 = vweird.f32 %v3291_v4 }
 0x958   :  { %v2263_v15 = vmul.f32 %v3293_v10, %v2261_v13  ;;  %vm2249_vm2 = vmor %vm2247_vm1, %vm2248_vm0  ;;  %vm2268_vm4 = vweird.f32 %v3293_v10 }
 0x959   :  { %v2244_v34 = vsub.f32 1.0, %v2243_v50  ;;  %vm2269_vm6 = vmor %vm2267_vm5, %vm2268_vm4 }
 0x95a   :  { %v2264_v25 = vsub.f32 1.0, %v2263_v15 }
 0x95b   :  { %v2245_v40 = vmul.f32 %v3291_v4, %v2244_v34 }
 0x95c   :  { %v2265_v11 = vmul.f32 %v3293_v10, %v2264_v25 }
 0x95d   :  { %v2246_v33 = vadd.f32 %v3291_v4, %v2245_v40 }
 0x95e   :  { %v2266_v30 = vadd.f32 %v3293_v10, %v2265_v11 }
 0x95f   :  { %v2250_v39 = vsel %vm2249_vm2, %v3291_v4, %v2246_v33 }
 0x960   :  { %v2255_v26 = vsel %vm2252_vm3, %v2254_v59, %v2250_v39  ;;  %v2270_v7 = vsel %vm2269_vm6, %v3293_v10, %v2266_v30  ;;  %v2369_v10 = vadd.f32 %v4235_v60, %v4280_v47 }
 0x961   :  { %v2278_v17 = vmul.f32 %v2255_v26, %v2234_v37  ;;  %v2275_v9 = vsel %vm2272_vm7, %v2274_v1, %v2270_v7  ;;  %v4487_v7 = vld [vmem:[#allocation28_spill] sm:$0xff] }
 0x963   :  { %v2279_v3 = vadd.f32 %v2278_v17, %v2277_v53 }
 0x965   :  { %3294 = vtanh.f32 %v2279_v3 }
 0x96b   :  { %v3295_v28 = vpop.eup %3294 }
 0x96c   :  { %v2281_v57 = vsub.f32 %v4372_v35, %v3295_v28 }
 0x96e   :  { %v2282_v32 = vmul.f32 %v2281_v57, %v2275_v9 }
 0x970   :  { %v4409_v42 = vadd.f32 %v3295_v28, %v2282_v32 }
 0x972   :  { %2285 = vst [vmem:[#allocation16 + $0x20] sm:$0xff] %v4409_v42  ;;  %v2289_v6 = vpack.c.bf16 %v4409_v42, %v4409_v42 }
 0x974   :  { %2298 = vmatmul.bf16.vlgmr.msrb.gmra.mxu3 %v2289_v6  ;;  %2311 = vmatmul.bf16.vlgmr.msrb.gmra.mxu0 %v2289_v6 }
 0x975   :  { %2324 = vmatmul.bf16.vlgmr.msra.gmra.mxu1 %v2289_v6  ;;  %2500 = vmatpush.bf16.msrb.mxu3 %v4119_v41 }
 0x979   :  { %2501 = vmatpush.bf16.msrb.mxu3 %v4122_v27 }
 0x97d   :  { %2502 = vmatpush.bf16.msrb.mxu3 %v4129_v51 }
 0x981   :  { %2503 = vmatpush.bf16.msrb.mxu3 %v4141_v62 }
 0x985   :  { %2504 = vmatpush.bf16.msrb.mxu3 %v4145_v5 }
 0x989   :  { %2505 = vmatpush.bf16.msrb.mxu3 %v4149_v43 }
 0x98d   :  { %2506 = vmatpush.bf16.msrb.mxu3 %v4157_v23 }
 0x991   :  { %2507 = vmatpush.bf16.msrb.mxu3 %v4164_v54 }
 0x9f1   :  { %v2312_v12 = vpop.f32.mrf.mxu0 }
 0x9f2   :  { %v2313_v35 = vadd.f32 %v2312_v12, %v4218_v58  ;;  %v2325_v19 = vpop.f32.mrf.mxu1 }
 0x9f3   :  { %v2326_v13 = vadd.f32 %v2325_v19, %v4230_v29 }
 0x9f4   :  { %v2349_v41 = vadd.f32 %v2313_v35, %v4282_v52 }
 0x9f6   :  { %v3044_v55 = vmul.f32 -1.442695, %v2349_v41 }
 0x9f7   :  { %v2299_v27 = vpop.f32.mrf.mxu3 }
 0x9f8   :  { %v2300_v51 = vadd.f32 %v2299_v27, %v4210_v63  ;;  %3296 = vpow2.f32 %v3044_v55 }
 0x9f9   :  { %v2314_v8 = vpop.f32.mrf.mxu0 }
 0x9fa   :  { %v2329_v62 = vadd.f32 %v2300_v51, %v4224_v48  ;;  %v2327_v5 = vpop.f32.mrf.mxu1 }
 0x9fc   :  { %v3043_v43 = vmul.f32 -1.442695, %v2329_v62 }
 0x9fe   :  { %3298 = vpow2.f32 %v3043_v43  ;;  %v3297_v2 = vpop.eup %3296 }
 0x9ff   :  { %v2301_v23 = vpop.f32.mrf.mxu3  ;;  %v2353_v56 = vadd.f32 1.0, %v3297_v2 }
 0xa01   :  { %v2365_v40 = vand.u32 2147483648, %v2353_v56  ;;  %vm2359_vm13 = vweird.f32 %v2353_v56  ;;  %v2363_v20 = vand.u32 2147483647, %v2353_v56 }
 0xa03   :  { %v2366_v59 = vor.u32 1.1754944e-38, %v2365_v40  ;;  %vm2364_vm15 = vcmp.eq.f32.partialorder %v2363_v20, 8.507059e+37 }
 0xa04   :  { %v3299_v54 = vpop.eup %3298 }
 0xa05   :  { %v2333_v18 = vadd.f32 1.0, %v3299_v54 }
 0xa07   :  { %3300 = vrcp.f32 %v2333_v18  ;;  %v2345_v24 = vand.u32 2147483648, %v2333_v18  ;;  %v2343_v48 = vand.u32 2147483647, %v2333_v18  ;;  %vm2339_vm9 = vweird.f32 %v2333_v18 }
 0xa08   :  { %3302 = vrcp.f32 %v2353_v56 }
 0xa09   :  { %v2346_v44 = vor.u32 1.1754944e-38, %v2345_v24  ;;  %vm2344_vm11 = vcmp.eq.f32.partialorder %v2343_v48, 8.507059e+37 }
 0xa0d   :  { %v3301_v21 = vpop.eup %3300 }
 0xa0e   :  { %v3303_v52 = vpop.eup %3302  ;;  %v2335_v61 = vmul.f32 %v3301_v21, %v2333_v18  ;;  %vm2340_vm8 = vweird.f32 %v3301_v21 }
 0xa0f   :  { %v2355_v22 = vmul.f32 %v3303_v52, %v2353_v56  ;;  %vm2341_vm10 = vmor %vm2339_vm9, %vm2340_vm8  ;;  %vm2360_vm12 = vweird.f32 %v3303_v52 }
 0xa10   :  { %v2336_v14 = vsub.f32 1.0, %v2335_v61  ;;  %vm2361_vm14 = vmor %vm2359_vm13, %vm2360_vm12 }
 0xa11   :  { %v2356_v38 = vsub.f32 1.0, %v2355_v22 }
 0xa12   :  { %v2337_v0 = vmul.f32 %v3301_v21, %v2336_v14 }
 0xa13   :  { %v2357_v34 = vmul.f32 %v3303_v52, %v2356_v38 }
 0xa14   :  { %v2338_v16 = vadd.f32 %v3301_v21, %v2337_v0 }
 0xa15   :  { %v2358_v31 = vadd.f32 %v3303_v52, %v2357_v34 }
 0xa16   :  { %v2342_v49 = vsel %vm2341_vm10, %v3301_v21, %v2338_v16  ;;  %v4488_v21 = vld [vmem:[#allocation26_spill] sm:$0xff] }
 0xa17   :  { %v2347_v4 = vsel %vm2344_vm11, %v2346_v44, %v2342_v49  ;;  %v2362_v33 = vsel %vm2361_vm14, %v3303_v52, %v2358_v31  ;;  %v2461_v52 = vadd.f32 %v4235_v60, %v4488_v21 }
 0xa18   :  { %v2370_v50 = vmul.f32 %v2347_v4, %v2326_v13  ;;  %v2367_v39 = vsel %vm2364_vm15, %v2366_v59, %v2362_v33 }
 0xa1a   :  { %v2371_v15 = vadd.f32 %v2370_v50, %v2369_v10 }
 0xa1c   :  { %3304 = vtanh.f32 %v2371_v15  ;;  %v4489_v15 = vld [vmem:[#allocation27_spill] sm:$0xff] }
 0xa22   :  { %v3305_v25 = vpop.eup %3304 }
 0xa23   :  { %v2373_v37 = vsub.f32 %v4409_v42, %v3305_v25 }
 0xa25   :  { %v2374_v26 = vmul.f32 %v2373_v37, %v2367_v39  ;;  %v4490_v37 = vld [vmem:[#allocation29_spill] sm:$0xff] }
 0xa27   :  { %v2375_v53 = vadd.f32 %v3305_v25, %v2374_v26 }
 0xa29   :  { %2377 = vst [vmem:[#allocation16 + $0x28] sm:$0xff] %v2375_v53  ;;  %v2381_v47 = vpack.c.bf16 %v2375_v53, %v2375_v53 }
 0xa2b   :  { %2390 = vmatmul.bf16.vlgmr.msrb.gmra.mxu2 %v2381_v47  ;;  %2403 = vmatmul.bf16.vlgmr.msra.gmra.mxu3 %v2381_v47 }
 0xa2c   :  { %2416 = vmatmul.bf16.vlgmr.msra.gmra.mxu0 %v2381_v47 }
 0xaa9   :  { %v2417_v17 = vpop.f32.mrf.mxu0 }
 0xaaa   :  { %v2418_v54 = vadd.f32 %v2417_v17, %v4230_v29 }
 0xaae   :  { %v2391_v11 = vpop.f32.mrf.mxu2  ;;  %v2404_v3 = vpop.f32.mrf.mxu3 }
 0xaaf   :  { %v2392_v30 = vadd.f32 %v2391_v11, %v4210_v63  ;;  %v2405_v36 = vadd.f32 %v2404_v3, %v4218_v58 }
 0xab1   :  { %v2421_v45 = vadd.f32 %v2392_v30, %v4226_v46  ;;  %v2441_v28 = vadd.f32 %v2405_v36, %v4487_v7  ;;  %v2419_v1 = vpop.f32.mrf.mxu0 }
 0xab3   :  { %v3045_v57 = vmul.f32 -1.442695, %v2421_v45  ;;  %v3046_v9 = vmul.f32 -1.442695, %v2441_v28 }
 0xab5   :  { %3306 = vpow2.f32 %v3045_v57 }
 0xab6   :  { %3308 = vpow2.f32 %v3046_v9  ;;  %v2393_v32 = vpop.f32.mrf.mxu2  ;;  %v2406_v42 = vpop.f32.mrf.mxu3 }
 0xabb   :  { %v3307_v6 = vpop.eup %3306 }
 0xabc   :  { %v3309_v12 = vpop.eup %3308  ;;  %v2425_v35 = vadd.f32 1.0, %v3307_v6 }
 0xabd   :  { %v2445_v19 = vadd.f32 1.0, %v3309_v12 }
 0xabe   :  { %3310 = vrcp.f32 %v2425_v35  ;;  %v2437_v46 = vand.u32 2147483648, %v2425_v35  ;;  %v2435_v5 = vand.u32 2147483647, %v2425_v35  ;;  %vm2431_vm1 = vweird.f32 %v2425_v35 }
 0xabf   :  { %3312 = vrcp.f32 %v2445_v19  ;;  %v2457_v0 = vand.u32 2147483648, %v2445_v19  ;;  %vm2451_vm5 = vweird.f32 %v2445_v19  ;;  %v2455_v48 = vand.u32 2147483647, %v2445_v19 }
 0xac0   :  { %v2438_v23 = vor.u32 1.1754944e-38, %v2437_v46  ;;  %vm2436_vm3 = vcmp.eq.f32.partialorder %v2435_v5, 8.507059e+37 }
 0xac1   :  { %v2458_v44 = vor.u32 1.1754944e-38, %v2457_v0  ;;  %vm2456_vm7 = vcmp.eq.f32.partialorder %v2455_v48, 8.507059e+37 }
 0xac4   :  { %v3311_v41 = vpop.eup %3310 }
 0xac5   :  { %v3313_v55 = vpop.eup %3312  ;;  %v2427_v27 = vmul.f32 %v3311_v41, %v2425_v35  ;;  %vm2432_vm0 = vweird.f32 %v3311_v41 }
 0xac6   :  { %v2447_v8 = vmul.f32 %v3313_v55, %v2445_v19  ;;  %vm2433_vm2 = vmor %vm2431_vm1, %vm2432_vm0  ;;  %vm2452_vm4 = vweird.f32 %v3313_v55  ;;  %v3327_v19 = vld [vmem:[%s4466_s8] ss:$0 sm:$0xff]  ;;  %s2574_s8 = sshll.u32 %s3543_s28, 4  ;;  %s2575_s8 = int_to_ptr.vmem [resolvable:$true] %s2574_s8 }
 0xac7   :  { %v2428_v51 = vsub.f32 1.0, %v2427_v27  ;;  %vm2453_vm6 = vmor %vm2451_vm5, %vm2452_vm4 }
 0xac8   :  { %v2448_v2 = vsub.f32 1.0, %v2447_v8 }
 0xac9   :  { %v2429_v62 = vmul.f32 %v3311_v41, %v2428_v51 }
 0xaca   :  { %v2449_v14 = vmul.f32 %v3313_v55, %v2448_v2 }
 0xacb   :  { %v2430_v43 = vadd.f32 %v3311_v41, %v2429_v62 }
 0xacc   :  { %v2450_v24 = vadd.f32 %v3313_v55, %v2449_v14 }
 0xacd   :  { %v2434_v56 = vsel %vm2433_vm2, %v3311_v41, %v2430_v43  ;;  %v4491_v41 = vld [vmem:[#allocation25_spill] sm:$0xff] }
 0xace   :  { %v2439_v18 = vsel %vm2436_vm3, %v2438_v23, %v2434_v56  ;;  %v2454_v16 = vsel %vm2453_vm6, %v3313_v55, %v2450_v24  ;;  %v2553_v55 = vadd.f32 %v3327_v19, %v4491_v41 }
 0xacf   :  { %v2462_v61 = vmul.f32 %v2439_v18, %v2418_v54  ;;  %v2459_v49 = vsel %vm2456_vm7, %v2458_v44, %v2454_v16 }
 0xad1   :  { %v2463_v22 = vadd.f32 %v2462_v61, %v2461_v52 }
 0xad3   :  { %3314 = vtanh.f32 %v2463_v22 }
 0xad9   :  { %v3315_v38 = vpop.eup %3314 }
 0xada   :  { %v2465_v13 = vsub.f32 %v2375_v53, %v3315_v38 }
 0xadc   :  { %v2466_v4 = vmul.f32 %v2465_v13, %v2459_v49 }
 0xade   :  { %v4437_v10 = vadd.f32 %v3315_v38, %v2466_v4 }
 0xae0   :  { %2469 = vst [vmem:[#allocation16 + $0x30] sm:$0xff] %v4437_v10  ;;  %v2473_v60 = vpack.c.bf16 %v4437_v10, %v4437_v10 }
 0xae2   :  { %2482 = vmatmul.bf16.vlgmr.msrb.gmra.mxu1 %v2473_v60  ;;  %2495 = vmatmul.bf16.vlgmr.msra.gmra.mxu2 %v2473_v60 }
 0xae3   :  { %2508 = vmatmul.bf16.vlgmr.msrb.gmra.mxu3 %v2473_v60 }
 0xb5f   :  { %v2483_v50 = vpop.f32.mrf.mxu1 }
 0xb60   :  { %v2484_v34 = vadd.f32 %v2483_v50, %v4210_v63 }
 0xb62   :  { %v2513_v31 = vadd.f32 %v2484_v34, %v4489_v15 }
 0xb64   :  { %v3047_v40 = vmul.f32 -1.442695, %v2513_v31 }
 0xb65   :  { %v2496_v20 = vpop.f32.mrf.mxu2 }
 0xb66   :  { %3316 = vpow2.f32 %v3047_v40  ;;  %v2497_v33 = vadd.f32 %v2496_v20, %v4218_v58  ;;  %v2509_v25 = vpop.f32.mrf.mxu3 }
 0xb67   :  { %v2485_v59 = vpop.f32.mrf.mxu1  ;;  %v2510_v6 = vadd.f32 %v2509_v25, %v4230_v29 }
 0xb68   :  { %v2533_v39 = vadd.f32 %v2497_v33, %v4490_v37 }
 0xb6a   :  { %v3048_v26 = vmul.f32 -1.442695, %v2533_v39 }
 0xb6c   :  { %v3317_v53 = vpop.eup %3316  ;;  %3318 = vpow2.f32 %v3048_v26 }
 0xb6d   :  { %v2517_v47 = vadd.f32 1.0, %v3317_v53  ;;  %v2498_v17 = vpop.f32.mrf.mxu2 }
 0xb6e   :  { %v2511_v11 = vpop.f32.mrf.mxu3 }
 0xb6f   :  { %3320 = vrcp.f32 %v2517_v47  ;;  %v2529_v7 = vand.u32 2147483648, %v2517_v47  ;;  %v2527_v58 = vand.u32 2147483647, %v2517_v47  ;;  %vm2523_vm9 = vweird.f32 %v2517_v47 }
 0xb71   :  { %v2530_v32 = vor.u32 1.1754944e-38, %v2529_v7  ;;  %vm2528_vm11 = vcmp.eq.f32.partialorder %v2527_v58, 8.507059e+37 }
 0xb72   :  { %v3319_v3 = vpop.eup %3318 }
 0xb73   :  { %v2537_v63 = vadd.f32 1.0, %v3319_v3 }
 0xb75   :  { %v3321_v30 = vpop.eup %3320  ;;  %3322 = vrcp.f32 %v2537_v63  ;;  %v2549_v62 = vand.u32 2147483648, %v2537_v63  ;;  %vm2543_vm13 = vweird.f32 %v2537_v63  ;;  %v2547_v5 = vand.u32 2147483647, %v2537_v63 }
 0xb76   :  { %v2519_v36 = vmul.f32 %v3321_v30, %v2517_v47  ;;  %vm2524_vm8 = vweird.f32 %v3321_v30 }
 0xb77   :  { %vm2525_vm10 = vmor %vm2523_vm9, %vm2524_vm8  ;;  %v2550_v23 = vor.u32 1.1754944e-38, %v2549_v62  ;;  %vm2548_vm15 = vcmp.eq.f32.partialorder %v2547_v5, 8.507059e+37 }
 0xb78   :  { %v2520_v45 = vsub.f32 1.0, %v2519_v36 }
 0xb7a   :  { %v2521_v28 = vmul.f32 %v3321_v30, %v2520_v45 }
 0xb7b   :  { %v3323_v1 = vpop.eup %3322 }
 0xb7c   :  { %v2539_v57 = vmul.f32 %v3323_v1, %v2537_v63  ;;  %v2522_v9 = vadd.f32 %v3321_v30, %v2521_v28  ;;  %vm2544_vm12 = vweird.f32 %v3323_v1 }
 0xb7d   :  { %vm2545_vm14 = vmor %vm2543_vm13, %vm2544_vm12 }
 0xb7e   :  { %v2540_v42 = vsub.f32 1.0, %v2539_v57  ;;  %v2526_v12 = vsel %vm2525_vm10, %v3321_v30, %v2522_v9 }
 0xb7f   :  { %v2531_v35 = vsel %vm2528_vm11, %v2530_v32, %v2526_v12 }
 0xb80   :  { %v2554_v27 = vmul.f32 %v2531_v35, %v2510_v6  ;;  %v2541_v51 = vmul.f32 %v3323_v1, %v2540_v42 }
 0xb82   :  { %v2555_v46 = vadd.f32 %v2554_v27, %v2553_v55  ;;  %v2542_v8 = vadd.f32 %v3323_v1, %v2541_v51 }
 0xb84   :  { %3324 = vtanh.f32 %v2555_v46  ;;  %v2546_v29 = vsel %vm2545_vm14, %v3323_v1, %v2542_v8 }
 0xb85   :  { %v2551_v54 = vsel %vm2548_vm15, %v2550_v23, %v2546_v29 }
 0xb8a   :  { %v3325_v43 = vpop.eup %3324 }
 0xb8b   :  { %v2557_v2 = vsub.f32 %v4437_v10, %v3325_v43 }
 0xb8d   :  { %v2558_v56 = vmul.f32 %v2557_v2, %v2551_v54 }
 0xb8f   :  { %v2559_v18 = vadd.f32 %v3325_v43, %v2558_v56 }
 0xb91   :  { %2561 = vst [vmem:[#allocation16 + $0x38] sm:$0xff] %v2559_v18 }
 0xb92   :  { %2569 = vst [vmem:[#allocation17 + $0x8] sm:$0xff] %v2559_v18  ;;  %2582 = dma.vmem_to_hbm [thread:$0]  %s2575_s8, 1024, %s2577_s30, [#allocation7], %s3545_s16, %s3545_s16, %s3546_s0  }
 0xb93   :  { %2595 = dma.vmem_to_hbm [thread:$0]  %s2588_s12, 256, %s2590_s15, [#allocation18], %s3545_s16, %s3545_s16, %s3546_s0  }
 0xb94   :  { %3528 = dma.done.wait [#allocation7], 1024  }
 0xb95   :  { %3529 = vsyncadd [#allocation7], 4294966272 }
 0xb96   :  { %3530 = dma.done.wait [#allocation18], 256  }
 0xb97   :  { %3531 = vsyncadd [#allocation18], 4294967040 }
 0xb98   :  { %2604 = vsyncpa [#allocation6], 1 }
 0xb99   :  { %2605 = vsyncpa [#allocation9], 1 }
 0xb9a   :  { %2606 = vsyncpa [#allocation12], 1 }
 0xb9b   :  { %2607 = vsyncpa [#allocation15], 1 }
 0xb9c   :  { %2608 = vsyncpa [#allocation7], 1 }
 0xb9d   :  { %2609 = vsyncpa [#allocation18], 1 }

</bundles_post_ra>
